<compile_context>
chip_gen: v5e
topology: v5e:2x2
jax: 0.10.0
libtpu: 0.0.40
codegen_flags: <defaults>
</compile_context>

<pallas_src>
import functools

import jax
import jax.numpy as jnp
from jax.experimental import pallas as pl
from jax.experimental.pallas import tpu as pltpu


# ----------------------------------------------------------------------------
# helpers
# ----------------------------------------------------------------------------
def _round_up(x, m):
    return ((x + m - 1) // m) * m


def _tile_and_pad(dim, cap, align):
    """Pick a tile size (multiple of `align`, <= cap) and the padded extent."""
    padded = _round_up(dim, align)
    if padded <= cap:
        return padded, padded
    best = align
    t = align
    while t <= cap:
        if padded % t == 0:
            best = t
        t += align
    return best, padded


# ----------------------------------------------------------------------------
# Tiled fused matmul + bias + activation (MXU hot path)
# ----------------------------------------------------------------------------
def _matmul_bias_act_kernel(x_ref, w_ref, b_ref, o_ref, acc_ref, *, act):
    k = pl.program_id(2)

    @pl.when(k == 0)
    def _():
        acc_ref[...] = jnp.zeros_like(acc_ref)

    acc_ref[...] += jnp.dot(x_ref[...], w_ref[...],
                            preferred_element_type=jnp.float32)

    @pl.when(k == pl.num_programs(2) - 1)
    def _():
        acc = acc_ref[...] + b_ref[...]            # (1, tn) broadcast, VPU
        if act == "relu":
            acc = jnp.maximum(acc, 0.0)
        elif act == "sigmoid":
            acc = 1.0 / (1.0 + jnp.exp(-acc))      # exp -> EUP slot (free-ish)
        o_ref[...] = acc.astype(o_ref.dtype)


def matmul_bias_act(x, w, b, act="none"):
    """x: (M, K) f32, w: (K, N) f32, b: (N,) f32 -> (M, N) f32.

    bf16 MXU inputs, f32 accumulation, M/N/K padded to aligned tiles so the
    output is lane-dense and K is (8,128)-tile aligned.
    """
    M, K = x.shape
    K2, N = w.shape
    assert K == K2, (K, K2)

    # v7x-safe tile caps (2 inputs x 2 buffers + f32 acc well under 32 MiB).
    tm, Mp = _tile_and_pad(M, 256, 16)      # 16: bf16 sublane packing
    tn, Np = _tile_and_pad(N, 256, 128)     # lane-dense output
    tk, Kp = _tile_and_pad(K, 512, 128)

    xp = jnp.pad(x, ((0, Mp - M), (0, Kp - K))).astype(jnp.bfloat16)
    wp = jnp.pad(w, ((0, Kp - K), (0, Np - N))).astype(jnp.bfloat16)
    bp = jnp.pad(b.astype(jnp.float32), (0, Np - N)).reshape(1, Np)

    grid = (Mp // tm, Np // tn, Kp // tk)
    out = pl.pallas_call(
        functools.partial(_matmul_bias_act_kernel, act=act),
        out_shape=jax.ShapeDtypeStruct((Mp, Np), jnp.float32),
        grid_spec=pltpu.PrefetchScalarGridSpec(
            num_scalar_prefetch=0,
            grid=grid,
            in_specs=[
                pl.BlockSpec((tm, tk), lambda i, j, k: (i, k)),
                pl.BlockSpec((tk, tn), lambda i, j, k: (k, j)),
                pl.BlockSpec((1, tn), lambda i, j, k: (0, j)),
            ],
            out_specs=pl.BlockSpec((tm, tn), lambda i, j, k: (i, j)),
            scratch_shapes=[pltpu.VMEM((tm, tn), jnp.float32)],
        ),
        compiler_params=pltpu.CompilerParams(
            dimension_semantics=("parallel", "parallel", "arbitrary"),
            vmem_limit_bytes=32 * 1024 * 1024,
        ),
        cost_estimate=pl.CostEstimate(
            flops=2 * Mp * Np * Kp,
            bytes_accessed=Mp * Kp * 2 + Kp * Np * 2 + Mp * Np * 4 + Np * 4,
            transcendentals=Mp * Np if act == "sigmoid" else 0,
        ),
    )(xp, wp, bp)
    return out[:M, :N]


# ----------------------------------------------------------------------------
# Fused encoder head: [mu | logvar] = flat @ Wcat + bcat ; z = mu + eps*exp(.5*lv)
# ----------------------------------------------------------------------------
def _enc_head_kernel(x_ref, w_ref, b_ref, eps_ref, mu_ref, lv_ref, z_ref,
                     acc_ref, *, npad):
    k = pl.program_id(0)

    @pl.when(k == 0)
    def _():
        acc_ref[...] = jnp.zeros_like(acc_ref)

    acc_ref[...] += jnp.dot(x_ref[...], w_ref[...],
                            preferred_element_type=jnp.float32)

    @pl.when(k == pl.num_programs(0) - 1)
    def _():
        acc = acc_ref[...] + b_ref[...]
        mu = acc[:, :npad]                 # lane-aligned (128) split
        lv = acc[:, npad:]
        mu_ref[...] = mu
        lv_ref[...] = lv
        z_ref[...] = mu + eps_ref[...] * jnp.exp(lv * 0.5)   # reparam fused


def encoder_head(flat, w_mu, b_mu, w_var, b_var, eps):
    """flat: (B, F); w_*: (F, nz); eps: (B, nz) -> (mu, logvar, z) each (B, nz)."""
    B, F = flat.shape
    nz = w_mu.shape[1]
    npad = _round_up(nz, 128)
    Bp = _round_up(B, 16)
    tk, Fp = _tile_and_pad(F, 512, 128)

    xp = jnp.pad(flat, ((0, Bp - B), (0, Fp - F))).astype(jnp.bfloat16)
    wcat = jnp.zeros((Fp, 2 * npad), jnp.bfloat16)
    wcat = wcat.at[:F, :nz].set(w_mu.astype(jnp.bfloat16))
    wcat = wcat.at[:F, npad:npad + nz].set(w_var.astype(jnp.bfloat16))
    bcat = jnp.zeros((1, 2 * npad), jnp.float32)
    bcat = bcat.at[0, :nz].set(b_mu.astype(jnp.float32))
    bcat = bcat.at[0, npad:npad + nz].set(b_var.astype(jnp.float32))
    eps_p = jnp.pad(eps.astype(jnp.float32), ((0, Bp - B), (0, npad - nz)))

    grid = (Fp // tk,)
    mu_p, lv_p, z_p = pl.pallas_call(
        functools.partial(_enc_head_kernel, npad=npad),
        out_shape=(jax.ShapeDtypeStruct((Bp, npad), jnp.float32),) * 3,
        grid_spec=pltpu.PrefetchScalarGridSpec(
            num_scalar_prefetch=0,
            grid=grid,
            in_specs=[
                pl.BlockSpec((Bp, tk), lambda k: (0, k)),
                pl.BlockSpec((tk, 2 * npad), lambda k: (k, 0)),
                pl.BlockSpec((1, 2 * npad), lambda k: (0, 0)),
                pl.BlockSpec((Bp, npad), lambda k: (0, 0)),
            ],
            out_specs=[pl.BlockSpec((Bp, npad), lambda k: (0, 0))] * 3,
            scratch_shapes=[pltpu.VMEM((Bp, 2 * npad), jnp.float32)],
        ),
        compiler_params=pltpu.CompilerParams(
            dimension_semantics=("arbitrary",),
            vmem_limit_bytes=32 * 1024 * 1024,
        ),
        cost_estimate=pl.CostEstimate(
            flops=2 * Bp * (2 * npad) * Fp,
            bytes_accessed=Bp * Fp * 2 + Fp * 2 * npad * 2 + 4 * Bp * npad * 4,
            transcendentals=Bp * npad,
        ),
    )(xp, wcat, bcat, eps_p)
    return mu_p[:B, :nz], lv_p[:B, :nz], z_p[:B, :nz]


# ----------------------------------------------------------------------------
# Conv glue: NHWC im2col (and fused 2x nearest-upsample im2col)
# ----------------------------------------------------------------------------
def _patches_nhwc(x, k, stride, pad):
    B, H, W, C = x.shape
    xp = jnp.pad(x, ((0, 0), (pad, pad), (pad, pad), (0, 0)))
    Ho = (H + 2 * pad - k) // stride + 1
    Wo = (W + 2 * pad - k) // stride + 1
    slices = []
    for i in range(k):
        for j in range(k):
            slices.append(
                xp[:, i:i + stride * Ho:stride, j:j + stride * Wo:stride, :])
    p = jnp.stack(slices, axis=3)                # (B, Ho, Wo, k*k, C)
    return p.reshape(B * Ho * Wo, k * k * C), Ho, Wo


def _patches_upsample2x_nhwc(x, k, pad):
    """Patches of (nearest-2x-upsample(x) padded by `pad`), gathered directly
    from the small source tensor (no 4x upsampled intermediate in HBM)."""
    B, H, W, C = x.shape
    Ho, Wo = 2 * H, 2 * W
    xp = jnp.pad(x, ((0, 0), (1, 1), (1, 1), (0, 0)))   # zero border rows/cols

    def src_idx(size, d):
        idx = []
        for o in range(2 * size):
            u = o + d - pad                    # coordinate in the upsampled image
            if u < 0:
                idx.append(0)                  # zero-pad row
            elif u >= 2 * size:
                idx.append(size + 1)           # zero-pad row
            else:
                idx.append(u // 2 + 1)         # nearest-neighbour source row
        return jnp.asarray(idx, dtype=jnp.int32)

    row_idx = [src_idx(H, d) for d in range(k)]
    col_idx = [src_idx(W, d) for d in range(k)]
    slices = []
    for i in range(k):
        xi = jnp.take(xp, row_idx[i], axis=1)
        for j in range(k):
            slices.append(jnp.take(xi, col_idx[j], axis=2))
    p = jnp.stack(slices, axis=3)                # (B, Ho, Wo, k*k, C)
    return p.reshape(B * Ho * Wo, k * k * C), Ho, Wo


def conv2d_nhwc(x, w, b, stride=1, pad=1, act="none", upsample2x=False):
    """x: (B, H, W, Cin); w: (Cout, Cin, k, k) torch layout; b: (Cout,)."""
    B = x.shape[0]
    Cout, Cin, k, _ = w.shape
    if upsample2x:
        patches, Ho, Wo = _patches_upsample2x_nhwc(x, k, pad)
    else:
        patches, Ho, Wo = _patches_nhwc(x, k, stride, pad)
    # feature order of patches is (kh, kw, Cin) -> matching HWIO weight flatten
    wm = jnp.transpose(w, (2, 3, 1, 0)).reshape(k * k * Cin, Cout)
    y = matmul_bias_act(patches, wm, b, act=act)        # (B*Ho*Wo, Cout)
    return y.reshape(B, Ho, Wo, Cout)


# ----------------------------------------------------------------------------
# Parameter construction (deterministic, synthetic)
# ----------------------------------------------------------------------------
def init_vae_params(key, in_ch, in_hw, n_conv_layers, nz):
    ks = jax.random.split(key, 64)
    ki = iter(range(64))

    def nrm(shape, scale=0.05):
        return scale * jax.random.normal(ks[next(ki)], shape, dtype=jnp.float32)

    params = {}
    # Encoder down convs: channels x4, spatial /2 per layer
    enc_convs = []
    ch = in_ch
    hw = in_hw
    for _ in range(n_conv_layers):
        out_ch = ch * 4
        enc_convs.append((nrm((out_ch, ch, 3, 3)), nrm((out_ch,))))
        ch, hw = out_ch, hw // 2
    params["enc_convs"] = enc_convs
    final_ch, final_hw = ch, hw
    flat = final_ch * final_hw * final_hw

    params["fc_mu_w"] = nrm((flat, nz))
    params["fc_mu_b"] = nrm((nz,))
    params["fc_var_w"] = nrm((flat, nz))
    params["fc_var_b"] = nrm((nz,))

    params["fc_z_w"] = nrm((nz, flat))
    params["fc_z_b"] = nrm((flat,))

    # Decoder up convs: 2x nearest upsample then conv, channels /4 per layer
    dec_convs = []
    ch = final_ch
    for _ in range(n_conv_layers):
        out_ch = ch // 4
        dec_convs.append((nrm((out_ch, ch, 3, 3)), nrm((out_ch,))))
        ch = out_ch
    params["dec_convs"] = dec_convs

    # outconv: source_ch -> source_ch, same size, sigmoid
    params["out_w"] = nrm((in_ch, in_ch, 3, 3))
    params["out_b"] = nrm((in_ch,))

    cfg = {"final_ch": final_ch, "final_hw": final_hw, "nz": nz}
    return params, cfg


# ----------------------------------------------------------------------------
# VAE forward
# ----------------------------------------------------------------------------
def vae_forward(params, cfg, x_nchw, eps):
    B = x_nchw.shape[0]
    x = jnp.transpose(x_nchw, (0, 2, 3, 1))            # NCHW -> NHWC (once)

    # ---- Encoder ----
    h = x
    for (w, b) in params["enc_convs"]:
        h = conv2d_nhwc(h, w, b, stride=2, pad=1, act="relu")
    # nn.Flatten operates on NCHW; emulate that order once at the bottleneck
    flat = jnp.transpose(h, (0, 3, 1, 2)).reshape(B, -1)
    mu, logvar, z = encoder_head(flat,
                                 params["fc_mu_w"], params["fc_mu_b"],
                                 params["fc_var_w"], params["fc_var_b"], eps)

    # ---- Decoder ----
    d = matmul_bias_act(z, params["fc_z_w"], params["fc_z_b"])
    d = d.reshape(B, cfg["final_ch"], cfg["final_hw"], cfg["final_hw"])
    d = jnp.transpose(d, (0, 2, 3, 1))                  # back to NHWC
    for (w, b) in params["dec_convs"]:
        d = conv2d_nhwc(d, w, b, stride=1, pad=1, act="relu", upsample2x=True)
    r = conv2d_nhwc(d, params["out_w"], params["out_b"], stride=1, pad=1,
                    act="sigmoid")
    recon_x = jnp.transpose(r, (0, 3, 1, 2))            # NHWC -> NCHW (once)
    return recon_x, mu, logvar


# ----------------------------------------------------------------------------
if __name__ == "__main__":
    B, IN_CH, IN_HW, NLAYERS, NZ = 2, 4, 16, 2, 32

    key = jax.random.PRNGKey(0)
    k_param, k_x, k_eps = jax.random.split(key, 3)

    params, cfg = init_vae_params(k_param, IN_CH, IN_HW, NLAYERS, NZ)
    x = jax.random.normal(k_x, (B, IN_CH, IN_HW, IN_HW), dtype=jnp.float32)
    eps = jax.random.normal(k_eps, (B, NZ), dtype=jnp.float32)  # torch.randn analogue

    recon_x, mu, logvar = jax.jit(
        lambda p, xx, ee: vae_forward(p, cfg, xx, ee)
    )(params, x, eps)
    jax.block_until_ready((recon_x, mu, logvar))

    assert recon_x.shape == (B, IN_CH, IN_HW, IN_HW)
    assert mu.shape == (B, NZ) and logvar.shape == (B, NZ)
    assert bool(jnp.all(jnp.isfinite(recon_x)))
    assert bool(jnp.all(recon_x >= 0.0)) and bool(jnp.all(recon_x <= 1.0))
    print("KERNEL_OK")
</pallas_src>

<mosaic_0001>
module attributes {stable_mosaic.version = 11 : i64} {
  func.func @_matmul_bias_act_kernel(%arg0: i32, %arg1: i32, %arg2: i32, %arg3: memref<128x128xbf16, #tpu.memory_space<vmem>>, %arg4: memref<128x128xbf16, #tpu.memory_space<vmem>>, %arg5: memref<1x128xf32, #tpu.memory_space<vmem>>, %arg6: memref<128x128xf32, #tpu.memory_space<vmem>>, %arg7: memref<128x128xf32, #tpu.memory_space<vmem>>) attributes {dimension_semantics = [#tpu.dimension_semantics<parallel>, #tpu.dimension_semantics<parallel>, #tpu.dimension_semantics<arbitrary>], iteration_bounds = array<i64: 1, 1, 1>, scalar_prefetch = 0 : i64, scratch_operands = 1 : i64, tpu.core_type = #tpu.core_type<tc>, window_params = [{transform_indices = @transform_0, window_bounds = array<i64: 128, 128>}, {transform_indices = @transform_1, window_bounds = array<i64: 128, 128>}, {transform_indices = @transform_2, window_bounds = array<i64: 1, 128>}, {transform_indices = @transform_3, window_bounds = array<i64: 128, 128>}]} {
    %c0_i32 = arith.constant 0 : i32
    %0 = arith.cmpi eq, %arg2, %c0_i32 : i32
    %1 = arith.extui %0 : i1 to i32
    %c0_i32_0 = arith.constant 0 : i32
    %2 = arith.cmpi ne, %1, %c0_i32_0 : i32
    scf.if %2 {
      %cst_10 = arith.constant 0.000000e+00 : f32
      %12 = vector.broadcast %cst_10 : f32 to vector<128x128xf32>
      %c0_11 = arith.constant 0 : index
      %c0_12 = arith.constant 0 : index
      %13 = vector.load %arg7[%c0_11, %c0_12] : memref<128x128xf32, #tpu.memory_space<vmem>>, vector<128x128xf32>
      tpu.vector_store %arg7[%c0_11, %c0_12], %12 {strides = array<i32>} : memref<128x128xf32, #tpu.memory_space<vmem>>, vector<128x128xf32>,
    } else {
    }
    %c0 = arith.constant 0 : index
    %c0_1 = arith.constant 0 : index
    %3 = vector.load %arg7[%c0, %c0_1] : memref<128x128xf32, #tpu.memory_space<vmem>>, vector<128x128xf32>
    %c0_2 = arith.constant 0 : index
    %c0_3 = arith.constant 0 : index
    %4 = vector.load %arg3[%c0_2, %c0_3] : memref<128x128xbf16, #tpu.memory_space<vmem>>, vector<128x128xbf16>
    %c0_4 = arith.constant 0 : index
    %c0_5 = arith.constant 0 : index
    %5 = vector.load %arg4[%c0_4, %c0_5] : memref<128x128xbf16, #tpu.memory_space<vmem>>, vector<128x128xbf16>
    %cst = arith.constant dense<0.000000e+00> : vector<128x128xf32>
    %6 = tpu.matmul %4, %5, %cst {dimension_numbers = #tpu.dot_dimension_numbers<[1], [0], [0], [1], [0, 0, 1, 1], [], []>} : vector<128x128xbf16>, vector<128x128xbf16>, vector<128x128xf32> -> vector<128x128xf32>
    %7 = arith.addf %3, %6 : vector<128x128xf32>
    %c0_6 = arith.constant 0 : index
    %c0_7 = arith.constant 0 : index
    %8 = vector.load %arg7[%c0_6, %c0_7] : memref<128x128xf32, #tpu.memory_space<vmem>>, vector<128x128xf32>
    tpu.vector_store %arg7[%c0_6, %c0_7], %7 {strides = array<i32>} : memref<128x128xf32, #tpu.memory_space<vmem>>, vector<128x128xf32>,
    %c0_i32_8 = arith.constant 0 : i32
    %9 = arith.cmpi eq, %arg2, %c0_i32_8 : i32
    %10 = arith.extui %9 : i1 to i32
    %c0_i32_9 = arith.constant 0 : i32
    %11 = arith.cmpi ne, %10, %c0_i32_9 : i32
    scf.if %11 {
      %c0_10 = arith.constant 0 : index
      %c0_11 = arith.constant 0 : index
      %12 = vector.load %arg7[%c0_10, %c0_11] : memref<128x128xf32, #tpu.memory_space<vmem>>, vector<128x128xf32>
      %c0_12 = arith.constant 0 : index
      %c0_13 = arith.constant 0 : index
      %13 = vector.load %arg5[%c0_12, %c0_13] : memref<1x128xf32, #tpu.memory_space<vmem>>, vector<1x128xf32>
      %14 = vector.broadcast %13 : vector<1x128xf32> to vector<128x128xf32>
      %15 = arith.addf %12, %14 : vector<128x128xf32>
      %cst_14 = arith.constant 0.000000e+00 : f32
      %16 = vector.broadcast %cst_14 : f32 to vector<128x128xf32>
      %17 = arith.maximumf %15, %16 : vector<128x128xf32>
      %c0_15 = arith.constant 0 : index
      %c0_16 = arith.constant 0 : index
      %18 = vector.load %arg6[%c0_15, %c0_16] : memref<128x128xf32, #tpu.memory_space<vmem>>, vector<128x128xf32>
      tpu.vector_store %arg6[%c0_15, %c0_16], %17 {strides = array<i32>} : memref<128x128xf32, #tpu.memory_space<vmem>>, vector<128x128xf32>,
    } else {
    }
    return
  }
  func.func @transform_0(%arg0: i32, %arg1: i32, %arg2: i32) -> (i32, i32) {
    %c0_i32 = arith.constant 0 : i32
    return %arg0, %arg2 : i32, i32
  }
  func.func @transform_1(%arg0: i32, %arg1: i32, %arg2: i32) -> (i32, i32) {
    %c0_i32 = arith.constant 0 : i32
    return %arg2, %arg1 : i32, i32
  }
  func.func @transform_2(%arg0: i32, %arg1: i32, %arg2: i32) -> (i32, i32) {
    %c0_i32 = arith.constant 0 : i32
    %c0_i32_0 = arith.constant 0 : i32
    return %c0_i32, %arg1 : i32, i32
  }
  func.func @transform_3(%arg0: i32, %arg1: i32, %arg2: i32) -> (i32, i32) {
    %c0_i32 = arith.constant 0 : i32
    return %arg0, %arg1 : i32, i32
  }
}

module attributes {stable_mosaic.version = 11 : i64} {
  func.func @_matmul_bias_act_kernel(%arg0: i32, %arg1: i32, %arg2: i32, %arg3: memref<32x256xbf16, #tpu.memory_space<vmem>>, %arg4: memref<256x128xbf16, #tpu.memory_space<vmem>>, %arg5: memref<1x128xf32, #tpu.memory_space<vmem>>, %arg6: memref<32x128xf32, #tpu.memory_space<vmem>>, %arg7: memref<32x128xf32, #tpu.memory_space<vmem>>) attributes {dimension_semantics = [#tpu.dimension_semantics<parallel>, #tpu.dimension_semantics<parallel>, #tpu.dimension_semantics<arbitrary>], iteration_bounds = array<i64: 1, 1, 1>, scalar_prefetch = 0 : i64, scratch_operands = 1 : i64, tpu.core_type = #tpu.core_type<tc>, window_params = [{transform_indices = @transform_0, window_bounds = array<i64: 32, 256>}, {transform_indices = @transform_1, window_bounds = array<i64: 256, 128>}, {transform_indices = @transform_2, window_bounds = array<i64: 1, 128>}, {transform_indices = @transform_3, window_bounds = array<i64: 32, 128>}]} {
    %c0_i32 = arith.constant 0 : i32
    %0 = arith.cmpi eq, %arg2, %c0_i32 : i32
    %1 = arith.extui %0 : i1 to i32
    %c0_i32_0 = arith.constant 0 : i32
    %2 = arith.cmpi ne, %1, %c0_i32_0 : i32
    scf.if %2 {
      %cst_10 = arith.constant 0.000000e+00 : f32
      %12 = vector.broadcast %cst_10 : f32 to vector<32x128xf32>
      %c0_11 = arith.constant 0 : index
      %c0_12 = arith.constant 0 : index
      %13 = vector.load %arg7[%c0_11, %c0_12] : memref<32x128xf32, #tpu.memory_space<vmem>>, vector<32x128xf32>
      tpu.vector_store %arg7[%c0_11, %c0_12], %12 {strides = array<i32>} : memref<32x128xf32, #tpu.memory_space<vmem>>, vector<32x128xf32>,
    } else {
    }
    %c0 = arith.constant 0 : index
    %c0_1 = arith.constant 0 : index
    %3 = vector.load %arg7[%c0, %c0_1] : memref<32x128xf32, #tpu.memory_space<vmem>>, vector<32x128xf32>
    %c0_2 = arith.constant 0 : index
    %c0_3 = arith.constant 0 : index
    %4 = vector.load %arg3[%c0_2, %c0_3] : memref<32x256xbf16, #tpu.memory_space<vmem>>, vector<32x256xbf16>
    %c0_4 = arith.constant 0 : index
    %c0_5 = arith.constant 0 : index
    %5 = vector.load %arg4[%c0_4, %c0_5] : memref<256x128xbf16, #tpu.memory_space<vmem>>, vector<256x128xbf16>
    %cst = arith.constant dense<0.000000e+00> : vector<32x128xf32>
    %6 = tpu.matmul %4, %5, %cst {dimension_numbers = #tpu.dot_dimension_numbers<[1], [0], [0], [1], [0, 0, 1, 1], [], []>} : vector<32x256xbf16>, vector<256x128xbf16>, vector<32x128xf32> -> vector<32x128xf32>
    %7 = arith.addf %3, %6 : vector<32x128xf32>
    %c0_6 = arith.constant 0 : index
    %c0_7 = arith.constant 0 : index
    %8 = vector.load %arg7[%c0_6, %c0_7] : memref<32x128xf32, #tpu.memory_space<vmem>>, vector<32x128xf32>
    tpu.vector_store %arg7[%c0_6, %c0_7], %7 {strides = array<i32>} : memref<32x128xf32, #tpu.memory_space<vmem>>, vector<32x128xf32>,
    %c0_i32_8 = arith.constant 0 : i32
    %9 = arith.cmpi eq, %arg2, %c0_i32_8 : i32
    %10 = arith.extui %9 : i1 to i32
    %c0_i32_9 = arith.constant 0 : i32
    %11 = arith.cmpi ne, %10, %c0_i32_9 : i32
    scf.if %11 {
      %c0_10 = arith.constant 0 : index
      %c0_11 = arith.constant 0 : index
      %12 = vector.load %arg7[%c0_10, %c0_11] : memref<32x128xf32, #tpu.memory_space<vmem>>, vector<32x128xf32>
      %c0_12 = arith.constant 0 : index
      %c0_13 = arith.constant 0 : index
      %13 = vector.load %arg5[%c0_12, %c0_13] : memref<1x128xf32, #tpu.memory_space<vmem>>, vector<1x128xf32>
      %14 = vector.broadcast %13 : vector<1x128xf32> to vector<32x128xf32>
      %15 = arith.addf %12, %14 : vector<32x128xf32>
      %cst_14 = arith.constant 0.000000e+00 : f32
      %16 = vector.broadcast %cst_14 : f32 to vector<32x128xf32>
      %17 = arith.maximumf %15, %16 : vector<32x128xf32>
      %c0_15 = arith.constant 0 : index
      %c0_16 = arith.constant 0 : index
      %18 = vector.load %arg6[%c0_15, %c0_16] : memref<32x128xf32, #tpu.memory_space<vmem>>, vector<32x128xf32>
      tpu.vector_store %arg6[%c0_15, %c0_16], %17 {strides = array<i32>} : memref<32x128xf32, #tpu.memory_space<vmem>>, vector<32x128xf32>,
    } else {
    }
    return
  }
  func.func @transform_0(%arg0: i32, %arg1: i32, %arg2: i32) -> (i32, i32) {
    %c0_i32 = arith.constant 0 : i32
    return %arg0, %arg2 : i32, i32
  }
  func.func @transform_1(%arg0: i32, %arg1: i32, %arg2: i32) -> (i32, i32) {
    %c0_i32 = arith.constant 0 : i32
    return %arg2, %arg1 : i32, i32
  }
  func.func @transform_2(%arg0: i32, %arg1: i32, %arg2: i32) -> (i32, i32) {
    %c0_i32 = arith.constant 0 : i32
    %c0_i32_0 = arith.constant 0 : i32
    return %c0_i32, %arg1 : i32, i32
  }
  func.func @transform_3(%arg0: i32, %arg1: i32, %arg2: i32) -> (i32, i32) {
    %c0_i32 = arith.constant 0 : i32
    return %arg0, %arg1 : i32, i32
  }
}

module attributes {stable_mosaic.version = 11 : i64} {
  func.func @_enc_head_kernel(%arg0: i32, %arg1: memref<16x512xbf16, #tpu.memory_space<vmem>>, %arg2: memref<512x256xbf16, #tpu.memory_space<vmem>>, %arg3: memref<1x256xf32, #tpu.memory_space<vmem>>, %arg4: memref<16x128xf32, #tpu.memory_space<vmem>>, %arg5: memref<16x128xf32, #tpu.memory_space<vmem>>, %arg6: memref<16x128xf32, #tpu.memory_space<vmem>>, %arg7: memref<16x128xf32, #tpu.memory_space<vmem>>, %arg8: memref<16x256xf32, #tpu.memory_space<vmem>>) attributes {dimension_semantics = [#tpu.dimension_semantics<arbitrary>], iteration_bounds = array<i64: 2>, scalar_prefetch = 0 : i64, scratch_operands = 1 : i64, tpu.core_type = #tpu.core_type<tc>, window_params = [{transform_indices = @transform_0, window_bounds = array<i64: 16, 512>}, {transform_indices = @transform_1, window_bounds = array<i64: 512, 256>}, {pipeline_mode = #tpu.pipeline_mode<synchronous>, transform_indices = @transform_2, window_bounds = array<i64: 1, 256>}, {pipeline_mode = #tpu.pipeline_mode<synchronous>, transform_indices = @transform_3, window_bounds = array<i64: 16, 128>}, {pipeline_mode = #tpu.pipeline_mode<synchronous>, transform_indices = @transform_4, window_bounds = array<i64: 16, 128>}, {pipeline_mode = #tpu.pipeline_mode<synchronous>, transform_indices = @transform_5, window_bounds = array<i64: 16, 128>}, {pipeline_mode = #tpu.pipeline_mode<synchronous>, transform_indices = @transform_6, window_bounds = array<i64: 16, 128>}]} {
    %c0_i32 = arith.constant 0 : i32
    %0 = arith.cmpi eq, %arg0, %c0_i32 : i32
    %1 = arith.extui %0 : i1 to i32
    %c0_i32_0 = arith.constant 0 : i32
    %2 = arith.cmpi ne, %1, %c0_i32_0 : i32
    scf.if %2 {
      %cst_9 = arith.constant 0.000000e+00 : f32
      %12 = vector.broadcast %cst_9 : f32 to vector<16x256xf32>
      %c0_10 = arith.constant 0 : index
      %c0_11 = arith.constant 0 : index
      %13 = vector.load %arg8[%c0_10, %c0_11] : memref<16x256xf32, #tpu.memory_space<vmem>>, vector<16x256xf32>
      tpu.vector_store %arg8[%c0_10, %c0_11], %12 {strides = array<i32>} : memref<16x256xf32, #tpu.memory_space<vmem>>, vector<16x256xf32>,
    } else {
    }
    %c0 = arith.constant 0 : index
    %c0_1 = arith.constant 0 : index
    %3 = vector.load %arg8[%c0, %c0_1] : memref<16x256xf32, #tpu.memory_space<vmem>>, vector<16x256xf32>
    %c0_2 = arith.constant 0 : index
    %c0_3 = arith.constant 0 : index
    %4 = vector.load %arg1[%c0_2, %c0_3] : memref<16x512xbf16, #tpu.memory_space<vmem>>, vector<16x512xbf16>
    %c0_4 = arith.constant 0 : index
    %c0_5 = arith.constant 0 : index
    %5 = vector.load %arg2[%c0_4, %c0_5] : memref<512x256xbf16, #tpu.memory_space<vmem>>, vector<512x256xbf16>
    %cst = arith.constant dense<0.000000e+00> : vector<16x256xf32>
    %6 = tpu.matmul %4, %5, %cst {dimension_numbers = #tpu.dot_dimension_numbers<[1], [0], [0], [1], [0, 0, 1, 1], [], []>} : vector<16x512xbf16>, vector<512x256xbf16>, vector<16x256xf32> -> vector<16x256xf32>
    %7 = arith.addf %3, %6 : vector<16x256xf32>
    %c0_6 = arith.constant 0 : index
    %c0_7 = arith.constant 0 : index
    %8 = vector.load %arg8[%c0_6, %c0_7] : memref<16x256xf32, #tpu.memory_space<vmem>>, vector<16x256xf32>
    tpu.vector_store %arg8[%c0_6, %c0_7], %7 {strides = array<i32>} : memref<16x256xf32, #tpu.memory_space<vmem>>, vector<16x256xf32>,
    %c1_i32 = arith.constant 1 : i32
    %9 = arith.cmpi eq, %arg0, %c1_i32 : i32
    %10 = arith.extui %9 : i1 to i32
    %c0_i32_8 = arith.constant 0 : i32
    %11 = arith.cmpi ne, %10, %c0_i32_8 : i32
    scf.if %11 {
      %c0_9 = arith.constant 0 : index
      %c0_10 = arith.constant 0 : index
      %12 = vector.load %arg8[%c0_9, %c0_10] : memref<16x256xf32, #tpu.memory_space<vmem>>, vector<16x256xf32>
      %c0_11 = arith.constant 0 : index
      %c0_12 = arith.constant 0 : index
      %13 = vector.load %arg3[%c0_11, %c0_12] : memref<1x256xf32, #tpu.memory_space<vmem>>, vector<1x256xf32>
      %14 = vector.broadcast %13 : vector<1x256xf32> to vector<16x256xf32>
      %15 = arith.addf %12, %14 : vector<16x256xf32>
      %16 = vector.extract_strided_slice %15 {offsets = [0, 0], sizes = [16, 128], strides = [1, 1]} : vector<16x256xf32> to vector<16x128xf32>
      %17 = vector.extract_strided_slice %15 {offsets = [0, 128], sizes = [16, 128], strides = [1, 1]} : vector<16x256xf32> to vector<16x128xf32>
      %c0_13 = arith.constant 0 : index
      %c0_14 = arith.constant 0 : index
      %18 = vector.load %arg5[%c0_13, %c0_14] : memref<16x128xf32, #tpu.memory_space<vmem>>, vector<16x128xf32>
      tpu.vector_store %arg5[%c0_13, %c0_14], %16 {strides = array<i32>} : memref<16x128xf32, #tpu.memory_space<vmem>>, vector<16x128xf32>,
      %c0_15 = arith.constant 0 : index
      %c0_16 = arith.constant 0 : index
      %19 = vector.load %arg6[%c0_15, %c0_16] : memref<16x128xf32, #tpu.memory_space<vmem>>, vector<16x128xf32>
      tpu.vector_store %arg6[%c0_15, %c0_16], %17 {strides = array<i32>} : memref<16x128xf32, #tpu.memory_space<vmem>>, vector<16x128xf32>,
      %c0_17 = arith.constant 0 : index
      %c0_18 = arith.constant 0 : index
      %20 = vector.load %arg4[%c0_17, %c0_18] : memref<16x128xf32, #tpu.memory_space<vmem>>, vector<16x128xf32>
      %cst_19 = arith.constant 5.000000e-01 : f32
      %21 = vector.broadcast %cst_19 : f32 to vector<16x128xf32>
      %22 = arith.mulf %17, %21 : vector<16x128xf32>
      %23 = math.exp %22 : vector<16x128xf32>
      %24 = arith.mulf %20, %23 : vector<16x128xf32>
      %25 = arith.addf %16, %24 : vector<16x128xf32>
      %c0_20 = arith.constant 0 : index
      %c0_21 = arith.constant 0 : index
      %26 = vector.load %arg7[%c0_20, %c0_21] : memref<16x128xf32, #tpu.memory_space<vmem>>, vector<16x128xf32>
      tpu.vector_store %arg7[%c0_20, %c0_21], %25 {strides = array<i32>} : memref<16x128xf32, #tpu.memory_space<vmem>>, vector<16x128xf32>,
    } else {
    }
    return
  }
  func.func @transform_0(%arg0: i32) -> (i32, i32) {
    %c0_i32 = arith.constant 0 : i32
    %c0_i32_0 = arith.constant 0 : i32
    return %c0_i32, %arg0 : i32, i32
  }
  func.func @transform_1(%arg0: i32) -> (i32, i32) {
    %c0_i32 = arith.constant 0 : i32
    %c0_i32_0 = arith.constant 0 : i32
    return %arg0, %c0_i32 : i32, i32
  }
  func.func @transform_2(%arg0: i32) -> (i32, i32) {
    %c0_i32 = arith.constant 0 : i32
    %c0_i32_0 = arith.constant 0 : i32
    %c0_i32_1 = arith.constant 0 : i32
    return %c0_i32, %c0_i32_0 : i32, i32
  }
  func.func @transform_3(%arg0: i32) -> (i32, i32) {
    %c0_i32 = arith.constant 0 : i32
    %c0_i32_0 = arith.constant 0 : i32
    %c0_i32_1 = arith.constant 0 : i32
    return %c0_i32, %c0_i32_0 : i32, i32
  }
  func.func @transform_4(%arg0: i32) -> (i32, i32) {
    %c0_i32 = arith.constant 0 : i32
    %c0_i32_0 = arith.constant 0 : i32
    %c0_i32_1 = arith.constant 0 : i32
    return %c0_i32, %c0_i32_0 : i32, i32
  }
  func.func @transform_5(%arg0: i32) -> (i32, i32) {
    %c0_i32 = arith.constant 0 : i32
    %c0_i32_0 = arith.constant 0 : i32
    %c0_i32_1 = arith.constant 0 : i32
    return %c0_i32, %c0_i32_0 : i32, i32
  }
  func.func @transform_6(%arg0: i32) -> (i32, i32) {
    %c0_i32 = arith.constant 0 : i32
    %c0_i32_0 = arith.constant 0 : i32
    %c0_i32_1 = arith.constant 0 : i32
    return %c0_i32, %c0_i32_0 : i32, i32
  }
}

module attributes {stable_mosaic.version = 11 : i64} {
  func.func @_matmul_bias_act_kernel(%arg0: i32, %arg1: i32, %arg2: i32, %arg3: memref<16x128xbf16, #tpu.memory_space<vmem>>, %arg4: memref<128x256xbf16, #tpu.memory_space<vmem>>, %arg5: memref<1x256xf32, #tpu.memory_space<vmem>>, %arg6: memref<16x256xf32, #tpu.memory_space<vmem>>, %arg7: memref<16x256xf32, #tpu.memory_space<vmem>>) attributes {dimension_semantics = [#tpu.dimension_semantics<parallel>, #tpu.dimension_semantics<parallel>, #tpu.dimension_semantics<arbitrary>], iteration_bounds = array<i64: 1, 4, 1>, scalar_prefetch = 0 : i64, scratch_operands = 1 : i64, tpu.core_type = #tpu.core_type<tc>, window_params = [{transform_indices = @transform_0, window_bounds = array<i64: 16, 128>}, {transform_indices = @transform_1, window_bounds = array<i64: 128, 256>}, {transform_indices = @transform_2, window_bounds = array<i64: 1, 256>}, {transform_indices = @transform_3, window_bounds = array<i64: 16, 256>}]} {
    %c0_i32 = arith.constant 0 : i32
    %0 = arith.cmpi eq, %arg2, %c0_i32 : i32
    %1 = arith.extui %0 : i1 to i32
    %c0_i32_0 = arith.constant 0 : i32
    %2 = arith.cmpi ne, %1, %c0_i32_0 : i32
    scf.if %2 {
      %cst_10 = arith.constant 0.000000e+00 : f32
      %12 = vector.broadcast %cst_10 : f32 to vector<16x256xf32>
      %c0_11 = arith.constant 0 : index
      %c0_12 = arith.constant 0 : index
      %13 = vector.load %arg7[%c0_11, %c0_12] : memref<16x256xf32, #tpu.memory_space<vmem>>, vector<16x256xf32>
      tpu.vector_store %arg7[%c0_11, %c0_12], %12 {strides = array<i32>} : memref<16x256xf32, #tpu.memory_space<vmem>>, vector<16x256xf32>,
    } else {
    }
    %c0 = arith.constant 0 : index
    %c0_1 = arith.constant 0 : index
    %3 = vector.load %arg7[%c0, %c0_1] : memref<16x256xf32, #tpu.memory_space<vmem>>, vector<16x256xf32>
    %c0_2 = arith.constant 0 : index
    %c0_3 = arith.constant 0 : index
    %4 = vector.load %arg3[%c0_2, %c0_3] : memref<16x128xbf16, #tpu.memory_space<vmem>>, vector<16x128xbf16>
    %c0_4 = arith.constant 0 : index
    %c0_5 = arith.constant 0 : index
    %5 = vector.load %arg4[%c0_4, %c0_5] : memref<128x256xbf16, #tpu.memory_space<vmem>>, vector<128x256xbf16>
    %cst = arith.constant dense<0.000000e+00> : vector<16x256xf32>
    %6 = tpu.matmul %4, %5, %cst {dimension_numbers = #tpu.dot_dimension_numbers<[1], [0], [0], [1], [0, 0, 1, 1], [], []>} : vector<16x128xbf16>, vector<128x256xbf16>, vector<16x256xf32> -> vector<16x256xf32>
    %7 = arith.addf %3, %6 : vector<16x256xf32>
    %c0_6 = arith.constant 0 : index
    %c0_7 = arith.constant 0 : index
    %8 = vector.load %arg7[%c0_6, %c0_7] : memref<16x256xf32, #tpu.memory_space<vmem>>, vector<16x256xf32>
    tpu.vector_store %arg7[%c0_6, %c0_7], %7 {strides = array<i32>} : memref<16x256xf32, #tpu.memory_space<vmem>>, vector<16x256xf32>,
    %c0_i32_8 = arith.constant 0 : i32
    %9 = arith.cmpi eq, %arg2, %c0_i32_8 : i32
    %10 = arith.extui %9 : i1 to i32
    %c0_i32_9 = arith.constant 0 : i32
    %11 = arith.cmpi ne, %10, %c0_i32_9 : i32
    scf.if %11 {
      %c0_10 = arith.constant 0 : index
      %c0_11 = arith.constant 0 : index
      %12 = vector.load %arg7[%c0_10, %c0_11] : memref<16x256xf32, #tpu.memory_space<vmem>>, vector<16x256xf32>
      %c0_12 = arith.constant 0 : index
      %c0_13 = arith.constant 0 : index
      %13 = vector.load %arg5[%c0_12, %c0_13] : memref<1x256xf32, #tpu.memory_space<vmem>>, vector<1x256xf32>
      %14 = vector.broadcast %13 : vector<1x256xf32> to vector<16x256xf32>
      %15 = arith.addf %12, %14 : vector<16x256xf32>
      %c0_14 = arith.constant 0 : index
      %c0_15 = arith.constant 0 : index
      %16 = vector.load %arg6[%c0_14, %c0_15] : memref<16x256xf32, #tpu.memory_space<vmem>>, vector<16x256xf32>
      tpu.vector_store %arg6[%c0_14, %c0_15], %15 {strides = array<i32>} : memref<16x256xf32, #tpu.memory_space<vmem>>, vector<16x256xf32>,
    } else {
    }
    return
  }
  func.func @transform_0(%arg0: i32, %arg1: i32, %arg2: i32) -> (i32, i32) {
    %c0_i32 = arith.constant 0 : i32
    return %arg0, %arg2 : i32, i32
  }
  func.func @transform_1(%arg0: i32, %arg1: i32, %arg2: i32) -> (i32, i32) {
    %c0_i32 = arith.constant 0 : i32
    return %arg2, %arg1 : i32, i32
  }
  func.func @transform_2(%arg0: i32, %arg1: i32, %arg2: i32) -> (i32, i32) {
    %c0_i32 = arith.constant 0 : i32
    %c0_i32_0 = arith.constant 0 : i32
    return %c0_i32, %arg1 : i32, i32
  }
  func.func @transform_3(%arg0: i32, %arg1: i32, %arg2: i32) -> (i32, i32) {
    %c0_i32 = arith.constant 0 : i32
    return %arg0, %arg1 : i32, i32
  }
}

module attributes {stable_mosaic.version = 11 : i64} {
  func.func @_matmul_bias_act_kernel(%arg0: i32, %arg1: i32, %arg2: i32, %arg3: memref<128x128xbf16, #tpu.memory_space<vmem>>, %arg4: memref<128x128xbf16, #tpu.memory_space<vmem>>, %arg5: memref<1x128xf32, #tpu.memory_space<vmem>>, %arg6: memref<128x128xf32, #tpu.memory_space<vmem>>, %arg7: memref<128x128xf32, #tpu.memory_space<vmem>>) attributes {dimension_semantics = [#tpu.dimension_semantics<parallel>, #tpu.dimension_semantics<parallel>, #tpu.dimension_semantics<arbitrary>], iteration_bounds = array<i64: 1, 1, 5>, scalar_prefetch = 0 : i64, scratch_operands = 1 : i64, tpu.core_type = #tpu.core_type<tc>, window_params = [{transform_indices = @transform_0, window_bounds = array<i64: 128, 128>}, {transform_indices = @transform_1, window_bounds = array<i64: 128, 128>}, {transform_indices = @transform_2, window_bounds = array<i64: 1, 128>}, {transform_indices = @transform_3, window_bounds = array<i64: 128, 128>}]} {
    %c0_i32 = arith.constant 0 : i32
    %0 = arith.cmpi eq, %arg2, %c0_i32 : i32
    %1 = arith.extui %0 : i1 to i32
    %c0_i32_0 = arith.constant 0 : i32
    %2 = arith.cmpi ne, %1, %c0_i32_0 : i32
    scf.if %2 {
      %cst_9 = arith.constant 0.000000e+00 : f32
      %12 = vector.broadcast %cst_9 : f32 to vector<128x128xf32>
      %c0_10 = arith.constant 0 : index
      %c0_11 = arith.constant 0 : index
      %13 = vector.load %arg7[%c0_10, %c0_11] : memref<128x128xf32, #tpu.memory_space<vmem>>, vector<128x128xf32>
      tpu.vector_store %arg7[%c0_10, %c0_11], %12 {strides = array<i32>} : memref<128x128xf32, #tpu.memory_space<vmem>>, vector<128x128xf32>,
    } else {
    }
    %c0 = arith.constant 0 : index
    %c0_1 = arith.constant 0 : index
    %3 = vector.load %arg7[%c0, %c0_1] : memref<128x128xf32, #tpu.memory_space<vmem>>, vector<128x128xf32>
    %c0_2 = arith.constant 0 : index
    %c0_3 = arith.constant 0 : index
    %4 = vector.load %arg3[%c0_2, %c0_3] : memref<128x128xbf16, #tpu.memory_space<vmem>>, vector<128x128xbf16>
    %c0_4 = arith.constant 0 : index
    %c0_5 = arith.constant 0 : index
    %5 = vector.load %arg4[%c0_4, %c0_5] : memref<128x128xbf16, #tpu.memory_space<vmem>>, vector<128x128xbf16>
    %cst = arith.constant dense<0.000000e+00> : vector<128x128xf32>
    %6 = tpu.matmul %4, %5, %cst {dimension_numbers = #tpu.dot_dimension_numbers<[1], [0], [0], [1], [0, 0, 1, 1], [], []>} : vector<128x128xbf16>, vector<128x128xbf16>, vector<128x128xf32> -> vector<128x128xf32>
    %7 = arith.addf %3, %6 : vector<128x128xf32>
    %c0_6 = arith.constant 0 : index
    %c0_7 = arith.constant 0 : index
    %8 = vector.load %arg7[%c0_6, %c0_7] : memref<128x128xf32, #tpu.memory_space<vmem>>, vector<128x128xf32>
    tpu.vector_store %arg7[%c0_6, %c0_7], %7 {strides = array<i32>} : memref<128x128xf32, #tpu.memory_space<vmem>>, vector<128x128xf32>,
    %c4_i32 = arith.constant 4 : i32
    %9 = arith.cmpi eq, %arg2, %c4_i32 : i32
    %10 = arith.extui %9 : i1 to i32
    %c0_i32_8 = arith.constant 0 : i32
    %11 = arith.cmpi ne, %10, %c0_i32_8 : i32
    scf.if %11 {
      %c0_9 = arith.constant 0 : index
      %c0_10 = arith.constant 0 : index
      %12 = vector.load %arg7[%c0_9, %c0_10] : memref<128x128xf32, #tpu.memory_space<vmem>>, vector<128x128xf32>
      %c0_11 = arith.constant 0 : index
      %c0_12 = arith.constant 0 : index
      %13 = vector.load %arg5[%c0_11, %c0_12] : memref<1x128xf32, #tpu.memory_space<vmem>>, vector<1x128xf32>
      %14 = vector.broadcast %13 : vector<1x128xf32> to vector<128x128xf32>
      %15 = arith.addf %12, %14 : vector<128x128xf32>
      %cst_13 = arith.constant 0.000000e+00 : f32
      %16 = vector.broadcast %cst_13 : f32 to vector<128x128xf32>
      %17 = arith.maximumf %15, %16 : vector<128x128xf32>
      %c0_14 = arith.constant 0 : index
      %c0_15 = arith.constant 0 : index
      %18 = vector.load %arg6[%c0_14, %c0_15] : memref<128x128xf32, #tpu.memory_space<vmem>>, vector<128x128xf32>
      tpu.vector_store %arg6[%c0_14, %c0_15], %17 {strides = array<i32>} : memref<128x128xf32, #tpu.memory_space<vmem>>, vector<128x128xf32>,
    } else {
    }
    return
  }
  func.func @transform_0(%arg0: i32, %arg1: i32, %arg2: i32) -> (i32, i32) {
    %c0_i32 = arith.constant 0 : i32
    return %arg0, %arg2 : i32, i32
  }
  func.func @transform_1(%arg0: i32, %arg1: i32, %arg2: i32) -> (i32, i32) {
    %c0_i32 = arith.constant 0 : i32
    return %arg2, %arg1 : i32, i32
  }
  func.func @transform_2(%arg0: i32, %arg1: i32, %arg2: i32) -> (i32, i32) {
    %c0_i32 = arith.constant 0 : i32
    %c0_i32_0 = arith.constant 0 : i32
    return %c0_i32, %arg1 : i32, i32
  }
  func.func @transform_3(%arg0: i32, %arg1: i32, %arg2: i32) -> (i32, i32) {
    %c0_i32 = arith.constant 0 : i32
    return %arg0, %arg1 : i32, i32
  }
}

module attributes {stable_mosaic.version = 11 : i64} {
  func.func @_matmul_bias_act_kernel(%arg0: i32, %arg1: i32, %arg2: i32, %arg3: memref<256x256xbf16, #tpu.memory_space<vmem>>, %arg4: memref<256x128xbf16, #tpu.memory_space<vmem>>, %arg5: memref<1x128xf32, #tpu.memory_space<vmem>>, %arg6: memref<256x128xf32, #tpu.memory_space<vmem>>, %arg7: memref<256x128xf32, #tpu.memory_space<vmem>>) attributes {dimension_semantics = [#tpu.dimension_semantics<parallel>, #tpu.dimension_semantics<parallel>, #tpu.dimension_semantics<arbitrary>], iteration_bounds = array<i64: 2, 1, 1>, scalar_prefetch = 0 : i64, scratch_operands = 1 : i64, tpu.core_type = #tpu.core_type<tc>, window_params = [{transform_indices = @transform_0, window_bounds = array<i64: 256, 256>}, {transform_indices = @transform_1, window_bounds = array<i64: 256, 128>}, {transform_indices = @transform_2, window_bounds = array<i64: 1, 128>}, {transform_indices = @transform_3, window_bounds = array<i64: 256, 128>}]} {
    %c0_i32 = arith.constant 0 : i32
    %0 = arith.cmpi eq, %arg2, %c0_i32 : i32
    %1 = arith.extui %0 : i1 to i32
    %c0_i32_0 = arith.constant 0 : i32
    %2 = arith.cmpi ne, %1, %c0_i32_0 : i32
    scf.if %2 {
      %cst_10 = arith.constant 0.000000e+00 : f32
      %12 = vector.broadcast %cst_10 : f32 to vector<256x128xf32>
      %c0_11 = arith.constant 0 : index
      %c0_12 = arith.constant 0 : index
      %13 = vector.load %arg7[%c0_11, %c0_12] : memref<256x128xf32, #tpu.memory_space<vmem>>, vector<256x128xf32>
      tpu.vector_store %arg7[%c0_11, %c0_12], %12 {strides = array<i32>} : memref<256x128xf32, #tpu.memory_space<vmem>>, vector<256x128xf32>,
    } else {
    }
    %c0 = arith.constant 0 : index
    %c0_1 = arith.constant 0 : index
    %3 = vector.load %arg7[%c0, %c0_1] : memref<256x128xf32, #tpu.memory_space<vmem>>, vector<256x128xf32>
    %c0_2 = arith.constant 0 : index
    %c0_3 = arith.constant 0 : index
    %4 = vector.load %arg3[%c0_2, %c0_3] : memref<256x256xbf16, #tpu.memory_space<vmem>>, vector<256x256xbf16>
    %c0_4 = arith.constant 0 : index
    %c0_5 = arith.constant 0 : index
    %5 = vector.load %arg4[%c0_4, %c0_5] : memref<256x128xbf16, #tpu.memory_space<vmem>>, vector<256x128xbf16>
    %cst = arith.constant dense<0.000000e+00> : vector<256x128xf32>
    %6 = tpu.matmul %4, %5, %cst {dimension_numbers = #tpu.dot_dimension_numbers<[1], [0], [0], [1], [0, 0, 1, 1], [], []>} : vector<256x256xbf16>, vector<256x128xbf16>, vector<256x128xf32> -> vector<256x128xf32>
    %7 = arith.addf %3, %6 : vector<256x128xf32>
    %c0_6 = arith.constant 0 : index
    %c0_7 = arith.constant 0 : index
    %8 = vector.load %arg7[%c0_6, %c0_7] : memref<256x128xf32, #tpu.memory_space<vmem>>, vector<256x128xf32>
    tpu.vector_store %arg7[%c0_6, %c0_7], %7 {strides = array<i32>} : memref<256x128xf32, #tpu.memory_space<vmem>>, vector<256x128xf32>,
    %c0_i32_8 = arith.constant 0 : i32
    %9 = arith.cmpi eq, %arg2, %c0_i32_8 : i32
    %10 = arith.extui %9 : i1 to i32
    %c0_i32_9 = arith.constant 0 : i32
    %11 = arith.cmpi ne, %10, %c0_i32_9 : i32
    scf.if %11 {
      %c0_10 = arith.constant 0 : index
      %c0_11 = arith.constant 0 : index
      %12 = vector.load %arg7[%c0_10, %c0_11] : memref<256x128xf32, #tpu.memory_space<vmem>>, vector<256x128xf32>
      %c0_12 = arith.constant 0 : index
      %c0_13 = arith.constant 0 : index
      %13 = vector.load %arg5[%c0_12, %c0_13] : memref<1x128xf32, #tpu.memory_space<vmem>>, vector<1x128xf32>
      %14 = vector.broadcast %13 : vector<1x128xf32> to vector<256x128xf32>
      %15 = arith.addf %12, %14 : vector<256x128xf32>
      %cst_14 = arith.constant 0.000000e+00 : f32
      %16 = vector.broadcast %cst_14 : f32 to vector<256x128xf32>
      %17 = arith.maximumf %15, %16 : vector<256x128xf32>
      %c0_15 = arith.constant 0 : index
      %c0_16 = arith.constant 0 : index
      %18 = vector.load %arg6[%c0_15, %c0_16] : memref<256x128xf32, #tpu.memory_space<vmem>>, vector<256x128xf32>
      tpu.vector_store %arg6[%c0_15, %c0_16], %17 {strides = array<i32>} : memref<256x128xf32, #tpu.memory_space<vmem>>, vector<256x128xf32>,
    } else {
    }
    return
  }
  func.func @transform_0(%arg0: i32, %arg1: i32, %arg2: i32) -> (i32, i32) {
    %c0_i32 = arith.constant 0 : i32
    return %arg0, %arg2 : i32, i32
  }
  func.func @transform_1(%arg0: i32, %arg1: i32, %arg2: i32) -> (i32, i32) {
    %c0_i32 = arith.constant 0 : i32
    return %arg2, %arg1 : i32, i32
  }
  func.func @transform_2(%arg0: i32, %arg1: i32, %arg2: i32) -> (i32, i32) {
    %c0_i32 = arith.constant 0 : i32
    %c0_i32_0 = arith.constant 0 : i32
    return %c0_i32, %arg1 : i32, i32
  }
  func.func @transform_3(%arg0: i32, %arg1: i32, %arg2: i32) -> (i32, i32) {
    %c0_i32 = arith.constant 0 : i32
    return %arg0, %arg1 : i32, i32
  }
}

module attributes {stable_mosaic.version = 11 : i64} {
  func.func @_matmul_bias_act_kernel(%arg0: i32, %arg1: i32, %arg2: i32, %arg3: memref<256x128xbf16, #tpu.memory_space<vmem>>, %arg4: memref<128x128xbf16, #tpu.memory_space<vmem>>, %arg5: memref<1x128xf32, #tpu.memory_space<vmem>>, %arg6: memref<256x128xf32, #tpu.memory_space<vmem>>, %arg7: memref<256x128xf32, #tpu.memory_space<vmem>>) attributes {dimension_semantics = [#tpu.dimension_semantics<parallel>, #tpu.dimension_semantics<parallel>, #tpu.dimension_semantics<arbitrary>], iteration_bounds = array<i64: 2, 1, 1>, scalar_prefetch = 0 : i64, scratch_operands = 1 : i64, tpu.core_type = #tpu.core_type<tc>, window_params = [{transform_indices = @transform_0, window_bounds = array<i64: 256, 128>}, {transform_indices = @transform_1, window_bounds = array<i64: 128, 128>}, {transform_indices = @transform_2, window_bounds = array<i64: 1, 128>}, {transform_indices = @transform_3, window_bounds = array<i64: 256, 128>}]} {
    %c0_i32 = arith.constant 0 : i32
    %0 = arith.cmpi eq, %arg2, %c0_i32 : i32
    %1 = arith.extui %0 : i1 to i32
    %c0_i32_0 = arith.constant 0 : i32
    %2 = arith.cmpi ne, %1, %c0_i32_0 : i32
    scf.if %2 {
      %cst_10 = arith.constant 0.000000e+00 : f32
      %12 = vector.broadcast %cst_10 : f32 to vector<256x128xf32>
      %c0_11 = arith.constant 0 : index
      %c0_12 = arith.constant 0 : index
      %13 = vector.load %arg7[%c0_11, %c0_12] : memref<256x128xf32, #tpu.memory_space<vmem>>, vector<256x128xf32>
      tpu.vector_store %arg7[%c0_11, %c0_12], %12 {strides = array<i32>} : memref<256x128xf32, #tpu.memory_space<vmem>>, vector<256x128xf32>,
    } else {
    }
    %c0 = arith.constant 0 : index
    %c0_1 = arith.constant 0 : index
    %3 = vector.load %arg7[%c0, %c0_1] : memref<256x128xf32, #tpu.memory_space<vmem>>, vector<256x128xf32>
    %c0_2 = arith.constant 0 : index
    %c0_3 = arith.constant 0 : index
    %4 = vector.load %arg3[%c0_2, %c0_3] : memref<256x128xbf16, #tpu.memory_space<vmem>>, vector<256x128xbf16>
    %c0_4 = arith.constant 0 : index
    %c0_5 = arith.constant 0 : index
    %5 = vector.load %arg4[%c0_4, %c0_5] : memref<128x128xbf16, #tpu.memory_space<vmem>>, vector<128x128xbf16>
    %cst = arith.constant dense<0.000000e+00> : vector<256x128xf32>
    %6 = tpu.matmul %4, %5, %cst {dimension_numbers = #tpu.dot_dimension_numbers<[1], [0], [0], [1], [0, 0, 1, 1], [], []>} : vector<256x128xbf16>, vector<128x128xbf16>, vector<256x128xf32> -> vector<256x128xf32>
    %7 = arith.addf %3, %6 : vector<256x128xf32>
    %c0_6 = arith.constant 0 : index
    %c0_7 = arith.constant 0 : index
    %8 = vector.load %arg7[%c0_6, %c0_7] : memref<256x128xf32, #tpu.memory_space<vmem>>, vector<256x128xf32>
    tpu.vector_store %arg7[%c0_6, %c0_7], %7 {strides = array<i32>} : memref<256x128xf32, #tpu.memory_space<vmem>>, vector<256x128xf32>,
    %c0_i32_8 = arith.constant 0 : i32
    %9 = arith.cmpi eq, %arg2, %c0_i32_8 : i32
    %10 = arith.extui %9 : i1 to i32
    %c0_i32_9 = arith.constant 0 : i32
    %11 = arith.cmpi ne, %10, %c0_i32_9 : i32
    scf.if %11 {
      %c0_10 = arith.constant 0 : index
      %c0_11 = arith.constant 0 : index
      %12 = vector.load %arg7[%c0_10, %c0_11] : memref<256x128xf32, #tpu.memory_space<vmem>>, vector<256x128xf32>
      %c0_12 = arith.constant 0 : index
      %c0_13 = arith.constant 0 : index
      %13 = vector.load %arg5[%c0_12, %c0_13] : memref<1x128xf32, #tpu.memory_space<vmem>>, vector<1x128xf32>
      %14 = vector.broadcast %13 : vector<1x128xf32> to vector<256x128xf32>
      %15 = arith.addf %12, %14 : vector<256x128xf32>
      %cst_14 = arith.constant 0.000000e+00 : f32
      %16 = vector.broadcast %cst_14 : f32 to vector<256x128xf32>
      %17 = arith.subf %16, %15 : vector<256x128xf32>
      %18 = math.exp %17 : vector<256x128xf32>
      %cst_15 = arith.constant 1.000000e+00 : f32
      %19 = vector.broadcast %cst_15 : f32 to vector<256x128xf32>
      %20 = arith.addf %19, %18 : vector<256x128xf32>
      %cst_16 = arith.constant 1.000000e+00 : f32
      %21 = vector.broadcast %cst_16 : f32 to vector<256x128xf32>
      %22 = arith.divf %21, %20 : vector<256x128xf32>
      %c0_17 = arith.constant 0 : index
      %c0_18 = arith.constant 0 : index
      %23 = vector.load %arg6[%c0_17, %c0_18] : memref<256x128xf32, #tpu.memory_space<vmem>>, vector<256x128xf32>
      tpu.vector_store %arg6[%c0_17, %c0_18], %22 {strides = array<i32>} : memref<256x128xf32, #tpu.memory_space<vmem>>, vector<256x128xf32>,
    } else {
    }
    return
  }
  func.func @transform_0(%arg0: i32, %arg1: i32, %arg2: i32) -> (i32, i32) {
    %c0_i32 = arith.constant 0 : i32
    return %arg0, %arg2 : i32, i32
  }
  func.func @transform_1(%arg0: i32, %arg1: i32, %arg2: i32) -> (i32, i32) {
    %c0_i32 = arith.constant 0 : i32
    return %arg2, %arg1 : i32, i32
  }
  func.func @transform_2(%arg0: i32, %arg1: i32, %arg2: i32) -> (i32, i32) {
    %c0_i32 = arith.constant 0 : i32
    %c0_i32_0 = arith.constant 0 : i32
    return %c0_i32, %arg1 : i32, i32
  }
  func.func @transform_3(%arg0: i32, %arg1: i32, %arg2: i32) -> (i32, i32) {
    %c0_i32 = arith.constant 0 : i32
    return %arg0, %arg1 : i32, i32
  }
}

</mosaic_0001>

<bundles_post_ra>
// kernel: _lambda_.7
= control target key start
LH: loop header
LB: loop body
LE: loop exit
PB: predicated region body
PF: predicated region fallthrough
CT: control target
= control target key end

     0   :  { %s558_s1 = inlined_call_operand.vmem [shape: bf16[128,128], index: 1, kind: input, shape index: {}]   ;;  %s559_s2 = inlined_call_operand.vmem [shape: f32[1,128], index: 2, kind: input, shape index: {}]   ;;  %s560_s0 = inlined_call_operand.vmem [shape: bf16[128,128], index: 0, kind: input, shape index: {}]   ;;  %s561_s3 = inlined_call_operand.vmem [shape: f32[128,128], index: 3, kind: output, shape index: {}]  }
   0x1   :  { %v413_v0 = vld [vmem:[%s558_s1 + $0x38] sm:$0xff]  ;;  %v412_v1 = vld [vmem:[%s558_s1 + $0x30] sm:$0xff]  ;;  %v411_v2 = vld [vmem:[%s558_s1 + $0x28] sm:$0xff] }
   0x2   :  { %178 = vmatpush.bf16.msra.mxu0 %v413_v0  ;;  %414 = vmatpush.bf16.msra.mxu1 %v413_v0  ;;  %v410_v3 = vld [vmem:[%s558_s1 + $0x20] sm:$0xff]  ;;  %v409_v4 = vld [vmem:[%s558_s1 + $0x18] sm:$0xff]  ;;  %v408_v5 = vld [vmem:[%s558_s1 + $0x10] sm:$0xff] }
   0x3   :  { %415 = vmatpush.bf16.msra.mxu2 %v413_v0  ;;  %416 = vmatpush.bf16.msra.mxu3 %v413_v0  ;;  %v407_v6 = vld [vmem:[%s558_s1 + $0x8] sm:$0xff]  ;;  %v406_v7 = vld [vmem:[%s558_s1] sm:$0xff]  ;;  %v400_v9 = vld [vmem:[%s560_s0 + $0x10] sm:$0xff] }
   0x4   :  { %v398_v8 = vld [vmem:[%s560_s0] sm:$0xff]  ;;  %v404_v11 = vld [vmem:[%s560_s0 + $0x30] sm:$0xff]  ;;  %v399_v12 = vld [vmem:[%s560_s0 + $0x8] sm:$0xff] }
   0x5   :  { %v402_v10 = vld [vmem:[%s560_s0 + $0x20] sm:$0xff]  ;;  %v401_v13 = vld [vmem:[%s560_s0 + $0x18] sm:$0xff]  ;;  %v403_v14 = vld [vmem:[%s560_s0 + $0x28] sm:$0xff] }
   0x6   :  { %179 = vmatpush.bf16.msra.mxu0 %v412_v1  ;;  %417 = vmatpush.bf16.msra.mxu1 %v412_v1  ;;  %v405_v15 = vld [vmem:[%s560_s0 + $0x38] sm:$0xff]  ;;  %v438_v16 = vld [vmem:[%s559_s2] ss:$0 sm:$0xff] }
   0x7   :  { %418 = vmatpush.bf16.msra.mxu2 %v412_v1  ;;  %419 = vmatpush.bf16.msra.mxu3 %v412_v1 }
   0xa   :  { %180 = vmatpush.bf16.msra.mxu0 %v411_v2  ;;  %420 = vmatpush.bf16.msra.mxu1 %v411_v2 }
   0xb   :  { %421 = vmatpush.bf16.msra.mxu2 %v411_v2  ;;  %422 = vmatpush.bf16.msra.mxu3 %v411_v2 }
   0xe   :  { %181 = vmatpush.bf16.msra.mxu0 %v410_v3  ;;  %423 = vmatpush.bf16.msra.mxu1 %v410_v3 }
   0xf   :  { %424 = vmatpush.bf16.msra.mxu2 %v410_v3  ;;  %425 = vmatpush.bf16.msra.mxu3 %v410_v3 }
  0x12   :  { %182 = vmatpush.bf16.msra.mxu0 %v409_v4  ;;  %426 = vmatpush.bf16.msra.mxu1 %v409_v4 }
  0x13   :  { %427 = vmatpush.bf16.msra.mxu2 %v409_v4  ;;  %428 = vmatpush.bf16.msra.mxu3 %v409_v4 }
  0x16   :  { %183 = vmatpush.bf16.msra.mxu0 %v408_v5  ;;  %429 = vmatpush.bf16.msra.mxu1 %v408_v5 }
  0x17   :  { %430 = vmatpush.bf16.msra.mxu2 %v408_v5  ;;  %431 = vmatpush.bf16.msra.mxu3 %v408_v5 }
  0x1a   :  { %184 = vmatpush.bf16.msra.mxu0 %v407_v6  ;;  %432 = vmatpush.bf16.msra.mxu1 %v407_v6 }
  0x1b   :  { %433 = vmatpush.bf16.msra.mxu2 %v407_v6  ;;  %434 = vmatpush.bf16.msra.mxu3 %v407_v6 }
  0x1e   :  { %185 = vmatpush.bf16.msra.mxu0 %v406_v7  ;;  %435 = vmatpush.bf16.msra.mxu1 %v406_v7 }
  0x1f   :  { %436 = vmatpush.bf16.msra.mxu2 %v406_v7  ;;  %437 = vmatpush.bf16.msra.mxu3 %v406_v7 }
  0x21   :  { %186 = vmatmul.bf16.vlgmr.msra.gmra.mxu0 %v398_v8  ;;  %196 = vmatmul.bf16.vlgmr.msra.gmra.mxu1 %v400_v9 }
  0x22   :  { %206 = vmatmul.bf16.vlgmr.msra.gmra.mxu2 %v402_v10  ;;  %216 = vmatmul.bf16.vlgmr.msra.gmra.mxu3 %v404_v11 }
  0x31   :  { %191 = vmatmul.bf16.gmra.mxu0 %v399_v12  ;;  %201 = vmatmul.bf16.gmra.mxu1 %v401_v13 }
  0x32   :  { %211 = vmatmul.bf16.gmra.mxu2 %v403_v14  ;;  %221 = vmatmul.bf16.gmra.mxu3 %v405_v15 }
  0x9e   :  { %v187_v17 = vpop.f32.mrf.mxu0  ;;  %v197_v18 = vpop.f32.mrf.mxu1 }
  0x9f   :  { %v282_v19 = vadd.f32 %v438_v16, %v187_v17  ;;  %v286_v20 = vadd.f32 %v438_v16, %v197_v18 }
  0xa1   :  { %v298_v21 = vmax.f32 %v282_v19, 0.0  ;;  %v302_v22 = vmax.f32 %v286_v20, 0.0 }
  0xa3   :  { %314 = vst [vmem:[%s561_s3] sm:$0xff] %v298_v21 }
  0xa4   :  { %318 = vst [vmem:[%s561_s3 + $0x20] sm:$0xff] %v302_v22 }
  0xa5   :  { %v207_v23 = vpop.f32.mrf.mxu2  ;;  %v217_v24 = vpop.f32.mrf.mxu3 }
  0xa6   :  { %v290_v25 = vadd.f32 %v438_v16, %v207_v23  ;;  %v294_v26 = vadd.f32 %v438_v16, %v217_v24  ;;  %v189_v27 = vpop.f32.mrf.mxu0  ;;  %v199_v28 = vpop.f32.mrf.mxu1 }
  0xa7   :  { %v283_v29 = vadd.f32 %v438_v16, %v189_v27  ;;  %v287_v30 = vadd.f32 %v438_v16, %v199_v28 }
  0xa8   :  { %v306_v31 = vmax.f32 %v290_v25, 0.0  ;;  %v310_v32 = vmax.f32 %v294_v26, 0.0 }
  0xa9   :  { %v299_v33 = vmax.f32 %v283_v29, 0.0  ;;  %v303_v34 = vmax.f32 %v287_v30, 0.0 }
  0xaa   :  { %322 = vst [vmem:[%s561_s3 + $0x40] sm:$0xff] %v306_v31 }
  0xab   :  { %326 = vst [vmem:[%s561_s3 + $0x60] sm:$0xff] %v310_v32 }
  0xac   :  { %315 = vst [vmem:[%s561_s3 + $0x8] sm:$0xff] %v299_v33 }
  0xad   :  { %319 = vst [vmem:[%s561_s3 + $0x28] sm:$0xff] %v303_v34  ;;  %v209_v35 = vpop.f32.mrf.mxu2  ;;  %v219_v36 = vpop.f32.mrf.mxu3 }
  0xae   :  { %v291_v37 = vadd.f32 %v438_v16, %v209_v35  ;;  %v295_v38 = vadd.f32 %v438_v16, %v219_v36  ;;  %v192_v39 = vpop.f32.mrf.mxu0  ;;  %v202_v40 = vpop.f32.mrf.mxu1 }
  0xaf   :  { %v284_v41 = vadd.f32 %v438_v16, %v192_v39  ;;  %v288_v42 = vadd.f32 %v438_v16, %v202_v40 }
  0xb0   :  { %v307_v43 = vmax.f32 %v291_v37, 0.0  ;;  %v311_v44 = vmax.f32 %v295_v38, 0.0 }
  0xb1   :  { %v300_v45 = vmax.f32 %v284_v41, 0.0  ;;  %v304_v46 = vmax.f32 %v288_v42, 0.0 }
  0xb2   :  { %323 = vst [vmem:[%s561_s3 + $0x48] sm:$0xff] %v307_v43 }
  0xb3   :  { %327 = vst [vmem:[%s561_s3 + $0x68] sm:$0xff] %v311_v44 }
  0xb4   :  { %316 = vst [vmem:[%s561_s3 + $0x10] sm:$0xff] %v300_v45 }
  0xb5   :  { %320 = vst [vmem:[%s561_s3 + $0x30] sm:$0xff] %v304_v46  ;;  %v212_v47 = vpop.f32.mrf.mxu2  ;;  %v222_v48 = vpop.f32.mrf.mxu3 }
  0xb6   :  { %v292_v49 = vadd.f32 %v438_v16, %v212_v47  ;;  %v296_v50 = vadd.f32 %v438_v16, %v222_v48  ;;  %v194_v51 = vpop.f32.mrf.mxu0  ;;  %v204_v52 = vpop.f32.mrf.mxu1 }
  0xb7   :  { %v285_v53 = vadd.f32 %v438_v16, %v194_v51  ;;  %v289_v54 = vadd.f32 %v438_v16, %v204_v52 }
  0xb8   :  { %v308_v55 = vmax.f32 %v292_v49, 0.0  ;;  %v312_v56 = vmax.f32 %v296_v50, 0.0 }
  0xb9   :  { %v301_v57 = vmax.f32 %v285_v53, 0.0  ;;  %v305_v58 = vmax.f32 %v289_v54, 0.0 }
  0xba   :  { %324 = vst [vmem:[%s561_s3 + $0x50] sm:$0xff] %v308_v55 }
  0xbb   :  { %328 = vst [vmem:[%s561_s3 + $0x70] sm:$0xff] %v312_v56 }
  0xbc   :  { %317 = vst [vmem:[%s561_s3 + $0x18] sm:$0xff] %v301_v57 }
  0xbd   :  { %321 = vst [vmem:[%s561_s3 + $0x38] sm:$0xff] %v305_v58  ;;  %v214_v59 = vpop.f32.mrf.mxu2  ;;  %v224_v60 = vpop.f32.mrf.mxu3 }
  0xbe   :  { %v293_v61 = vadd.f32 %v438_v16, %v214_v59  ;;  %v297_v62 = vadd.f32 %v438_v16, %v224_v60 }
  0xc0   :  { %v309_v63 = vmax.f32 %v293_v61, 0.0  ;;  %v313_v0 = vmax.f32 %v297_v62, 0.0 }
  0xc2   :  { %325 = vst [vmem:[%s561_s3 + $0x58] sm:$0xff] %v309_v63 }
  0xc3   :  { %329 = vst [vmem:[%s561_s3 + $0x78] sm:$0xff] %v313_v0 }

// kernel: _lambda_.8
= control target key start
LH: loop header
LB: loop body
LE: loop exit
PB: predicated region body
PF: predicated region fallthrough
CT: control target
= control target key end

     0   :  { %s475_s1 = inlined_call_operand.vmem [shape: bf16[256,128], index: 1, kind: input, shape index: {}]   ;;  %s476_s0 = inlined_call_operand.vmem [shape: bf16[32,256], index: 0, kind: input, shape index: {}]   ;;  %s477_s2 = inlined_call_operand.vmem [shape: f32[1,128], index: 2, kind: input, shape index: {}]   ;;  %s478_s3 = inlined_call_operand.vmem [shape: f32[32,128], index: 3, kind: output, shape index: {}]  }
   0x1   :  { %v342_v0 = vld [vmem:[%s475_s1 + $0x38] sm:$0xff]  ;;  %v341_v2 = vld [vmem:[%s475_s1 + $0x30] sm:$0xff]  ;;  %v340_v4 = vld [vmem:[%s475_s1 + $0x28] sm:$0xff] }
   0x2   :  { %v350_v1 = vld [vmem:[%s475_s1 + $0x78] sm:$0xff]  ;;  %178 = vmatpush.bf16.msra.mxu0 %v342_v0  ;;  %351 = vmatpush.bf16.msra.mxu2 %v342_v0  ;;  %v349_v3 = vld [vmem:[%s475_s1 + $0x70] sm:$0xff]  ;;  %v348_v5 = vld [vmem:[%s475_s1 + $0x68] sm:$0xff] }
   0x3   :  { %197 = vmatpush.bf16.msra.mxu1 %v350_v1  ;;  %359 = vmatpush.bf16.msra.mxu3 %v350_v1  ;;  %v339_v6 = vld [vmem:[%s475_s1 + $0x20] sm:$0xff]  ;;  %v338_v8 = vld [vmem:[%s475_s1 + $0x18] sm:$0xff]  ;;  %v337_v10 = vld [vmem:[%s475_s1 + $0x10] sm:$0xff] }
   0x4   :  { %v347_v7 = vld [vmem:[%s475_s1 + $0x60] sm:$0xff]  ;;  %v346_v9 = vld [vmem:[%s475_s1 + $0x58] sm:$0xff]  ;;  %v345_v11 = vld [vmem:[%s475_s1 + $0x50] sm:$0xff] }
   0x5   :  { %v336_v12 = vld [vmem:[%s475_s1 + $0x8] sm:$0xff]  ;;  %v335_v14 = vld [vmem:[%s475_s1] sm:$0xff]  ;;  %v261_v18 = vld [vmem:[%s476_s0 + $0x10] sm:$0xf] }
   0x6   :  { %179 = vmatpush.bf16.msra.mxu0 %v341_v2  ;;  %352 = vmatpush.bf16.msra.mxu2 %v341_v2  ;;  %v344_v13 = vld [vmem:[%s475_s1 + $0x48] sm:$0xff]  ;;  %v343_v15 = vld [vmem:[%s475_s1 + $0x40] sm:$0xff]  ;;  %v334_v19 = vld [vmem:[%s476_s0 + $0x14] sm:$0xf0] }
   0x7   :  { %198 = vmatpush.bf16.msra.mxu1 %v349_v3  ;;  %360 = vmatpush.bf16.msra.mxu3 %v349_v3  ;;  %v253_v16 = vld [vmem:[%s476_s0] sm:$0xf]  ;;  %v332_v17 = vld [vmem:[%s476_s0 + $0x4] sm:$0xf0]  ;;  %v331_v20 = vld [vmem:[%s476_s0 + $0x4] sm:$0xf]  ;;  %v262_v25 = vor.u32 %v334_v19, %v261_v18 }
   0x8   :  { %v255_v21 = vld [vmem:[%s476_s0 + $0x8] sm:$0xf0]  ;;  %v333_v22 = vld [vmem:[%s476_s0 + $0x14] sm:$0xf]  ;;  %v263_v23 = vld [vmem:[%s476_s0 + $0x18] sm:$0xf0]  ;;  %v254_v24 = vor.u32 %v332_v17, %v253_v16 }
   0x9   :  { %v258_v26 = vor.u32 %v331_v20, %v255_v21  ;;  %v266_v27 = vor.u32 %v333_v22, %v263_v23  ;;  %v367_v29 = vld [vmem:[%s477_s2] ss:$0 sm:$0xff] }
   0xa   :  { %180 = vmatpush.bf16.msra.mxu0 %v340_v4  ;;  %353 = vmatpush.bf16.msra.mxu2 %v340_v4 }
   0xb   :  { %199 = vmatpush.bf16.msra.mxu1 %v348_v5  ;;  %361 = vmatpush.bf16.msra.mxu3 %v348_v5 }
   0xe   :  { %181 = vmatpush.bf16.msra.mxu0 %v339_v6  ;;  %354 = vmatpush.bf16.msra.mxu2 %v339_v6 }
   0xf   :  { %200 = vmatpush.bf16.msra.mxu1 %v347_v7  ;;  %362 = vmatpush.bf16.msra.mxu3 %v347_v7 }
  0x12   :  { %182 = vmatpush.bf16.msra.mxu0 %v338_v8  ;;  %355 = vmatpush.bf16.msra.mxu2 %v338_v8 }
  0x13   :  { %201 = vmatpush.bf16.msra.mxu1 %v346_v9  ;;  %363 = vmatpush.bf16.msra.mxu3 %v346_v9 }
  0x16   :  { %183 = vmatpush.bf16.msra.mxu0 %v337_v10  ;;  %356 = vmatpush.bf16.msra.mxu2 %v337_v10 }
  0x17   :  { %202 = vmatpush.bf16.msra.mxu1 %v345_v11  ;;  %364 = vmatpush.bf16.msra.mxu3 %v345_v11 }
  0x1a   :  { %184 = vmatpush.bf16.msra.mxu0 %v336_v12  ;;  %357 = vmatpush.bf16.msra.mxu2 %v336_v12 }
  0x1b   :  { %203 = vmatpush.bf16.msra.mxu1 %v344_v13  ;;  %365 = vmatpush.bf16.msra.mxu3 %v344_v13 }
  0x1e   :  { %185 = vmatpush.bf16.msra.mxu0 %v335_v14  ;;  %358 = vmatpush.bf16.msra.mxu2 %v335_v14 }
  0x1f   :  { %204 = vmatpush.bf16.msra.mxu1 %v343_v15  ;;  %366 = vmatpush.bf16.msra.mxu3 %v343_v15 }
  0x21   :  { %186 = vmatmul.bf16.vlgmr.msra.gmra.mxu0 %v254_v24  ;;  %191 = vmatmul.bf16.vlgmr.msra.gmra.mxu2 %v262_v25 }
  0x22   :  { %205 = vmatmul.bf16.vlgmr.msra.gmra.mxu1 %v258_v26  ;;  %210 = vmatmul.bf16.vlgmr.msra.gmra.mxu3 %v266_v27 }
  0x9e   :  { %v187_v28 = vpop.f32.mrf.mxu0 }
  0x9f   :  { %v206_v30 = vpop.f32.mrf.mxu1 }
  0xa0   :  { %v207_v31 = vadd.f32 %v206_v30, %v187_v28 }
  0xa2   :  { %v235_v32 = vadd.f32 %v367_v29, %v207_v31 }
  0xa4   :  { %v239_v33 = vmax.f32 %v235_v32, 0.0  ;;  %v192_v34 = vpop.f32.mrf.mxu2 }
  0xa5   :  { %v211_v35 = vpop.f32.mrf.mxu3 }
  0xa6   :  { %243 = vst [vmem:[%s478_s3] sm:$0xff] %v239_v33  ;;  %v212_v36 = vadd.f32 %v211_v35, %v192_v34  ;;  %v189_v37 = vpop.f32.mrf.mxu0 }
  0xa7   :  { %v208_v38 = vpop.f32.mrf.mxu1 }
  0xa8   :  { %v237_v39 = vadd.f32 %v367_v29, %v212_v36  ;;  %v209_v40 = vadd.f32 %v208_v38, %v189_v37 }
  0xaa   :  { %v241_v41 = vmax.f32 %v237_v39, 0.0  ;;  %v236_v42 = vadd.f32 %v367_v29, %v209_v40 }
  0xac   :  { %245 = vst [vmem:[%s478_s3 + $0x10] sm:$0xff] %v241_v41  ;;  %v240_v43 = vmax.f32 %v236_v42, 0.0  ;;  %v194_v44 = vpop.f32.mrf.mxu2 }
  0xad   :  { %v213_v45 = vpop.f32.mrf.mxu3 }
  0xae   :  { %244 = vst [vmem:[%s478_s3 + $0x8] sm:$0xff] %v240_v43  ;;  %v214_v46 = vadd.f32 %v213_v45, %v194_v44 }
  0xb0   :  { %v238_v47 = vadd.f32 %v367_v29, %v214_v46 }
  0xb2   :  { %v242_v48 = vmax.f32 %v238_v47, 0.0 }
  0xb4   :  { %246 = vst [vmem:[%s478_s3 + $0x18] sm:$0xff] %v242_v48 }

// kernel: _lambda_.10
= control target key start
LH: loop header
LB: loop body
LE: loop exit
PB: predicated region body
PF: predicated region fallthrough
CT: control target
= control target key end

     0   :  { %s857_s12 = smov 0   ;;  %s859_s13 = smov 0   ;;  %s992_s0 = inlined_call_operand.vmem [shape: bf16[16,128], index: 0, kind: input, shape index: {}]   ;;  %s993_s1 = inlined_call_operand.vmem [shape: bf16[128,1024], index: 1, kind: input, shape index: {}]   ;;  %s994_s2 = inlined_call_operand.vmem [shape: f32[1,1024], index: 2, kind: input, shape index: {}]   ;;  %s995_s3 = inlined_call_operand.vmem [shape: f32[16,1024], index: 3, kind: output, shape index: {}]  }
   0x1   :  { %s861_s14 = smov 0   ;;  %s863_s15 = smov 0  }
   0x2   :  { %s865_s16 = smov 0  }
   0x3 LB: > { %s28_s17 = sadd.s32 1, %s831_s15  ;;  %s653_s18 = sadd.s32 4294967295, %s835_s16   ;;  %s835_s16 = sphi %s865_s16, %s13_s16   ;;  %s831_s15 = sphi %s863_s15, %s1000_s15   ;;  %s827_s14 = sphi %s861_s14, %s999_s14   ;;  %s823_s13 = sphi %s859_s13, %s998_s13   ;;  %s819_s12 = sphi %s857_s12, %s997_s12  }
   0x4   : > { %p30_p0 = scmp.ge.s32.totalorder %s28_s17, 4  ;;  %p76_p1 = scmp.ne.s32.totalorder %s823_s13, %s819_s12 }
   0x5   : > { %p77_p2 = scmp.eq.s32.totalorder %s835_s16, 0  ;;  %p134_p4 = scmp.eq.s32.totalorder %s653_s18, 3 }
   0x6   : > { %s1002_s17 = smov (%p30_p0, %s28_s17), 0  ;;  %s69_s20 = sadd.s32 1, %s823_s13 }
   0x7   : > { %p78_p3 = por %p77_p2, %p76_p1  ;;  %s65_s19 = ssub.s32 %s831_s15, %s1002_s17 }
   0x8   : > { %p67_p5 = scmp.eq.s32.totalorder %s65_s19, 0  ;;  %p892_p6 = por %p134_p4, %p76_p1 }
   0x9   : > { %p657_p7 = scmp.ge.s32.totalorder %s835_s16, 4 }
   0xa   : > { %s897_s22 = scalar_select %p67_p5, %s823_s13, %s69_s20  }
   0xb   : > { %168 = sbr.rel (%p657_p7) target bundleno = 36 (0x24), region = 20 }
  0x10   : > { %171 = sbr.rel (!%p78_p3) target bundleno = 36 (0x24), region = 24  ;;  %s173_s23 = sand.u32 (%p78_p3), 1, %s823_s13  }
  0x11   : > { %s738_s24 = sshll.u32 (%p78_p3), %s831_s15, 3  ;;  %s658_s25 = sshll.u32 (%p78_p3), %s173_s23, 7 }
  0x12   : > { %s905_s28 = scalar_lea.vmem (%p78_p3), %s993_s1, %s738_s24  ;;  %s175_s29 = scalar_lea.vmem (%p78_p3), [#allocation3], %s658_s25 }
  0x13   : > { %v240_v0 = vld [vmem:[%s905_s28] sm:$0xff] (%p78_p3) }
  0x14   : > { %v242_v1 = vld [vmem:[%s905_s28 + $0x20] sm:$0xff] (%p78_p3)  ;;  %241 = vst [vmem:[%s175_s29] sm:$0xff] (%p78_p3), %v240_v0 }
  0x15   : > { %v244_v2 = vld [vmem:[%s905_s28 + $0x40] sm:$0xff]  ;;  %243 = vst [vmem:[%s175_s29 + $0x8] sm:$0xff] %v242_v1 }
  0x16   : > { %v246_v3 = vld [vmem:[%s905_s28 + $0x60] sm:$0xff]  ;;  %245 = vst [vmem:[%s175_s29 + $0x10] sm:$0xff] %v244_v2 }
  0x17   : > { %v248_v4 = vld [vmem:[%s905_s28 + $0x80] sm:$0xff]  ;;  %247 = vst [vmem:[%s175_s29 + $0x18] sm:$0xff] %v246_v3 }
  0x18   : > { %v250_v5 = vld [vmem:[%s905_s28 + $0xa0] sm:$0xff]  ;;  %249 = vst [vmem:[%s175_s29 + $0x20] sm:$0xff] %v248_v4 }
  0x19   : > { %v252_v6 = vld [vmem:[%s905_s28 + $0xc0] sm:$0xff]  ;;  %251 = vst [vmem:[%s175_s29 + $0x28] sm:$0xff] %v250_v5 }
  0x1a   : > { %v254_v7 = vld [vmem:[%s905_s28 + $0xe0] sm:$0xff]  ;;  %253 = vst [vmem:[%s175_s29 + $0x30] sm:$0xff] %v252_v6 }
  0x1b   : > { %v256_v8 = vld [vmem:[%s905_s28 + $0x100] sm:$0xff]  ;;  %255 = vst [vmem:[%s175_s29 + $0x38] sm:$0xff] %v254_v7 }
  0x1c   : > { %v258_v9 = vld [vmem:[%s905_s28 + $0x120] sm:$0xff]  ;;  %257 = vst [vmem:[%s175_s29 + $0x40] sm:$0xff] %v256_v8 }
  0x1d   : > { %v260_v10 = vld [vmem:[%s905_s28 + $0x140] sm:$0xff]  ;;  %259 = vst [vmem:[%s175_s29 + $0x48] sm:$0xff] %v258_v9 }
  0x1e   : > { %v262_v11 = vld [vmem:[%s905_s28 + $0x160] sm:$0xff]  ;;  %261 = vst [vmem:[%s175_s29 + $0x50] sm:$0xff] %v260_v10 }
  0x1f   : > { %v264_v12 = vld [vmem:[%s905_s28 + $0x180] sm:$0xff]  ;;  %263 = vst [vmem:[%s175_s29 + $0x58] sm:$0xff] %v262_v11 }
  0x20   : > { %v266_v13 = vld [vmem:[%s905_s28 + $0x1a0] sm:$0xff]  ;;  %265 = vst [vmem:[%s175_s29 + $0x60] sm:$0xff] %v264_v12 }
  0x21   : > { %v268_v14 = vld [vmem:[%s905_s28 + $0x1c0] sm:$0xff]  ;;  %267 = vst [vmem:[%s175_s29 + $0x68] sm:$0xff] %v266_v13 }
  0x22   : > { %v270_v15 = vld [vmem:[%s905_s28 + $0x1e0] sm:$0xff]  ;;  %269 = vst [vmem:[%s175_s29 + $0x70] sm:$0xff] %v268_v14 }
  0x23   : > { %271 = vst [vmem:[%s175_s29 + $0x78] sm:$0xff] %v270_v15 }
  0x24 PF: > { %p661_p8 = scmp.ge.s32.totalorder %s835_s16, 1  ;;  %p284_p9 = scmp.lt.s32.totalorder %s835_s16, 5 }
  0x26   : > { %p285_p10 = pnand %p661_p8, %p284_p9 }
  0x27   : > { %s291_s30 = sand.u32 (!%p285_p10), 1, %s819_s12   ;;  %s664_s8 = sshll.u32 (!%p285_p10), %s827_s14, 1 }
  0x28   : > { %288 = sbr.rel (%p285_p10) target bundleno = 225 (0xe1), region = 66  ;;  %s662_s4 = sshll.u32 (!%p285_p10), %s291_s30, 7 }
  0x29   : > { %s928_s5 = scalar_lea.vmem (!%p285_p10), [#allocation3], %s662_s4  ;;  %p337_p11 = scmp.lt.s32.totalorder (!%p285_p10), %s664_s8, 7 }
  0x2a   : > { %s663_s18 = sshll.u32 (!%p285_p10), %s291_s30, 5 }
  0x2b   : > { %s324_s19 = scalar_lea.vmem (!%p285_p10), [#allocation4], %s663_s18 }
  0x2d   : > { %v727_v16 = vld [vmem:[%s928_s5 + $0x70] sm:$0xf]  ;;  %v755_v17 = vld [vmem:[%s928_s5 + $0x74] sm:$0xf0]  ;;  %v754_v18 = vld [vmem:[%s928_s5 + $0x74] sm:$0xf] }
  0x2e   : > { %v728_v19 = vor.u32 %v755_v17, %v727_v16  ;;  %v729_v20 = vld [vmem:[%s928_s5 + $0x78] sm:$0xf0]  ;;  %v719_v21 = vld [vmem:[%s928_s5 + $0x60] sm:$0xf]  ;;  %v753_v22 = vld [vmem:[%s928_s5 + $0x64] sm:$0xf0] }
  0x2f   : > { %v732_v23 = vor.u32 %v754_v18, %v729_v20  ;;  %v752_v24 = vld [vmem:[%s928_s5 + $0x64] sm:$0xf]  ;;  %v721_v25 = vld [vmem:[%s928_s5 + $0x68] sm:$0xf0]  ;;  %v720_v26 = vor.u32 %v753_v22, %v719_v21  ;;  %v711_v28 = vld [vmem:[%s928_s5 + $0x50] sm:$0xf] }
  0x30   : > { %459 = vmatpush.bf16.msra.mxu0 %v728_v19  ;;  %v724_v27 = vor.u32 %v752_v24, %v721_v25  ;;  %v751_v29 = vld [vmem:[%s928_s5 + $0x54] sm:$0xf0]  ;;  %v750_v30 = vld [vmem:[%s928_s5 + $0x54] sm:$0xf]  ;;  %v713_v31 = vld [vmem:[%s928_s5 + $0x58] sm:$0xf0] }
  0x31   : > { %473 = vmatpush.bf16.msra.mxu1 %v732_v23  ;;  %v712_v32 = vor.u32 %v751_v29, %v711_v28  ;;  %v716_v33 = vor.u32 %v750_v30, %v713_v31  ;;  %v703_v34 = vld [vmem:[%s928_s5 + $0x40] sm:$0xf]  ;;  %v749_v35 = vld [vmem:[%s928_s5 + $0x44] sm:$0xf0]  ;;  %v748_v36 = vld [vmem:[%s928_s5 + $0x44] sm:$0xf] }
  0x32   : > { %v705_v37 = vld [vmem:[%s928_s5 + $0x48] sm:$0xf0]  ;;  %v704_v38 = vor.u32 %v749_v35, %v703_v34  ;;  %v695_v40 = vld [vmem:[%s928_s5 + $0x30] sm:$0xf]  ;;  %v747_v41 = vld [vmem:[%s928_s5 + $0x34] sm:$0xf0] }
  0x33   : > { %v708_v39 = vor.u32 %v748_v36, %v705_v37  ;;  %v746_v42 = vld [vmem:[%s928_s5 + $0x34] sm:$0xf]  ;;  %v697_v43 = vld [vmem:[%s928_s5 + $0x38] sm:$0xf0]  ;;  %v696_v44 = vor.u32 %v747_v41, %v695_v40  ;;  %v687_v46 = vld [vmem:[%s928_s5 + $0x20] sm:$0xf] }
  0x34   : > { %460 = vmatpush.bf16.msra.mxu0 %v720_v26  ;;  %v700_v45 = vor.u32 %v746_v42, %v697_v43  ;;  %v745_v47 = vld [vmem:[%s928_s5 + $0x24] sm:$0xf0]  ;;  %v744_v48 = vld [vmem:[%s928_s5 + $0x24] sm:$0xf]  ;;  %v689_v49 = vld [vmem:[%s928_s5 + $0x28] sm:$0xf0] }
  0x35   : > { %474 = vmatpush.bf16.msra.mxu1 %v724_v27  ;;  %v688_v50 = vor.u32 %v745_v47, %v687_v46  ;;  %v692_v51 = vor.u32 %v744_v48, %v689_v49  ;;  %v679_v52 = vld [vmem:[%s928_s5 + $0x10] sm:$0xf]  ;;  %v743_v53 = vld [vmem:[%s928_s5 + $0x14] sm:$0xf0]  ;;  %v742_v54 = vld [vmem:[%s928_s5 + $0x14] sm:$0xf] }
  0x36   : > { %v681_v55 = vld [vmem:[%s928_s5 + $0x18] sm:$0xf0]  ;;  %v680_v56 = vor.u32 %v743_v53, %v679_v52  ;;  %v671_v58 = vld [vmem:[%s928_s5] sm:$0xf]  ;;  %v741_v59 = vld [vmem:[%s928_s5 + $0x4] sm:$0xf0] }
  0x37   : > { %v684_v57 = vor.u32 %v742_v54, %v681_v55  ;;  %v740_v60 = vld [vmem:[%s928_s5 + $0x4] sm:$0xf]  ;;  %v673_v61 = vld [vmem:[%s928_s5 + $0x8] sm:$0xf0]  ;;  %v672_v62 = vor.u32 %v741_v59, %v671_v58  ;;  %s1004_s8 = smov (!%p337_p11, %s664_s8), 7  ;;  %s756_s12 = sshll.u32 (%p892_p6), %s827_s14, 4 }
  0x38   : > { %461 = vmatpush.bf16.msra.mxu0 %v712_v32  ;;  %v676_v63 = vor.u32 %v740_v60, %v673_v61  ;;  %v739_v0 = vld [vmem:[%s992_s0] sm:$0xff]  ;;  %s339_s11 = scalar_lea.vmem %s994_s2, %s1004_s8  ;;  %s528_s24 = scalar_lea.vmem (%p892_p6), %s995_s3, %s756_s12 }
  0x39   : > { %475 = vmatpush.bf16.msra.mxu1 %v716_v33  ;;  %v502_v1 = vld [vmem:[%s339_s11] sm:$0x3] }
  0x3a   : > { %v504_v2 = vperm.slane %v502_v1, 0  ;;  %v505_v3 = vperm.slane %v502_v1, 1 }
  0x3c   : > { %462 = vmatpush.bf16.msra.mxu0 %v704_v38 }
  0x3d   : > { %476 = vmatpush.bf16.msra.mxu1 %v708_v39 }
  0x40   : > { %463 = vmatpush.bf16.msra.mxu0 %v696_v44 }
  0x41   : > { %477 = vmatpush.bf16.msra.mxu1 %v700_v45 }
  0x44   : > { %464 = vmatpush.bf16.msra.mxu0 %v688_v50 }
  0x45   : > { %478 = vmatpush.bf16.msra.mxu1 %v692_v51 }
  0x48   : > { %465 = vmatpush.bf16.msra.mxu0 %v680_v56 }
  0x49   : > { %479 = vmatpush.bf16.msra.mxu1 %v684_v57 }
  0x4c   : > { %466 = vmatpush.bf16.msra.mxu0 %v672_v62 }
  0x4d   : > { %480 = vmatpush.bf16.msra.mxu1 %v676_v63 }
  0x4f   : > { %467 = vmatmul.bf16.vlgmr.msra.gmra.mxu0 %v739_v0 }
  0x50   : > { %481 = vmatmul.bf16.vlgmr.msra.gmra.mxu1 %v739_v0 }
  0xcc   : > { %v468_v4 = vpop.f32.mrf.mxu0 }
  0xcd   : > { %v508_v5 = vadd.f32 %v504_v2, %v468_v4  ;;  %v482_v6 = vpop.f32.mrf.mxu1 }
  0xce   : > { %v509_v7 = vadd.f32 %v505_v3, %v482_v6 }
  0xcf   : > { %512 = vst [vmem:[%s324_s19] sm:$0xff] %v508_v5 }
  0xd0   : > { %513 = vst [vmem:[%s324_s19 + $0x8] sm:$0xff] %v509_v7 }
  0xd4   : > { %v470_v8 = vpop.f32.mrf.mxu0  ;;  %522 = sbr.rel (!%p892_p6) target bundleno = 225 (0xe1), region = 82 }
  0xd5   : > { %v510_v9 = vadd.f32 %v504_v2, %v470_v8  ;;  %v484_v10 = vpop.f32.mrf.mxu1 }
  0xd6   : > { %v511_v11 = vadd.f32 %v505_v3, %v484_v10  ;;  %v541_v12 = vld [vmem:[%s324_s19] sm:$0xff] (%p892_p6) }
  0xd7   : > { %514 = vst [vmem:[%s324_s19 + $0x10] sm:$0xff] %v510_v9  ;;  %v543_v13 = vld [vmem:[%s324_s19 + $0x8] sm:$0xff] (%p892_p6) }
  0xd8   : > { %515 = vst [vmem:[%s324_s19 + $0x18] sm:$0xff] %v511_v11 }
  0xd9   : > { %542 = vst [vmem:[%s528_s24] sm:$0xff] %v541_v12 }
  0xda   : > { %544 = vst [vmem:[%s528_s24 + $0x8] sm:$0xff] %v543_v13 }
  0xde   : > { %v545_v14 = vld [vmem:[%s324_s19 + $0x10] sm:$0xff] }
  0xdf   : > { %v547_v15 = vld [vmem:[%s324_s19 + $0x18] sm:$0xff]  ;;  %546 = vst [vmem:[%s528_s24 + $0x40] sm:$0xff] %v545_v14 }
  0xe0   : > { %548 = vst [vmem:[%s528_s24 + $0x48] sm:$0xff] %v547_v15 }
  0xe1 PF: > { %s13_s16 = sadd.s32 1, %s835_s16   ;;  %s997_s12 = smov %s823_s13 }
  0xe2   : > { %p10_p12 = scmp.ge.s32.totalorder %s13_s16, 6   ;;  %s998_s13 = smov %s897_s22 }
  0xe3   : > { %s999_s14 = smov %s831_s15  ;;  %s1000_s15 = smov %s1002_s17 }
  0xe4   :  { %12 = sbr.rel (!%p10_p12) target bundleno = 3 (0x3), region = 142 }

// kernel: _lambda_.9
= control target key start
LH: loop header
LB: loop body
LE: loop exit
PB: predicated region body
PF: predicated region fallthrough
CT: control target
= control target key end

     0   :  { %s1364_s21 = smov 0   ;;  %s1366_s22 = smov 0   ;;  %s1602_s0 = inlined_call_operand.vmem [shape: bf16[16,1024], index: 0, kind: input, shape index: {}]   ;;  %s1603_s1 = inlined_call_operand.vmem [shape: bf16[1024,256], index: 1, kind: input, shape index: {}]   ;;  %s1604_s2 = inlined_call_operand.vmem [shape: f32[1,256], index: 2, kind: input, shape index: {}]   ;;  %s1605_s3 = inlined_call_operand.vmem [shape: f32[16,128], index: 3, kind: input, shape index: {}]   ;;  %s1606_s4 = inlined_call_operand.vmem [shape: f32[16,128], index: 4, kind: output, shape index: {0}]   ;;  %s1607_s5 = inlined_call_operand.vmem [shape: f32[16,128], index: 5, kind: output, shape index: {1}]   ;;  %s1608_s6 = inlined_call_operand.vmem [shape: f32[16,128], index: 6, kind: output, shape index: {2}]  }
   0x1   :  { %s1368_s23 = smov 0  }
   0x2 LB: > { %s1380_s24 = sadd.s32 4294967295, %s1326_s23   ;;  %s1383_s25 = sadd.s32 1, %s1326_s23   ;;  %s1326_s23 = sphi %s1368_s23, %s1611_s23   ;;  %s1322_s22 = sphi %s1366_s22, %s1610_s22   ;;  %s1318_s21 = sphi %s1364_s21, %s1609_s21  }
   0x3   : > { %s21_s26 = ssub.s32 %s1326_s23, %s1383_s25  ;;  %s24_s27 = sadd.s32 1, %s1322_s22 }
   0x4   : > { %p22_p0 = scmp.eq.s32.totalorder %s21_s26, 0  ;;  %p31_p1 = scmp.ne.s32.totalorder %s1322_s22, %s1318_s21 }
   0x5   : > { %p32_p2 = scmp.eq.s32.totalorder %s1326_s23, 0  ;;  %p920_p4 = scmp.ge.s32.totalorder %s1326_s23, 2 }
   0x6   : > { %s1392_s28 = scalar_select %p22_p0, %s1322_s22, %s24_s27  }
   0x7   : > { %p33_p3 = por %p32_p2, %p31_p1  ;;  %194 = sbr.rel (%p920_p4) target bundleno = 20 (0x14), region = 24 }
   0xc   : > { %197 = sbr.rel (!%p33_p3) target bundleno = 20 (0x14), region = 28  ;;  %s199_s29 = sand.u32 (%p33_p3), 1, %s1322_s22  }
   0xd   : > { %s1205_s30 = sshll.u32 (%p33_p3), %s1326_s23, 4  ;;  %s921_s7 = sshll.u32 (%p33_p3), %s199_s29, 5 }
   0xe   : > { %s204_s10 = scalar_lea.vmem (%p33_p3), %s1602_s0, %s1205_s30  ;;  %s201_s11 = scalar_lea.vmem (%p33_p3), [#allocation3], %s921_s7 }
   0xf   : > { %v217_v0 = vld [vmem:[%s204_s10] sm:$0xff] (%p33_p3)  ;;  %v219_v1 = vld [vmem:[%s204_s10 + $0x8] sm:$0xff] (%p33_p3) }
  0x10   : > { %v221_v2 = vld [vmem:[%s204_s10 + $0x20] sm:$0xff] (%p33_p3)  ;;  %218 = vst [vmem:[%s201_s11] sm:$0xff] (%p33_p3), %v217_v0  ;;  %v223_v3 = vld [vmem:[%s204_s10 + $0x28] sm:$0xff] (%p33_p3) }
  0x11   : > { %220 = vst [vmem:[%s201_s11 + $0x8] sm:$0xff] %v219_v1 }
  0x12   : > { %222 = vst [vmem:[%s201_s11 + $0x10] sm:$0xff] %v221_v2 }
  0x13   : > { %224 = vst [vmem:[%s201_s11 + $0x18] sm:$0xff] %v223_v3 }
  0x14 PF: > { %p924_p5 = scmp.ge.s32.totalorder %s1326_s23, 1  ;;  %p239_p6 = scmp.lt.s32.totalorder %s1326_s23, 3 }
  0x16   : > { %p240_p7 = pnand %p924_p5, %p239_p6 }
  0x17   : > { %s246_s12 = sand.u32 (!%p240_p7), 1, %s1318_s21   ;;  %s926_s13 = sshll.u32 (!%p240_p7), %s1380_s24, 6 }
  0x18   : > { %243 = sbr.rel (%p240_p7) target bundleno = 279 (0x117), region = 55  ;;  %s925_s14 = sshll.u32 (!%p240_p7), %s246_s12, 5 }
  0x19   : > { %p278_p8 = scmp.lt.s32.totalorder (!%p240_p7), %s926_s13, 127  ;;  %s1409_s19 = scalar_lea.vmem (!%p240_p7), [#allocation3], %s925_s14 }
  0x1a   : > { %p929_p9 = scmp.ne.s32.totalorder (!%p240_p7), %s1380_s24, 0 }
  0x1d   : > { %s1613_s13 = smov (!%p278_p8, %s926_s13), 127  ;;  %287 = sbr.rel (%p929_p9) target bundleno = 39 (0x27), region = 63 }
  0x1e   : > { %s1206_s15 = sshll.u32 %s1613_s13, 3 }
  0x1f   : > { %s1407_s18 = scalar_lea.vmem %s1603_s1, %s1206_s15 }
  0x22   : > { %v1328_v4 = vmov 0.0  }
  0x23   : > { %288 = vst [vmem:[#allocation2 + $0x10] sm:$0xff] %v1328_v4 }
  0x24   : > { %289 = vst [vmem:[#allocation2] sm:$0xff] %v1328_v4 }
  0x25   : > { %290 = vst [vmem:[#allocation2 + $0x18] sm:$0xff] %v1328_v4 }
  0x26   : > { %291 = vst [vmem:[#allocation2 + $0x8] sm:$0xff] %v1328_v4 }
  0x27 PF: > { %v1004_v5 = vld [vmem:[%s1407_s18 + $0x70] sm:$0xf]  ;;  %v1226_v6 = vld [vmem:[%s1407_s18 + $0x74] sm:$0xf0]  ;;  %v996_v16 = vld [vmem:[%s1407_s18 + $0x60] sm:$0xf] }
  0x28   : > { %v1068_v7 = vld [vmem:[%s1407_s18 + $0xf0] sm:$0xf]  ;;  %v1005_v8 = vor.u32 %v1226_v6, %v1004_v5  ;;  %v1242_v9 = vld [vmem:[%s1407_s18 + $0xf4] sm:$0xf0]  ;;  %v1224_v18 = vld [vmem:[%s1407_s18 + $0x64] sm:$0xf0] }
  0x29   : > { %v1132_v10 = vld [vmem:[%s1407_s18 + $0x170] sm:$0xf]  ;;  %v1258_v11 = vld [vmem:[%s1407_s18 + $0x174] sm:$0xf0]  ;;  %v1069_v12 = vor.u32 %v1242_v9, %v1068_v7  ;;  %v1060_v19 = vld [vmem:[%s1407_s18 + $0xe0] sm:$0xf]  ;;  %v997_v21 = vor.u32 %v1224_v18, %v996_v16 }
  0x2a   : > { %v1133_v13 = vor.u32 %v1258_v11, %v1132_v10  ;;  %v1196_v14 = vld [vmem:[%s1407_s18 + $0x1f0] sm:$0xf]  ;;  %v1274_v15 = vld [vmem:[%s1407_s18 + $0x1f4] sm:$0xf0]  ;;  %704 = vmatpush.bf16.msra.mxu0 %v1005_v8  ;;  %v1240_v20 = vld [vmem:[%s1407_s18 + $0xe4] sm:$0xf0] }
  0x2b   : > { %v1197_v17 = vor.u32 %v1274_v15, %v1196_v14  ;;  %718 = vmatpush.bf16.msra.mxu1 %v1069_v12  ;;  %v1061_v22 = vor.u32 %v1240_v20, %v1060_v19  ;;  %v1124_v23 = vld [vmem:[%s1407_s18 + $0x160] sm:$0xf]  ;;  %v1256_v24 = vld [vmem:[%s1407_s18 + $0x164] sm:$0xf0]  ;;  %v988_v28 = vld [vmem:[%s1407_s18 + $0x50] sm:$0xf] }
  0x2c   : > { %732 = vmatpush.bf16.msra.mxu2 %v1133_v13  ;;  %v1188_v25 = vld [vmem:[%s1407_s18 + $0x1e0] sm:$0xf]  ;;  %v1125_v26 = vor.u32 %v1256_v24, %v1124_v23  ;;  %v1272_v27 = vld [vmem:[%s1407_s18 + $0x1e4] sm:$0xf0]  ;;  %v1222_v29 = vld [vmem:[%s1407_s18 + $0x54] sm:$0xf0] }
  0x2d   : > { %746 = vmatpush.bf16.msra.mxu3 %v1197_v17  ;;  %v1189_v30 = vor.u32 %v1272_v27, %v1188_v25  ;;  %v1052_v31 = vld [vmem:[%s1407_s18 + $0xd0] sm:$0xf]  ;;  %v1238_v32 = vld [vmem:[%s1407_s18 + $0xd4] sm:$0xf0]  ;;  %v989_v34 = vor.u32 %v1222_v29, %v988_v28  ;;  %v980_v40 = vld [vmem:[%s1407_s18 + $0x40] sm:$0xf] }
  0x2e   : > { %v1116_v33 = vld [vmem:[%s1407_s18 + $0x150] sm:$0xf]  ;;  %705 = vmatpush.bf16.msra.mxu0 %v997_v21  ;;  %v1254_v35 = vld [vmem:[%s1407_s18 + $0x154] sm:$0xf0]  ;;  %v1053_v38 = vor.u32 %v1238_v32, %v1052_v31  ;;  %v1220_v41 = vld [vmem:[%s1407_s18 + $0x44] sm:$0xf0] }
  0x2f   : > { %v1180_v36 = vld [vmem:[%s1407_s18 + $0x1d0] sm:$0xf]  ;;  %v1270_v37 = vld [vmem:[%s1407_s18 + $0x1d4] sm:$0xf0]  ;;  %719 = vmatpush.bf16.msra.mxu1 %v1061_v22  ;;  %v1117_v39 = vor.u32 %v1254_v35, %v1116_v33  ;;  %v1044_v42 = vld [vmem:[%s1407_s18 + $0xc0] sm:$0xf]  ;;  %v981_v49 = vor.u32 %v1220_v41, %v980_v40 }
  0x30   : > { %733 = vmatpush.bf16.msra.mxu2 %v1125_v26  ;;  %v1181_v43 = vor.u32 %v1270_v37, %v1180_v36  ;;  %v1236_v44 = vld [vmem:[%s1407_s18 + $0xc4] sm:$0xf0]  ;;  %v1108_v45 = vld [vmem:[%s1407_s18 + $0x140] sm:$0xf]  ;;  %v972_v52 = vld [vmem:[%s1407_s18 + $0x30] sm:$0xf] }
  0x31   : > { %747 = vmatpush.bf16.msra.mxu3 %v1189_v30  ;;  %v1252_v46 = vld [vmem:[%s1407_s18 + $0x144] sm:$0xf0]  ;;  %v1172_v47 = vld [vmem:[%s1407_s18 + $0x1c0] sm:$0xf]  ;;  %v1045_v50 = vor.u32 %v1236_v44, %v1044_v42  ;;  %v1218_v53 = vld [vmem:[%s1407_s18 + $0x34] sm:$0xf0] }
  0x32   : > { %v1268_v48 = vld [vmem:[%s1407_s18 + $0x1c4] sm:$0xf0]  ;;  %706 = vmatpush.bf16.msra.mxu0 %v989_v34  ;;  %v1109_v51 = vor.u32 %v1252_v46, %v1108_v45  ;;  %v1036_v54 = vld [vmem:[%s1407_s18 + $0xb0] sm:$0xf]  ;;  %v1234_v56 = vld [vmem:[%s1407_s18 + $0xb4] sm:$0xf0]  ;;  %v973_v61 = vor.u32 %v1218_v53, %v972_v52 }
  0x33   : > { %720 = vmatpush.bf16.msra.mxu1 %v1053_v38  ;;  %v1173_v55 = vor.u32 %v1268_v48, %v1172_v47  ;;  %v1100_v57 = vld [vmem:[%s1407_s18 + $0x130] sm:$0xf]  ;;  %v1250_v58 = vld [vmem:[%s1407_s18 + $0x134] sm:$0xf0]  ;;  %v1037_v62 = vor.u32 %v1234_v56, %v1036_v54  ;;  %v964_v0 = vld [vmem:[%s1407_s18 + $0x20] sm:$0xf] }
  0x34   : > { %734 = vmatpush.bf16.msra.mxu2 %v1117_v39  ;;  %v1164_v59 = vld [vmem:[%s1407_s18 + $0x1b0] sm:$0xf]  ;;  %v1266_v60 = vld [vmem:[%s1407_s18 + $0x1b4] sm:$0xf0]  ;;  %v1101_v63 = vor.u32 %v1250_v58, %v1100_v57  ;;  %v1216_v1 = vld [vmem:[%s1407_s18 + $0x24] sm:$0xf0] }
  0x35   : > { %748 = vmatpush.bf16.msra.mxu3 %v1181_v43  ;;  %v1028_v2 = vld [vmem:[%s1407_s18 + $0xa0] sm:$0xf]  ;;  %v1165_v3 = vor.u32 %v1266_v60, %v1164_v59  ;;  %v1232_v4 = vld [vmem:[%s1407_s18 + $0xa4] sm:$0xf0]  ;;  %v965_v9 = vor.u32 %v1216_v1, %v964_v0  ;;  %v956_v12 = vld [vmem:[%s1407_s18 + $0x10] sm:$0xf] }
  0x36   : > { %707 = vmatpush.bf16.msra.mxu0 %v981_v49  ;;  %v1092_v5 = vld [vmem:[%s1407_s18 + $0x120] sm:$0xf]  ;;  %v1248_v6 = vld [vmem:[%s1407_s18 + $0x124] sm:$0xf0]  ;;  %v1029_v10 = vor.u32 %v1232_v4, %v1028_v2  ;;  %v1214_v13 = vld [vmem:[%s1407_s18 + $0x14] sm:$0xf0] }
  0x37   : > { %721 = vmatpush.bf16.msra.mxu1 %v1045_v50  ;;  %v1156_v7 = vld [vmem:[%s1407_s18 + $0x1a0] sm:$0xf]  ;;  %v1264_v8 = vld [vmem:[%s1407_s18 + $0x1a4] sm:$0xf0]  ;;  %v1093_v11 = vor.u32 %v1248_v6, %v1092_v5  ;;  %v1020_v14 = vld [vmem:[%s1407_s18 + $0x90] sm:$0xf]  ;;  %v957_v22 = vor.u32 %v1214_v13, %v956_v12 }
  0x38   : > { %735 = vmatpush.bf16.msra.mxu2 %v1109_v51  ;;  %v1157_v15 = vor.u32 %v1264_v8, %v1156_v7  ;;  %v1230_v16 = vld [vmem:[%s1407_s18 + $0x94] sm:$0xf0]  ;;  %v1084_v17 = vld [vmem:[%s1407_s18 + $0x110] sm:$0xf]  ;;  %v948_v21 = vld [vmem:[%s1407_s18] sm:$0xf] }
  0x39   : > { %749 = vmatpush.bf16.msra.mxu3 %v1173_v55  ;;  %v1246_v18 = vld [vmem:[%s1407_s18 + $0x114] sm:$0xf0]  ;;  %v1148_v19 = vld [vmem:[%s1407_s18 + $0x190] sm:$0xf]  ;;  %v1212_v23 = vld [vmem:[%s1407_s18 + $0x4] sm:$0xf0]  ;;  %v1021_v26 = vor.u32 %v1230_v16, %v1020_v14 }
  0x3a   : > { %708 = vmatpush.bf16.msra.mxu0 %v973_v61  ;;  %v1262_v20 = vld [vmem:[%s1407_s18 + $0x194] sm:$0xf0]  ;;  %v1012_v24 = vld [vmem:[%s1407_s18 + $0x80] sm:$0xf]  ;;  %v1228_v25 = vld [vmem:[%s1407_s18 + $0x84] sm:$0xf0]  ;;  %v1085_v27 = vor.u32 %v1246_v18, %v1084_v17  ;;  %v949_v38 = vor.u32 %v1212_v23, %v948_v21 }
  0x3b   : > { %722 = vmatpush.bf16.msra.mxu1 %v1037_v62  ;;  %v1076_v28 = vld [vmem:[%s1407_s18 + $0x100] sm:$0xf]  ;;  %v1244_v29 = vld [vmem:[%s1407_s18 + $0x104] sm:$0xf0]  ;;  %v1149_v31 = vor.u32 %v1262_v20, %v1148_v19  ;;  %v1225_v33 = vld [vmem:[%s1407_s18 + $0x74] sm:$0xf]  ;;  %v1013_v42 = vor.u32 %v1228_v25, %v1012_v24 }
  0x3c   : > { %736 = vmatpush.bf16.msra.mxu2 %v1101_v63  ;;  %v1140_v30 = vld [vmem:[%s1407_s18 + $0x180] sm:$0xf]  ;;  %v1260_v32 = vld [vmem:[%s1407_s18 + $0x184] sm:$0xf0]  ;;  %v1006_v34 = vld [vmem:[%s1407_s18 + $0x78] sm:$0xf0]  ;;  %v1077_v43 = vor.u32 %v1244_v29, %v1076_v28 }
  0x3d   : > { %750 = vmatpush.bf16.msra.mxu3 %v1165_v3  ;;  %v1241_v35 = vld [vmem:[%s1407_s18 + $0xf4] sm:$0xf]  ;;  %v1070_v36 = vld [vmem:[%s1407_s18 + $0xf8] sm:$0xf0]  ;;  %v1223_v44 = vld [vmem:[%s1407_s18 + $0x64] sm:$0xf]  ;;  %v1141_v48 = vor.u32 %v1260_v32, %v1140_v30  ;;  %v1009_v49 = vor.u32 %v1225_v33, %v1006_v34 }
  0x3e   : > { %709 = vmatpush.bf16.msra.mxu0 %v965_v9  ;;  %v1257_v37 = vld [vmem:[%s1407_s18 + $0x174] sm:$0xf]  ;;  %v1134_v39 = vld [vmem:[%s1407_s18 + $0x178] sm:$0xf0]  ;;  %v998_v45 = vld [vmem:[%s1407_s18 + $0x68] sm:$0xf0]  ;;  %v1073_v54 = vor.u32 %v1241_v35, %v1070_v36 }
  0x3f   : > { %723 = vmatpush.bf16.msra.mxu1 %v1029_v10  ;;  %v1273_v40 = vld [vmem:[%s1407_s18 + $0x1f4] sm:$0xf]  ;;  %v1198_v41 = vld [vmem:[%s1407_s18 + $0x1f8] sm:$0xf0]  ;;  %v940_v46 = vld [vmem:[%s1409_s19 + $0x8] sm:$0xf]  ;;  %v1137_v55 = vor.u32 %v1257_v37, %v1134_v39  ;;  %v1001_v4 = vor.u32 %v1223_v44, %v998_v45 }
  0x40   : > { %737 = vmatpush.bf16.msra.mxu2 %v1093_v11  ;;  %v1210_v47 = vld [vmem:[%s1409_s19 + $0x14] sm:$0xf0]  ;;  %v1239_v50 = vld [vmem:[%s1407_s18 + $0xe4] sm:$0xf]  ;;  %v1062_v51 = vld [vmem:[%s1407_s18 + $0xe8] sm:$0xf0]  ;;  %v1201_v59 = vor.u32 %v1273_v40, %v1198_v41 }
  0x41   : > { %751 = vmatpush.bf16.msra.mxu3 %v1157_v15  ;;  %v1255_v52 = vld [vmem:[%s1407_s18 + $0x164] sm:$0xf]  ;;  %v1126_v53 = vld [vmem:[%s1407_s18 + $0x168] sm:$0xf0]  ;;  %v942_v57 = vld [vmem:[%s1409_s19 + $0x18] sm:$0xf0]  ;;  %v1495_v60 = vor.u32 %v1210_v47, %v940_v46  ;;  %v1065_v6 = vor.u32 %v1239_v50, %v1062_v51 }
  0x42   : > { %710 = vmatpush.bf16.msra.mxu0 %v957_v22  ;;  %v1208_v56 = vld [vmem:[%s1409_s19 + $0xc] sm:$0xf]  ;;  %v932_v58 = vld [vmem:[%s1409_s19] sm:$0xf]  ;;  %v1209_v61 = vld [vmem:[%s1409_s19 + $0xc] sm:$0xf0]  ;;  %v1129_v7 = vor.u32 %v1255_v52, %v1126_v53 }
  0x43   : > { %724 = vmatpush.bf16.msra.mxu1 %v1021_v26  ;;  %v1207_v62 = vld [vmem:[%s1409_s19 + $0x4] sm:$0xf]  ;;  %v934_v63 = vld [vmem:[%s1409_s19 + $0x10] sm:$0xf0]  ;;  %v1190_v1 = vld [vmem:[%s1407_s18 + $0x1e8] sm:$0xf0]  ;;  %v1502_v2 = vor.u32 %v1208_v56, %v942_v57  ;;  %v1504_v3 = vor.u32 %v1209_v61, %v932_v58 }
  0x44   : > { %738 = vmatpush.bf16.msra.mxu2 %v1085_v27  ;;  %v1271_v0 = vld [vmem:[%s1407_s18 + $0x1e4] sm:$0xf]  ;;  %v1506_v5 = vor.u32 %v1207_v62, %v934_v63  ;;  %v1221_v8 = vld [vmem:[%s1407_s18 + $0x54] sm:$0xf]  ;;  %v990_v9 = vld [vmem:[%s1407_s18 + $0x58] sm:$0xf0] }
  0x45   : > { %752 = vmatpush.bf16.msra.mxu3 %v1149_v31  ;;  %v1237_v10 = vld [vmem:[%s1407_s18 + $0xd4] sm:$0xf]  ;;  %v1193_v11 = vor.u32 %v1271_v0, %v1190_v1  ;;  %v1054_v12 = vld [vmem:[%s1407_s18 + $0xd8] sm:$0xf0]  ;;  %v993_v17 = vor.u32 %v1221_v8, %v990_v9  ;;  %v1219_v20 = vld [vmem:[%s1407_s18 + $0x44] sm:$0xf] }
  0x46   : > { %711 = vmatpush.bf16.msra.mxu0 %v949_v38  ;;  %v1253_v13 = vld [vmem:[%s1407_s18 + $0x154] sm:$0xf]  ;;  %v1118_v14 = vld [vmem:[%s1407_s18 + $0x158] sm:$0xf0]  ;;  %v1057_v18 = vor.u32 %v1237_v10, %v1054_v12  ;;  %v982_v21 = vld [vmem:[%s1407_s18 + $0x48] sm:$0xf0] }
  0x47   : > { %725 = vmatpush.bf16.msra.mxu1 %v1013_v42  ;;  %v1269_v15 = vld [vmem:[%s1407_s18 + $0x1d4] sm:$0xf]  ;;  %v1182_v16 = vld [vmem:[%s1407_s18 + $0x1d8] sm:$0xf0]  ;;  %v1121_v19 = vor.u32 %v1253_v13, %v1118_v14  ;;  %v1235_v22 = vld [vmem:[%s1407_s18 + $0xc4] sm:$0xf]  ;;  %v985_v29 = vor.u32 %v1219_v20, %v982_v21 }
  0x48   : > { %739 = vmatpush.bf16.msra.mxu2 %v1077_v43  ;;  %v1185_v23 = vor.u32 %v1269_v15, %v1182_v16  ;;  %v1046_v24 = vld [vmem:[%s1407_s18 + $0xc8] sm:$0xf0]  ;;  %v1251_v25 = vld [vmem:[%s1407_s18 + $0x144] sm:$0xf]  ;;  %v1217_v32 = vld [vmem:[%s1407_s18 + $0x34] sm:$0xf] }
  0x49   : > { %753 = vmatpush.bf16.msra.mxu3 %v1141_v48  ;;  %712 = vmatmul.bf16.vlgmr.msra.gmra.mxu0 %v1504_v3  ;;  %v1110_v26 = vld [vmem:[%s1407_s18 + $0x148] sm:$0xf0]  ;;  %v1267_v27 = vld [vmem:[%s1407_s18 + $0x1c4] sm:$0xf]  ;;  %v1049_v30 = vor.u32 %v1235_v22, %v1046_v24  ;;  %v974_v33 = vld [vmem:[%s1407_s18 + $0x38] sm:$0xf0] }
  0x4a   : > { %760 = vmatpush.bf16.msrb.mxu0 %v1009_v49  ;;  %726 = vmatmul.bf16.vlgmr.msra.gmra.mxu1 %v1506_v5  ;;  %v1174_v28 = vld [vmem:[%s1407_s18 + $0x1c8] sm:$0xf0]  ;;  %v1113_v31 = vor.u32 %v1251_v25, %v1110_v26  ;;  %v1233_v34 = vld [vmem:[%s1407_s18 + $0xb4] sm:$0xf]  ;;  %v1038_v36 = vld [vmem:[%s1407_s18 + $0xb8] sm:$0xf0]  ;;  %v977_v41 = vor.u32 %v1217_v32, %v974_v33 }
  0x4b   : > { %774 = vmatpush.bf16.msrb.mxu1 %v1073_v54  ;;  %740 = vmatmul.bf16.vlgmr.msra.gmra.mxu2 %v1495_v60  ;;  %v1177_v35 = vor.u32 %v1267_v27, %v1174_v28  ;;  %v1249_v37 = vld [vmem:[%s1407_s18 + $0x134] sm:$0xf]  ;;  %v1102_v38 = vld [vmem:[%s1407_s18 + $0x138] sm:$0xf0]  ;;  %v1041_v42 = vor.u32 %v1233_v34, %v1038_v36  ;;  %v1215_v44 = vld [vmem:[%s1407_s18 + $0x24] sm:$0xf] }
  0x4c   : > { %788 = vmatpush.bf16.msrb.mxu2 %v1137_v55  ;;  %754 = vmatmul.bf16.vlgmr.msra.gmra.mxu3 %v1502_v2  ;;  %v1265_v39 = vld [vmem:[%s1407_s18 + $0x1b4] sm:$0xf]  ;;  %v1166_v40 = vld [vmem:[%s1407_s18 + $0x1b8] sm:$0xf0]  ;;  %v1105_v43 = vor.u32 %v1249_v37, %v1102_v38  ;;  %v966_v45 = vld [vmem:[%s1407_s18 + $0x28] sm:$0xf0] }
  0x4d   : > { %802 = vmatpush.bf16.msrb.mxu3 %v1201_v59  ;;  %v1231_v46 = vld [vmem:[%s1407_s18 + $0xa4] sm:$0xf]  ;;  %v1169_v47 = vor.u32 %v1265_v39, %v1166_v40  ;;  %v1030_v48 = vld [vmem:[%s1407_s18 + $0xa8] sm:$0xf0]  ;;  %v969_v53 = vor.u32 %v1215_v44, %v966_v45  ;;  %v1213_v56 = vld [vmem:[%s1407_s18 + $0x14] sm:$0xf] }
  0x4e   : > { %761 = vmatpush.bf16.msrb.mxu0 %v1001_v4  ;;  %v1247_v49 = vld [vmem:[%s1407_s18 + $0x124] sm:$0xf]  ;;  %v1094_v50 = vld [vmem:[%s1407_s18 + $0x128] sm:$0xf0]  ;;  %v1033_v54 = vor.u32 %v1231_v46, %v1030_v48  ;;  %v958_v57 = vld [vmem:[%s1407_s18 + $0x18] sm:$0xf0] }
  0x4f   : > { %775 = vmatpush.bf16.msrb.mxu1 %v1065_v6  ;;  %v1263_v51 = vld [vmem:[%s1407_s18 + $0x1a4] sm:$0xf]  ;;  %v1158_v52 = vld [vmem:[%s1407_s18 + $0x1a8] sm:$0xf0]  ;;  %v1097_v55 = vor.u32 %v1247_v49, %v1094_v50  ;;  %v1229_v58 = vld [vmem:[%s1407_s18 + $0x94] sm:$0xf]  ;;  %v961_v4 = vor.u32 %v1213_v56, %v958_v57 }
  0x50   : > { %789 = vmatpush.bf16.msrb.mxu2 %v1129_v7  ;;  %v1161_v59 = vor.u32 %v1263_v51, %v1158_v52  ;;  %v1022_v61 = vld [vmem:[%s1407_s18 + $0x98] sm:$0xf0]  ;;  %v1245_v62 = vld [vmem:[%s1407_s18 + $0x114] sm:$0xf]  ;;  %v1211_v8 = vld [vmem:[%s1407_s18 + $0x4] sm:$0xf] }
  0x51   : > { %803 = vmatpush.bf16.msrb.mxu3 %v1193_v11  ;;  %v1086_v63 = vld [vmem:[%s1407_s18 + $0x118] sm:$0xf0]  ;;  %v1261_v0 = vld [vmem:[%s1407_s18 + $0x194] sm:$0xf]  ;;  %v1025_v6 = vor.u32 %v1229_v58, %v1022_v61  ;;  %v950_v9 = vld [vmem:[%s1407_s18 + $0x8] sm:$0xf0] }
  0x52   : > { %762 = vmatpush.bf16.msrb.mxu0 %v993_v17  ;;  %v1150_v1 = vld [vmem:[%s1407_s18 + $0x198] sm:$0xf0]  ;;  %v1089_v7 = vor.u32 %v1245_v62, %v1086_v63  ;;  %v1227_v10 = vld [vmem:[%s1407_s18 + $0x84] sm:$0xf]  ;;  %v1014_v12 = vld [vmem:[%s1407_s18 + $0x88] sm:$0xf0]  ;;  %v953_v17 = vor.u32 %v1211_v8, %v950_v9 }
  0x53   : > { %776 = vmatpush.bf16.msrb.mxu1 %v1057_v18  ;;  %v1153_v11 = vor.u32 %v1261_v0, %v1150_v1  ;;  %v1243_v13 = vld [vmem:[%s1407_s18 + $0x104] sm:$0xf]  ;;  %v1078_v14 = vld [vmem:[%s1407_s18 + $0x108] sm:$0xf0]  ;;  %v1017_v18 = vor.u32 %v1227_v10, %v1014_v12  ;;  %v292_v27 = vld [vmem:[#allocation2 + $0x10] sm:$0xff]  ;;  %p1202_p10 = scmp.ne.s32.totalorder %s1380_s24, 1 }
  0x54   : > { %790 = vmatpush.bf16.msrb.mxu2 %v1121_v19  ;;  %v1259_v15 = vld [vmem:[%s1407_s18 + $0x184] sm:$0xf]  ;;  %v1142_v16 = vld [vmem:[%s1407_s18 + $0x188] sm:$0xf0]  ;;  %v1081_v19 = vor.u32 %v1243_v13, %v1078_v14  ;;  %v294_v34 = vld [vmem:[#allocation2 + $0x18] sm:$0xff] }
  0x55   : > { %804 = vmatpush.bf16.msrb.mxu3 %v1185_v23  ;;  %v1145_v20 = vor.u32 %v1259_v15, %v1142_v16  ;;  %v295_v49 = vld [vmem:[#allocation2 + $0x8] sm:$0xff] }
  0x56   : > { %763 = vmatpush.bf16.msrb.mxu0 %v985_v29 }
  0x57   : > { %777 = vmatpush.bf16.msrb.mxu1 %v1049_v30 }
  0x58   : > { %791 = vmatpush.bf16.msrb.mxu2 %v1113_v31 }
  0x59   : > { %805 = vmatpush.bf16.msrb.mxu3 %v1177_v35 }
  0x5a   : > { %764 = vmatpush.bf16.msrb.mxu0 %v977_v41  ;;  %v293_v41 = vld [vmem:[#allocation2] sm:$0xff] }
  0x5b   : > { %778 = vmatpush.bf16.msrb.mxu1 %v1041_v42 }
  0x5c   : > { %792 = vmatpush.bf16.msrb.mxu2 %v1105_v43 }
  0x5d   : > { %806 = vmatpush.bf16.msrb.mxu3 %v1169_v47 }
  0x5e   : > { %765 = vmatpush.bf16.msrb.mxu0 %v969_v53 }
  0x5f   : > { %779 = vmatpush.bf16.msrb.mxu1 %v1033_v54 }
  0x60   : > { %793 = vmatpush.bf16.msrb.mxu2 %v1097_v55 }
  0x61   : > { %807 = vmatpush.bf16.msrb.mxu3 %v1161_v59 }
  0x62   : > { %766 = vmatpush.bf16.msrb.mxu0 %v961_v4 }
  0x63   : > { %780 = vmatpush.bf16.msrb.mxu1 %v1025_v6 }
  0x64   : > { %794 = vmatpush.bf16.msrb.mxu2 %v1089_v7 }
  0x65   : > { %808 = vmatpush.bf16.msrb.mxu3 %v1153_v11 }
  0x66   : > { %767 = vmatpush.bf16.msrb.mxu0 %v953_v17 }
  0x67   : > { %781 = vmatpush.bf16.msrb.mxu1 %v1017_v18 }
  0x68   : > { %795 = vmatpush.bf16.msrb.mxu2 %v1081_v19 }
  0x69   : > { %809 = vmatpush.bf16.msrb.mxu3 %v1145_v20  ;;  %768 = vmatmul.bf16.vlgmr.msrb.gmra.mxu0 %v1504_v3 }
  0x6a   : > { %782 = vmatmul.bf16.vlgmr.msrb.gmra.mxu1 %v1506_v5 }
  0x6b   : > { %796 = vmatmul.bf16.vlgmr.msrb.gmra.mxu2 %v1495_v60 }
  0x6c   : > { %810 = vmatmul.bf16.vlgmr.msrb.gmra.mxu3 %v1502_v2 }
  0xc6   : > { %v713_v21 = vpop.f32.mrf.mxu0 }
  0xc7   : > { %v727_v22 = vpop.f32.mrf.mxu1 }
  0xc8   : > { %v728_v23 = vadd.f32 %v727_v22, %v713_v21 }
  0xce   : > { %v741_v24 = vpop.f32.mrf.mxu2  ;;  %v715_v29 = vpop.f32.mrf.mxu0 }
  0xcf   : > { %v742_v25 = vadd.f32 %v741_v24, %v728_v23  ;;  %v755_v26 = vpop.f32.mrf.mxu3  ;;  %v729_v30 = vpop.f32.mrf.mxu1 }
  0xd0   : > { %v730_v32 = vadd.f32 %v729_v30, %v715_v29 }
  0xd1   : > { %v756_v28 = vadd.f32 %v755_v26, %v742_v25 }
  0xd3   : > { %v816_v31 = vadd.f32 %v756_v28, %v292_v27 }
  0xd5   : > { %820 = vst [vmem:[#allocation2 + $0x10] sm:$0xff] %v816_v31 }
  0xd6   : > { %v743_v3 = vpop.f32.mrf.mxu2 }
  0xd7   : > { %v744_v33 = vadd.f32 %v743_v3, %v730_v32  ;;  %v757_v5 = vpop.f32.mrf.mxu3 }
  0xd9   : > { %v758_v60 = vadd.f32 %v757_v5, %v744_v33 }
  0xdb   : > { %v818_v35 = vadd.f32 %v758_v60, %v294_v34 }
  0xdd   : > { %822 = vst [vmem:[#allocation2 + $0x18] sm:$0xff] %v818_v35 }
  0xe6   : > { %v769_v2 = vpop.f32.mrf.mxu0 }
  0xe7   : > { %v783_v36 = vpop.f32.mrf.mxu1 }
  0xe8   : > { %v784_v37 = vadd.f32 %v783_v36, %v769_v2 }
  0xee   : > { %v797_v38 = vpop.f32.mrf.mxu2  ;;  %v771_v43 = vpop.f32.mrf.mxu0 }
  0xef   : > { %v798_v39 = vadd.f32 %v797_v38, %v784_v37  ;;  %v811_v40 = vpop.f32.mrf.mxu3  ;;  %v785_v44 = vpop.f32.mrf.mxu1 }
  0xf0   : > { %v786_v46 = vadd.f32 %v785_v44, %v771_v43 }
  0xf1   : > { %v812_v42 = vadd.f32 %v811_v40, %v798_v39 }
  0xf3   : > { %v817_v45 = vadd.f32 %v812_v42, %v293_v41 }
  0xf5   : > { %821 = vst [vmem:[#allocation2] sm:$0xff] %v817_v45 }
  0xf6   : > { %v799_v47 = vpop.f32.mrf.mxu2 }
  0xf7   : > { %v800_v48 = vadd.f32 %v799_v47, %v786_v46  ;;  %v813_v50 = vpop.f32.mrf.mxu3 }
  0xf9   : > { %v814_v51 = vadd.f32 %v813_v50, %v800_v48  ;;  %827 = sbr.rel (%p1202_p10) target bundleno = 279 (0x117), region = 67 }
  0xfb   : > { %v819_v52 = vadd.f32 %v814_v51, %v295_v49 }
  0xfd   : > { %823 = vst [vmem:[#allocation2 + $0x8] sm:$0xff] %v819_v52 }
  0xfe   : > { %v828_v53 = vld [vmem:[#allocation2 + $0x10] sm:$0xff]  ;;  %v832_v54 = vld [vmem:[%s1604_s2] sm:$0x3]  ;;  %v830_v56 = vld [vmem:[#allocation2 + $0x18] sm:$0xff] }
  0xff   : > { %v834_v55 = vperm.slane %v832_v54, 0  ;;  %v829_v57 = vld [vmem:[#allocation2] sm:$0xff]  ;;  %v835_v58 = vperm.slane %v832_v54, 1  ;;  %v847_v9 = vld [vmem:[%s1605_s3 + $0x8] sm:$0xff] }
 0x100   : > { %v846_v8 = vld [vmem:[%s1605_s3] sm:$0xff] }
 0x101   : > { %v838_v61 = vadd.f32 %v834_v55, %v828_v53  ;;  %v839_v62 = vadd.f32 %v835_v58, %v829_v57  ;;  %v840_v0 = vadd.f32 %v834_v55, %v830_v56 }
 0x103   : > { %842 = vst [vmem:[%s1606_s4] sm:$0xff] %v838_v61  ;;  %v848_v1 = vmul.f32 0.5, %v839_v62 }
 0x104   : > { %v831_v59 = vld [vmem:[#allocation2 + $0x8] sm:$0xff]  ;;  %843 = vst [vmem:[%s1606_s4 + $0x8] sm:$0xff] %v840_v0 }
 0x105   : > { %v841_v63 = vadd.f32 %v835_v58, %v831_v59  ;;  %844 = vst [vmem:[%s1607_s5] sm:$0xff] %v839_v62  ;;  %v850_v6 = vmul.f32 1.442695, %v848_v1 }
 0x107   : > { %v849_v4 = vmul.f32 0.5, %v841_v63  ;;  %845 = vst [vmem:[%s1607_s5 + $0x8] sm:$0xff] %v841_v63  ;;  %1300 = vpow2.f32 %v850_v6 }
 0x109   : > { %v852_v7 = vmul.f32 1.442695, %v849_v4 }
 0x10b   : > { %1302 = vpow2.f32 %v852_v7 }
 0x10d   : > { %v1301_v10 = vpop.eup %1300 }
 0x10e   : > { %v854_v12 = vmul.f32 %v1301_v10, %v846_v8 }
 0x110   : > { %v856_v14 = vadd.f32 %v854_v12, %v838_v61 }
 0x111   : > { %v1303_v11 = vpop.eup %1302 }
 0x112   : > { %v855_v13 = vmul.f32 %v1303_v11, %v847_v9  ;;  %858 = vst [vmem:[%s1608_s6] sm:$0xff] %v856_v14 }
 0x114   : > { %v857_v15 = vadd.f32 %v855_v13, %v840_v0 }
 0x116   : > { %859 = vst [vmem:[%s1608_s6 + $0x8] sm:$0xff] %v857_v15 }
 0x117 PF: > { %p14_p11 = scmp.ge.s32.totalorder %s1383_s25, 4   ;;  %s1609_s21 = smov %s1322_s22 }
 0x118   : > { %s1610_s22 = smov %s1392_s28  ;;  %s1611_s23 = smov %s1383_s25 }
 0x119   :  { %16 = sbr.rel (!%p14_p11) target bundleno = 2 (0x2), region = 117 }

// kernel: _lambda_.11
= control target key start
LH: loop header
LB: loop body
LE: loop exit
PB: predicated region body
PF: predicated region fallthrough
CT: control target
= control target key end

     0   :  { %s1005_s12 = smov 0   ;;  %s1007_s13 = smov 0   ;;  %s1161_s0 = inlined_call_operand.vmem [shape: bf16[128,640], index: 0, kind: input, shape index: {}]   ;;  %s1162_s1 = inlined_call_operand.vmem [shape: bf16[640,128], index: 1, kind: input, shape index: {}]   ;;  %s1163_s2 = inlined_call_operand.vmem [shape: f32[1,128], index: 2, kind: input, shape index: {}]   ;;  %s1164_s3 = inlined_call_operand.vmem [shape: f32[128,128], index: 3, kind: output, shape index: {}]  }
   0x1   :  { %s1009_s14 = smov 0   ;;  %s1011_s15 = smov 0  }
   0x2   :  { %s1013_s16 = smov 0  }
   0x3 LB: > { %s25_s17 = sadd.s32 1, %s978_s15  ;;  %p48_p1 = scmp.ne.s32.totalorder %s970_s13, %s966_s12  ;;  %s982_s16 = sphi %s1013_s16, %s13_s16   ;;  %s978_s15 = sphi %s1011_s15, %s1168_s15   ;;  %s974_s14 = sphi %s1009_s14, %s1167_s14   ;;  %s970_s13 = sphi %s1007_s13, %s1166_s13   ;;  %s966_s12 = sphi %s1005_s12, %s1165_s12  }
   0x4   : > { %p26_p0 = scmp.ge.s32.totalorder %s25_s17, 5  ;;  %p49_p2 = scmp.eq.s32.totalorder %s982_s16, 0 }
   0x5   : > { %s41_s19 = sadd.s32 1, %s970_s13  ;;  %p785_p5 = scmp.ge.s32.totalorder %s982_s16, 5 }
   0x6   : > { %s1170_s17 = smov (%p26_p0, %s25_s17), 0  ;;  %p50_p3 = por %p49_p2, %p48_p1 }
   0x7   : > { %s37_s18 = ssub.s32 %s978_s15, %s1170_s17  ;;  %162 = sbr.rel (%p785_p5) target bundleno = 32 (0x20), region = 20 }
   0x8   : > { %p39_p4 = scmp.eq.s32.totalorder %s37_s18, 0 }
   0xa   : > { %s1040_s20 = scalar_select %p39_p4, %s970_s13, %s41_s19  }
   0xc   : > { %165 = sbr.rel (!%p50_p3) target bundleno = 32 (0x20), region = 24  ;;  %s167_s21 = sand.u32 (%p50_p3), 1, %s970_s13  }
   0xd   : > { %s787_s22 = sshll.u32 (%p50_p3), %s978_s15, 2  ;;  %s786_s23 = sshll.u32 (%p50_p3), %s167_s21, 6 }
   0xe   : > { %s1048_s26 = scalar_lea.vmem (%p50_p3), %s1161_s0, %s787_s22  ;;  %s169_s27 = scalar_lea.vmem (%p50_p3), [#allocation3], %s786_s23 }
   0xf   : > { %v191_v0 = vld [vmem:[%s1048_s26] sm:$0xf] (%p50_p3)  ;;  %v193_v1 = vld [vmem:[%s1048_s26 + $0x14] sm:$0xf] (%p50_p3)  ;;  %v195_v2 = vld [vmem:[%s1048_s26 + $0x28] sm:$0xf] (%p50_p3) }
  0x10   : > { %192 = vst [vmem:[%s169_s27] sm:$0xf] (%p50_p3), %v191_v0  ;;  %v197_v3 = vld [vmem:[%s1048_s26 + $0x3c] sm:$0xf] (%p50_p3)  ;;  %v199_v4 = vld [vmem:[%s1048_s26 + $0x50] sm:$0xf] (%p50_p3) }
  0x11   : > { %194 = vst [vmem:[%s169_s27 + $0x4] sm:$0xf] %v193_v1  ;;  %v201_v5 = vld [vmem:[%s1048_s26 + $0x64] sm:$0xf]  ;;  %v203_v6 = vld [vmem:[%s1048_s26 + $0x78] sm:$0xf] }
  0x12   : > { %196 = vst [vmem:[%s169_s27 + $0x8] sm:$0xf] %v195_v2  ;;  %v205_v7 = vld [vmem:[%s1048_s26 + $0x8c] sm:$0xf]  ;;  %v207_v8 = vld [vmem:[%s1048_s26 + $0xa0] sm:$0xf] }
  0x13   : > { %198 = vst [vmem:[%s169_s27 + $0xc] sm:$0xf] %v197_v3  ;;  %v209_v9 = vld [vmem:[%s1048_s26 + $0xb4] sm:$0xf]  ;;  %v211_v10 = vld [vmem:[%s1048_s26 + $0xc8] sm:$0xf] }
  0x14   : > { %200 = vst [vmem:[%s169_s27 + $0x10] sm:$0xf] %v199_v4  ;;  %v213_v11 = vld [vmem:[%s1048_s26 + $0xdc] sm:$0xf]  ;;  %v215_v12 = vld [vmem:[%s1048_s26 + $0xf0] sm:$0xf] }
  0x15   : > { %202 = vst [vmem:[%s169_s27 + $0x14] sm:$0xf] %v201_v5  ;;  %v217_v13 = vld [vmem:[%s1048_s26 + $0x104] sm:$0xf]  ;;  %v219_v14 = vld [vmem:[%s1048_s26 + $0x118] sm:$0xf] }
  0x16   : > { %204 = vst [vmem:[%s169_s27 + $0x18] sm:$0xf] %v203_v6  ;;  %v221_v15 = vld [vmem:[%s1048_s26 + $0x12c] sm:$0xf] }
  0x17   : > { %206 = vst [vmem:[%s169_s27 + $0x1c] sm:$0xf] %v205_v7 }
  0x18   : > { %208 = vst [vmem:[%s169_s27 + $0x20] sm:$0xf] %v207_v8 }
  0x19   : > { %210 = vst [vmem:[%s169_s27 + $0x24] sm:$0xf] %v209_v9 }
  0x1a   : > { %212 = vst [vmem:[%s169_s27 + $0x28] sm:$0xf] %v211_v10 }
  0x1b   : > { %214 = vst [vmem:[%s169_s27 + $0x2c] sm:$0xf] %v213_v11 }
  0x1c   : > { %216 = vst [vmem:[%s169_s27 + $0x30] sm:$0xf] %v215_v12 }
  0x1d   : > { %218 = vst [vmem:[%s169_s27 + $0x34] sm:$0xf] %v217_v13 }
  0x1e   : > { %220 = vst [vmem:[%s169_s27 + $0x38] sm:$0xf] %v219_v14 }
  0x1f   : > { %222 = vst [vmem:[%s169_s27 + $0x3c] sm:$0xf] %v221_v15 }
  0x20 PF: > { %p788_p6 = scmp.ge.s32.totalorder %s982_s16, 1  ;;  %p289_p7 = scmp.lt.s32.totalorder %s982_s16, 6 }
  0x22   : > { %p290_p8 = pnand %p788_p6, %p289_p7 }
  0x23   : > { %s296_s28 = sand.u32 (!%p290_p8), 1, %s966_s12   ;;  %s790_s29 = sshll.u32 (!%p290_p8), %s974_s14, 4 }
  0x24   : > { %293 = sbr.rel (%p290_p8) target bundleno = 277 (0x115), region = 69  ;;  %s789_s30 = sshll.u32 (!%p290_p8), %s296_s28, 6 }
  0x25   : > { %p335_p9 = scmp.lt.s32.totalorder (!%p290_p8), %s790_s29, 79  ;;  %s1075_s8 = scalar_lea.vmem (!%p290_p8), [#allocation3], %s789_s30 }
  0x26   : > { %p792_p10 = scmp.ne.s32.totalorder (!%p290_p8), %s974_s14, 0 }
  0x29   : > { %s1172_s29 = smov (!%p335_p9, %s790_s29), 79  ;;  %358 = sbr.rel (%p792_p10) target bundleno = 63 (0x3f), region = 77 }
  0x2a   : > { %s791_s4 = sshll.u32 %s1172_s29, 2 }
  0x2b   : > { %s1073_s7 = scalar_lea.vmem %s1162_s1, %s791_s4 }
  0x2e   : > { %v984_v16 = vmov 0.0  }
  0x2f   : > { %359 = vst [vmem:[#allocation2 + $0x30] sm:$0xff] %v984_v16 }
  0x30   : > { %360 = vst [vmem:[#allocation2] sm:$0xff] %v984_v16 }
  0x31   : > { %361 = vst [vmem:[#allocation2 + $0x58] sm:$0xff] %v984_v16 }
  0x32   : > { %362 = vst [vmem:[#allocation2 + $0x18] sm:$0xff] %v984_v16 }
  0x33   : > { %363 = vst [vmem:[#allocation2 + $0x50] sm:$0xff] %v984_v16 }
  0x34   : > { %364 = vst [vmem:[#allocation2 + $0x68] sm:$0xff] %v984_v16 }
  0x35   : > { %365 = vst [vmem:[#allocation2 + $0x8] sm:$0xff] %v984_v16 }
  0x36   : > { %366 = vst [vmem:[#allocation2 + $0x48] sm:$0xff] %v984_v16 }
  0x37   : > { %367 = vst [vmem:[#allocation2 + $0x40] sm:$0xff] %v984_v16 }
  0x38   : > { %368 = vst [vmem:[#allocation2 + $0x20] sm:$0xff] %v984_v16 }
  0x39   : > { %369 = vst [vmem:[#allocation2 + $0x10] sm:$0xff] %v984_v16 }
  0x3a   : > { %370 = vst [vmem:[#allocation2 + $0x38] sm:$0xff] %v984_v16 }
  0x3b   : > { %371 = vst [vmem:[#allocation2 + $0x60] sm:$0xff] %v984_v16 }
  0x3c   : > { %372 = vst [vmem:[#allocation2 + $0x70] sm:$0xff] %v984_v16 }
  0x3d   : > { %373 = vst [vmem:[#allocation2 + $0x78] sm:$0xff] %v984_v16 }
  0x3e   : > { %374 = vst [vmem:[#allocation2 + $0x28] sm:$0xff] %v984_v16 }
  0x3f PF: > { %v877_v17 = vld [vmem:[%s1073_s7 + $0x38] sm:$0xff]  ;;  %v876_v18 = vld [vmem:[%s1073_s7 + $0x30] sm:$0xff]  ;;  %v875_v19 = vld [vmem:[%s1073_s7 + $0x28] sm:$0xff]  ;;  %p857_p11 = scmp.ne.s32.totalorder %s974_s14, 4 }
  0x40   : > { %519 = vmatpush.bf16.msra.mxu0 %v877_v17  ;;  %878 = vmatpush.bf16.msra.mxu1 %v877_v17  ;;  %v874_v20 = vld [vmem:[%s1073_s7 + $0x20] sm:$0xff]  ;;  %v873_v21 = vld [vmem:[%s1073_s7 + $0x18] sm:$0xff]  ;;  %v872_v22 = vld [vmem:[%s1073_s7 + $0x10] sm:$0xff] }
  0x41   : > { %879 = vmatpush.bf16.msra.mxu2 %v877_v17  ;;  %880 = vmatpush.bf16.msra.mxu3 %v877_v17  ;;  %v871_v23 = vld [vmem:[%s1073_s7 + $0x8] sm:$0xff]  ;;  %v870_v24 = vld [vmem:[%s1073_s7] sm:$0xff]  ;;  %v864_v26 = vld [vmem:[%s1075_s8 + $0x10] sm:$0xff] }
  0x42   : > { %v862_v25 = vld [vmem:[%s1075_s8] sm:$0xff]  ;;  %v868_v28 = vld [vmem:[%s1075_s8 + $0x30] sm:$0xff]  ;;  %v863_v29 = vld [vmem:[%s1075_s8 + $0x8] sm:$0xff] }
  0x43   : > { %v866_v27 = vld [vmem:[%s1075_s8 + $0x20] sm:$0xff]  ;;  %v865_v30 = vld [vmem:[%s1075_s8 + $0x18] sm:$0xff]  ;;  %v867_v31 = vld [vmem:[%s1075_s8 + $0x28] sm:$0xff] }
  0x44   : > { %520 = vmatpush.bf16.msra.mxu0 %v876_v18  ;;  %881 = vmatpush.bf16.msra.mxu1 %v876_v18  ;;  %v869_v32 = vld [vmem:[%s1075_s8 + $0x38] sm:$0xff]  ;;  %v375_v33 = vld [vmem:[#allocation2 + $0x30] sm:$0xff]  ;;  %v383_v39 = vld [vmem:[#allocation2 + $0x40] sm:$0xff] }
  0x45   : > { %882 = vmatpush.bf16.msra.mxu2 %v876_v18  ;;  %883 = vmatpush.bf16.msra.mxu3 %v876_v18  ;;  %v379_v34 = vld [vmem:[#allocation2 + $0x50] sm:$0xff]  ;;  %v387_v40 = vld [vmem:[#allocation2 + $0x60] sm:$0xff]  ;;  %v380_v42 = vld [vmem:[#allocation2 + $0x68] sm:$0xff] }
  0x46   : > { %v376_v41 = vld [vmem:[#allocation2] sm:$0xff]  ;;  %v388_v52 = vld [vmem:[#allocation2 + $0x70] sm:$0xff]  ;;  %v377_v53 = vld [vmem:[#allocation2 + $0x58] sm:$0xff] }
  0x47   : > { %v384_v51 = vld [vmem:[#allocation2 + $0x20] sm:$0xff]  ;;  %v381_v54 = vld [vmem:[#allocation2 + $0x8] sm:$0xff]  ;;  %v385_v63 = vld [vmem:[#allocation2 + $0x10] sm:$0xff] }
  0x48   : > { %521 = vmatpush.bf16.msra.mxu0 %v875_v19  ;;  %884 = vmatpush.bf16.msra.mxu1 %v875_v19  ;;  %v389_v0 = vld [vmem:[#allocation2 + $0x78] sm:$0xff]  ;;  %v382_v2 = vld [vmem:[#allocation2 + $0x48] sm:$0xff] }
  0x49   : > { %885 = vmatpush.bf16.msra.mxu2 %v875_v19  ;;  %886 = vmatpush.bf16.msra.mxu3 %v875_v19  ;;  %v378_v1 = vld [vmem:[#allocation2 + $0x18] sm:$0xff]  ;;  %v390_v12 = vld [vmem:[#allocation2 + $0x28] sm:$0xff] }
  0x4a   : > { %v386_v11 = vld [vmem:[#allocation2 + $0x38] sm:$0xff] }
  0x4c   : > { %522 = vmatpush.bf16.msra.mxu0 %v874_v20  ;;  %887 = vmatpush.bf16.msra.mxu1 %v874_v20 }
  0x4d   : > { %888 = vmatpush.bf16.msra.mxu2 %v874_v20  ;;  %889 = vmatpush.bf16.msra.mxu3 %v874_v20 }
  0x50   : > { %523 = vmatpush.bf16.msra.mxu0 %v873_v21  ;;  %890 = vmatpush.bf16.msra.mxu1 %v873_v21 }
  0x51   : > { %891 = vmatpush.bf16.msra.mxu2 %v873_v21  ;;  %892 = vmatpush.bf16.msra.mxu3 %v873_v21 }
  0x54   : > { %524 = vmatpush.bf16.msra.mxu0 %v872_v22  ;;  %893 = vmatpush.bf16.msra.mxu1 %v872_v22 }
  0x55   : > { %894 = vmatpush.bf16.msra.mxu2 %v872_v22  ;;  %895 = vmatpush.bf16.msra.mxu3 %v872_v22 }
  0x58   : > { %525 = vmatpush.bf16.msra.mxu0 %v871_v23  ;;  %896 = vmatpush.bf16.msra.mxu1 %v871_v23 }
  0x59   : > { %897 = vmatpush.bf16.msra.mxu2 %v871_v23  ;;  %898 = vmatpush.bf16.msra.mxu3 %v871_v23 }
  0x5c   : > { %526 = vmatpush.bf16.msra.mxu0 %v870_v24  ;;  %899 = vmatpush.bf16.msra.mxu1 %v870_v24 }
  0x5d   : > { %900 = vmatpush.bf16.msra.mxu2 %v870_v24  ;;  %901 = vmatpush.bf16.msra.mxu3 %v870_v24 }
  0x5f   : > { %527 = vmatmul.bf16.vlgmr.msra.gmra.mxu0 %v862_v25  ;;  %537 = vmatmul.bf16.vlgmr.msra.gmra.mxu1 %v864_v26 }
  0x60   : > { %547 = vmatmul.bf16.vlgmr.msra.gmra.mxu2 %v866_v27  ;;  %557 = vmatmul.bf16.vlgmr.msra.gmra.mxu3 %v868_v28 }
  0x6f   : > { %532 = vmatmul.bf16.gmra.mxu0 %v863_v29  ;;  %542 = vmatmul.bf16.gmra.mxu1 %v865_v30 }
  0x70   : > { %552 = vmatmul.bf16.gmra.mxu2 %v867_v31  ;;  %562 = vmatmul.bf16.gmra.mxu3 %v869_v32 }
  0xdc   : > { %v528_v35 = vpop.f32.mrf.mxu0  ;;  %v538_v36 = vpop.f32.mrf.mxu1 }
  0xdd   : > { %v568_v37 = vadd.f32 %v528_v35, %v375_v33  ;;  %v572_v38 = vadd.f32 %v538_v36, %v379_v34 }
  0xdf   : > { %584 = vst [vmem:[#allocation2 + $0x30] sm:$0xff] %v568_v37 }
  0xe0   : > { %588 = vst [vmem:[#allocation2 + $0x50] sm:$0xff] %v572_v38 }
  0xe3   : > { %v548_v43 = vpop.f32.mrf.mxu2  ;;  %v558_v44 = vpop.f32.mrf.mxu3 }
  0xe4   : > { %v576_v45 = vadd.f32 %v548_v43, %v383_v39  ;;  %v580_v46 = vadd.f32 %v558_v44, %v387_v40  ;;  %v530_v47 = vpop.f32.mrf.mxu0  ;;  %v540_v48 = vpop.f32.mrf.mxu1 }
  0xe5   : > { %v569_v49 = vadd.f32 %v530_v47, %v376_v41  ;;  %v573_v50 = vadd.f32 %v540_v48, %v380_v42 }
  0xe6   : > { %592 = vst [vmem:[#allocation2 + $0x40] sm:$0xff] %v576_v45 }
  0xe7   : > { %596 = vst [vmem:[#allocation2 + $0x60] sm:$0xff] %v580_v46 }
  0xe8   : > { %585 = vst [vmem:[#allocation2] sm:$0xff] %v569_v49 }
  0xe9   : > { %589 = vst [vmem:[#allocation2 + $0x68] sm:$0xff] %v573_v50 }
  0xeb   : > { %v550_v55 = vpop.f32.mrf.mxu2  ;;  %v560_v56 = vpop.f32.mrf.mxu3 }
  0xec   : > { %v577_v57 = vadd.f32 %v550_v55, %v384_v51  ;;  %v581_v58 = vadd.f32 %v560_v56, %v388_v52  ;;  %v533_v59 = vpop.f32.mrf.mxu0  ;;  %v543_v60 = vpop.f32.mrf.mxu1 }
  0xed   : > { %v570_v61 = vadd.f32 %v533_v59, %v377_v53  ;;  %v574_v62 = vadd.f32 %v543_v60, %v381_v54 }
  0xee   : > { %593 = vst [vmem:[#allocation2 + $0x20] sm:$0xff] %v577_v57 }
  0xef   : > { %597 = vst [vmem:[#allocation2 + $0x70] sm:$0xff] %v581_v58 }
  0xf0   : > { %586 = vst [vmem:[#allocation2 + $0x58] sm:$0xff] %v570_v61 }
  0xf1   : > { %590 = vst [vmem:[#allocation2 + $0x8] sm:$0xff] %v574_v62 }
  0xf3   : > { %v553_v3 = vpop.f32.mrf.mxu2  ;;  %v563_v4 = vpop.f32.mrf.mxu3 }
  0xf4   : > { %v578_v5 = vadd.f32 %v553_v3, %v385_v63  ;;  %v582_v6 = vadd.f32 %v563_v4, %v389_v0  ;;  %v535_v7 = vpop.f32.mrf.mxu0  ;;  %v545_v8 = vpop.f32.mrf.mxu1 }
  0xf5   : > { %v571_v9 = vadd.f32 %v535_v7, %v378_v1  ;;  %v575_v10 = vadd.f32 %v545_v8, %v382_v2 }
  0xf6   : > { %594 = vst [vmem:[#allocation2 + $0x10] sm:$0xff] %v578_v5 }
  0xf7   : > { %598 = vst [vmem:[#allocation2 + $0x78] sm:$0xff] %v582_v6 }
  0xf8   : > { %587 = vst [vmem:[#allocation2 + $0x18] sm:$0xff] %v571_v9 }
  0xf9   : > { %591 = vst [vmem:[#allocation2 + $0x48] sm:$0xff] %v575_v10 }
  0xfb   : > { %v555_v13 = vpop.f32.mrf.mxu2  ;;  %v565_v14 = vpop.f32.mrf.mxu3  ;;  %603 = sbr.rel (%p857_p11) target bundleno = 277 (0x115), region = 81 }
  0xfc   : > { %v579_v15 = vadd.f32 %v555_v13, %v386_v11  ;;  %v583_v16 = vadd.f32 %v565_v14, %v390_v12 }
  0xfe   : > { %595 = vst [vmem:[#allocation2 + $0x38] sm:$0xff] %v579_v15 }
  0xff   : > { %599 = vst [vmem:[#allocation2 + $0x28] sm:$0xff] %v583_v16 }
 0x100   : > { %v604_v17 = vld [vmem:[#allocation2 + $0x30] sm:$0xff]  ;;  %v943_v18 = vld [vmem:[%s1163_s2] ss:$0 sm:$0xff]  ;;  %v606_v20 = vld [vmem:[#allocation2 + $0x58] sm:$0xff] }
 0x101   : > { %v605_v19 = vld [vmem:[#allocation2] sm:$0xff]  ;;  %v607_v21 = vld [vmem:[#allocation2 + $0x18] sm:$0xff]  ;;  %v624_v22 = vadd.f32 %v943_v18, %v604_v17  ;;  %v626_v24 = vadd.f32 %v943_v18, %v606_v20  ;;  %v608_v26 = vld [vmem:[#allocation2 + $0x50] sm:$0xff] }
 0x102   : > { %v625_v23 = vadd.f32 %v943_v18, %v605_v19  ;;  %v627_v25 = vadd.f32 %v943_v18, %v607_v21  ;;  %v609_v27 = vld [vmem:[#allocation2 + $0x68] sm:$0xff]  ;;  %v628_v29 = vadd.f32 %v943_v18, %v608_v26  ;;  %v612_v32 = vld [vmem:[#allocation2 + $0x40] sm:$0xff]  ;;  %v614_v40 = vld [vmem:[#allocation2 + $0x10] sm:$0xff] }
 0x103   : > { %v610_v28 = vld [vmem:[#allocation2 + $0x8] sm:$0xff]  ;;  %v629_v30 = vadd.f32 %v943_v18, %v609_v27  ;;  %v640_v33 = vmax.f32 %v624_v22, 0.0  ;;  %v642_v35 = vmax.f32 %v626_v24, 0.0  ;;  %v613_v37 = vld [vmem:[#allocation2 + $0x20] sm:$0xff]  ;;  %v632_v42 = vadd.f32 %v943_v18, %v612_v32  ;;  %v617_v49 = vld [vmem:[#allocation2 + $0x70] sm:$0xff] }
 0x104   : > { %v611_v31 = vld [vmem:[#allocation2 + $0x48] sm:$0xff]  ;;  %v641_v34 = vmax.f32 %v625_v23, 0.0  ;;  %v630_v36 = vadd.f32 %v943_v18, %v610_v28  ;;  %v643_v38 = vmax.f32 %v627_v25, 0.0  ;;  %v644_v41 = vmax.f32 %v628_v29, 0.0  ;;  %v616_v46 = vld [vmem:[#allocation2 + $0x60] sm:$0xff]  ;;  %v618_v52 = vld [vmem:[#allocation2 + $0x78] sm:$0xff] }
 0x105   : > { %v631_v39 = vadd.f32 %v943_v18, %v611_v31  ;;  %656 = vst [vmem:[%s1164_s3] sm:$0xff] %v640_v33  ;;  %v615_v43 = vld [vmem:[#allocation2 + $0x38] sm:$0xff]  ;;  %v645_v44 = vmax.f32 %v629_v30, 0.0  ;;  %v633_v45 = vadd.f32 %v943_v18, %v613_v37  ;;  %v634_v48 = vadd.f32 %v943_v18, %v614_v40 }
 0x106   : > { %657 = vst [vmem:[%s1164_s3 + $0x8] sm:$0xff] %v641_v34  ;;  %v646_v47 = vmax.f32 %v630_v36, 0.0  ;;  %v635_v51 = vadd.f32 %v943_v18, %v615_v43  ;;  %v648_v53 = vmax.f32 %v632_v42, 0.0  ;;  %v636_v54 = vadd.f32 %v943_v18, %v616_v46  ;;  %v619_v55 = vld [vmem:[#allocation2 + $0x28] sm:$0xff] }
 0x107   : > { %658 = vst [vmem:[%s1164_s3 + $0x10] sm:$0xff] %v642_v35  ;;  %v647_v50 = vmax.f32 %v631_v39, 0.0  ;;  %v649_v56 = vmax.f32 %v633_v45, 0.0  ;;  %v637_v57 = vadd.f32 %v943_v18, %v617_v49  ;;  %v650_v58 = vmax.f32 %v634_v48, 0.0 }
 0x108   : > { %659 = vst [vmem:[%s1164_s3 + $0x18] sm:$0xff] %v643_v38  ;;  %v638_v59 = vadd.f32 %v943_v18, %v618_v52  ;;  %v651_v60 = vmax.f32 %v635_v51, 0.0  ;;  %v639_v61 = vadd.f32 %v943_v18, %v619_v55  ;;  %v652_v62 = vmax.f32 %v636_v54, 0.0 }
 0x109   : > { %660 = vst [vmem:[%s1164_s3 + $0x20] sm:$0xff] %v644_v41  ;;  %v653_v63 = vmax.f32 %v637_v57, 0.0 }
 0x10a   : > { %661 = vst [vmem:[%s1164_s3 + $0x28] sm:$0xff] %v645_v44  ;;  %v654_v0 = vmax.f32 %v638_v59, 0.0  ;;  %v655_v1 = vmax.f32 %v639_v61, 0.0 }
 0x10b   : > { %662 = vst [vmem:[%s1164_s3 + $0x30] sm:$0xff] %v646_v47 }
 0x10c   : > { %663 = vst [vmem:[%s1164_s3 + $0x38] sm:$0xff] %v647_v50 }
 0x10d   : > { %664 = vst [vmem:[%s1164_s3 + $0x40] sm:$0xff] %v648_v53 }
 0x10e   : > { %665 = vst [vmem:[%s1164_s3 + $0x48] sm:$0xff] %v649_v56 }
 0x10f   : > { %666 = vst [vmem:[%s1164_s3 + $0x50] sm:$0xff] %v650_v58 }
 0x110   : > { %667 = vst [vmem:[%s1164_s3 + $0x58] sm:$0xff] %v651_v60 }
 0x111   : > { %668 = vst [vmem:[%s1164_s3 + $0x60] sm:$0xff] %v652_v62 }
 0x112   : > { %669 = vst [vmem:[%s1164_s3 + $0x68] sm:$0xff] %v653_v63 }
 0x113   : > { %670 = vst [vmem:[%s1164_s3 + $0x70] sm:$0xff] %v654_v0 }
 0x114   : > { %671 = vst [vmem:[%s1164_s3 + $0x78] sm:$0xff] %v655_v1 }
 0x115 PF: > { %s13_s16 = sadd.s32 1, %s982_s16   ;;  %s1165_s12 = smov %s970_s13 }
 0x116   : > { %p10_p12 = scmp.ge.s32.totalorder %s13_s16, 7   ;;  %s1166_s13 = smov %s1040_s20 }
 0x117   : > { %s1167_s14 = smov %s978_s15  ;;  %s1168_s15 = smov %s1170_s17 }
 0x118   :  { %12 = sbr.rel (!%p10_p12) target bundleno = 3 (0x3), region = 122 }

// kernel: _lambda_.12
= control target key start
LH: loop header
LB: loop body
LE: loop exit
PB: predicated region body
PF: predicated region fallthrough
CT: control target
= control target key end

     0   :  { %s1486_s12 = smov 0   ;;  %s1488_s13 = smov 0   ;;  %s1714_s0 = inlined_call_operand.vmem [shape: bf16[512,256], index: 0, kind: input, shape index: {}]   ;;  %s1715_s1 = inlined_call_operand.vmem [shape: bf16[256,128], index: 1, kind: input, shape index: {}]   ;;  %s1716_s2 = inlined_call_operand.vmem [shape: f32[1,128], index: 2, kind: input, shape index: {}]   ;;  %s1717_s3 = inlined_call_operand.vmem [shape: f32[512,128], index: 3, kind: output, shape index: {}]  }
   0x1   :  { %s1490_s14 = smov 0  }
   0x2 LB: > { %s32_s15 = sadd.s32 1, %s1460_s13  ;;  %p1152_p0 = scmp.ge.s32.totalorder %s1464_s14, 1  ;;  %s1464_s14 = sphi %s1490_s14, %s13_s14   ;;  %s1460_s13 = sphi %s1488_s13, %s1719_s13   ;;  %s1456_s12 = sphi %s1486_s12, %s1718_s12  }
   0x3   : > { %p34_p1 = scmp.ge.s32.totalorder %s32_s15, 2  ;;  %p191_p2 = scmp.lt.s32.totalorder %s1464_s14, 3 }
   0x5   : > { %s1721_s15 = smov (%p34_p1, %s32_s15), 0  ;;  %p192_p3 = pnand %p1152_p0, %p191_p2 }
   0x6   : > { %s1153_s28 = sshll.u32 (!%p192_p3), %s1456_s12, 5 }
   0x7   : > { %195 = sbr.rel (%p192_p3) target bundleno = 304 (0x130), region = 32  ;;  %p236_p4 = scmp.lt.s32.totalorder (!%p192_p3), %s1153_s28, 63 }
   0xc   : > { %v1392_v0 = vld [vmem:[%s1715_s1 + $0x38] sm:$0xff]  ;;  %v1391_v2 = vld [vmem:[%s1715_s1 + $0x30] sm:$0xff]  ;;  %v1390_v4 = vld [vmem:[%s1715_s1 + $0x28] sm:$0xff]  ;;  %s1723_s28 = smov (!%p236_p4, %s1153_s28), 63 }
   0xd   : > { %v1400_v1 = vld [vmem:[%s1715_s1 + $0x78] sm:$0xff]  ;;  %655 = vmatpush.bf16.msra.mxu0 %v1392_v0  ;;  %1401 = vmatpush.bf16.msra.mxu2 %v1392_v0  ;;  %v1399_v3 = vld [vmem:[%s1715_s1 + $0x70] sm:$0xff]  ;;  %v1398_v5 = vld [vmem:[%s1715_s1 + $0x68] sm:$0xff]  ;;  %s1352_s17 = sshll.u32 %s1723_s28, 3 }
   0xe   : > { %744 = vmatpush.bf16.msra.mxu1 %v1400_v1  ;;  %1409 = vmatpush.bf16.msra.mxu3 %v1400_v1  ;;  %v1389_v6 = vld [vmem:[%s1715_s1 + $0x20] sm:$0xff]  ;;  %v1388_v8 = vld [vmem:[%s1715_s1 + $0x18] sm:$0xff]  ;;  %v1387_v10 = vld [vmem:[%s1715_s1 + $0x10] sm:$0xff]  ;;  %s1554_s22 = scalar_lea.vmem %s1714_s0, %s1352_s17  ;;  %s1640_s7 = scalar_lea.vmem %s1717_s3, %s1352_s17 }
   0xf   : > { %v1397_v7 = vld [vmem:[%s1715_s1 + $0x60] sm:$0xff]  ;;  %v1396_v9 = vld [vmem:[%s1715_s1 + $0x58] sm:$0xff]  ;;  %v1395_v11 = vld [vmem:[%s1715_s1 + $0x50] sm:$0xff] }
  0x10   : > { %v1386_v12 = vld [vmem:[%s1715_s1 + $0x8] sm:$0xff]  ;;  %v1385_v14 = vld [vmem:[%s1715_s1] sm:$0xff]  ;;  %v1168_v28 = vld [vmem:[%s1554_s22 + $0x10] sm:$0xf] }
  0x11   : > { %656 = vmatpush.bf16.msra.mxu0 %v1391_v2  ;;  %1402 = vmatpush.bf16.msra.mxu2 %v1391_v2  ;;  %v1394_v13 = vld [vmem:[%s1715_s1 + $0x48] sm:$0xff]  ;;  %v1393_v15 = vld [vmem:[%s1715_s1 + $0x40] sm:$0xff]  ;;  %v1356_v29 = vld [vmem:[%s1554_s22 + $0x14] sm:$0xf0] }
  0x12   : > { %745 = vmatpush.bf16.msra.mxu1 %v1399_v3  ;;  %1410 = vmatpush.bf16.msra.mxu3 %v1399_v3  ;;  %v1160_v16 = vld [vmem:[%s1554_s22] sm:$0xf]  ;;  %v1354_v17 = vld [vmem:[%s1554_s22 + $0x4] sm:$0xf0]  ;;  %v1353_v20 = vld [vmem:[%s1554_s22 + $0x4] sm:$0xf]  ;;  %v1169_v36 = vor.u32 %v1356_v29, %v1168_v28 }
  0x13   : > { %v1224_v18 = vld [vmem:[%s1554_s22 + $0x80] sm:$0xf]  ;;  %v1370_v19 = vld [vmem:[%s1554_s22 + $0x84] sm:$0xf0]  ;;  %v1162_v21 = vld [vmem:[%s1554_s22 + $0x8] sm:$0xf0]  ;;  %v1161_v24 = vor.u32 %v1354_v17, %v1160_v16 }
  0x14   : > { %v1369_v22 = vld [vmem:[%s1554_s22 + $0x84] sm:$0xf]  ;;  %v1226_v23 = vld [vmem:[%s1554_s22 + $0x88] sm:$0xf0]  ;;  %v1225_v25 = vor.u32 %v1370_v19, %v1224_v18  ;;  %v1165_v26 = vor.u32 %v1353_v20, %v1162_v21  ;;  %v1232_v30 = vld [vmem:[%s1554_s22 + $0x90] sm:$0xf] }
  0x15   : > { %657 = vmatpush.bf16.msra.mxu0 %v1390_v4  ;;  %1403 = vmatpush.bf16.msra.mxu2 %v1390_v4  ;;  %v1229_v27 = vor.u32 %v1369_v22, %v1226_v23  ;;  %v1372_v31 = vld [vmem:[%s1554_s22 + $0x94] sm:$0xf0]  ;;  %v1355_v32 = vld [vmem:[%s1554_s22 + $0x14] sm:$0xf]  ;;  %v1170_v33 = vld [vmem:[%s1554_s22 + $0x18] sm:$0xf0] }
  0x16   : > { %746 = vmatpush.bf16.msra.mxu1 %v1398_v5  ;;  %1411 = vmatpush.bf16.msra.mxu3 %v1398_v5  ;;  %v1371_v34 = vld [vmem:[%s1554_s22 + $0x94] sm:$0xf]  ;;  %v1234_v35 = vld [vmem:[%s1554_s22 + $0x98] sm:$0xf0]  ;;  %v1233_v37 = vor.u32 %v1372_v31, %v1232_v30  ;;  %v1173_v38 = vor.u32 %v1355_v32, %v1170_v33  ;;  %v1176_v40 = vld [vmem:[%s1554_s22 + $0x20] sm:$0xf] }
  0x17   : > { %v1237_v39 = vor.u32 %v1371_v34, %v1234_v35  ;;  %v1358_v41 = vld [vmem:[%s1554_s22 + $0x24] sm:$0xf0]  ;;  %v1240_v42 = vld [vmem:[%s1554_s22 + $0xa0] sm:$0xf]  ;;  %v1357_v44 = vld [vmem:[%s1554_s22 + $0x24] sm:$0xf] }
  0x18   : > { %v1374_v43 = vld [vmem:[%s1554_s22 + $0xa4] sm:$0xf0]  ;;  %v1178_v45 = vld [vmem:[%s1554_s22 + $0x28] sm:$0xf0]  ;;  %v1373_v46 = vld [vmem:[%s1554_s22 + $0xa4] sm:$0xf]  ;;  %v1177_v48 = vor.u32 %v1358_v41, %v1176_v40 }
  0x19   : > { %658 = vmatpush.bf16.msra.mxu0 %v1389_v6  ;;  %1404 = vmatpush.bf16.msra.mxu2 %v1389_v6  ;;  %v1242_v47 = vld [vmem:[%s1554_s22 + $0xa8] sm:$0xf0]  ;;  %v1241_v49 = vor.u32 %v1374_v43, %v1240_v42  ;;  %v1181_v50 = vor.u32 %v1357_v44, %v1178_v45  ;;  %v1184_v52 = vld [vmem:[%s1554_s22 + $0x30] sm:$0xf]  ;;  %v1360_v53 = vld [vmem:[%s1554_s22 + $0x34] sm:$0xf0] }
  0x1a   : > { %747 = vmatpush.bf16.msra.mxu1 %v1397_v7  ;;  %1412 = vmatpush.bf16.msra.mxu3 %v1397_v7  ;;  %v1245_v51 = vor.u32 %v1373_v46, %v1242_v47  ;;  %v1248_v54 = vld [vmem:[%s1554_s22 + $0xb0] sm:$0xf]  ;;  %v1376_v55 = vld [vmem:[%s1554_s22 + $0xb4] sm:$0xf0]  ;;  %v1359_v56 = vld [vmem:[%s1554_s22 + $0x34] sm:$0xf]  ;;  %v1185_v60 = vor.u32 %v1360_v53, %v1184_v52 }
  0x1b   : > { %v1186_v57 = vld [vmem:[%s1554_s22 + $0x38] sm:$0xf0]  ;;  %v1375_v58 = vld [vmem:[%s1554_s22 + $0xb4] sm:$0xf]  ;;  %v1249_v61 = vor.u32 %v1376_v55, %v1248_v54  ;;  %v1192_v0 = vld [vmem:[%s1554_s22 + $0x40] sm:$0xf] }
  0x1c   : > { %v1250_v59 = vld [vmem:[%s1554_s22 + $0xb8] sm:$0xf0]  ;;  %v1189_v62 = vor.u32 %v1359_v56, %v1186_v57  ;;  %v1362_v1 = vld [vmem:[%s1554_s22 + $0x44] sm:$0xf0]  ;;  %v1256_v2 = vld [vmem:[%s1554_s22 + $0xc0] sm:$0xf] }
  0x1d   : > { %659 = vmatpush.bf16.msra.mxu0 %v1388_v8  ;;  %1405 = vmatpush.bf16.msra.mxu2 %v1388_v8  ;;  %v1253_v63 = vor.u32 %v1375_v58, %v1250_v59  ;;  %v1378_v3 = vld [vmem:[%s1554_s22 + $0xc4] sm:$0xf0]  ;;  %v1361_v4 = vld [vmem:[%s1554_s22 + $0x44] sm:$0xf]  ;;  %v1194_v5 = vld [vmem:[%s1554_s22 + $0x48] sm:$0xf0]  ;;  %v1193_v8 = vor.u32 %v1362_v1, %v1192_v0 }
  0x1e   : > { %748 = vmatpush.bf16.msra.mxu1 %v1396_v9  ;;  %1413 = vmatpush.bf16.msra.mxu3 %v1396_v9  ;;  %v1377_v6 = vld [vmem:[%s1554_s22 + $0xc4] sm:$0xf]  ;;  %v1258_v7 = vld [vmem:[%s1554_s22 + $0xc8] sm:$0xf0]  ;;  %v1257_v9 = vor.u32 %v1378_v3, %v1256_v2  ;;  %v1363_v16 = vld [vmem:[%s1554_s22 + $0x54] sm:$0xf] }
  0x1f   : > { %v1202_v17 = vld [vmem:[%s1554_s22 + $0x58] sm:$0xf0]  ;;  %v1379_v18 = vld [vmem:[%s1554_s22 + $0xd4] sm:$0xf]  ;;  %v1365_v28 = vld [vmem:[%s1554_s22 + $0x64] sm:$0xf] }
  0x20   : > { %v1266_v19 = vld [vmem:[%s1554_s22 + $0xd8] sm:$0xf0]  ;;  %v1205_v22 = vor.u32 %v1363_v16, %v1202_v17  ;;  %v1210_v29 = vld [vmem:[%s1554_s22 + $0x68] sm:$0xf0]  ;;  %v1381_v30 = vld [vmem:[%s1554_s22 + $0xe4] sm:$0xf] }
  0x21   : > { %660 = vmatpush.bf16.msra.mxu0 %v1387_v10  ;;  %1406 = vmatpush.bf16.msra.mxu2 %v1387_v10  ;;  %v1197_v10 = vor.u32 %v1361_v4, %v1194_v5  ;;  %v1269_v23 = vor.u32 %v1379_v18, %v1266_v19  ;;  %v1274_v31 = vld [vmem:[%s1554_s22 + $0xe8] sm:$0xf0]  ;;  %v1213_v34 = vor.u32 %v1365_v28, %v1210_v29  ;;  %v1367_v40 = vld [vmem:[%s1554_s22 + $0x74] sm:$0xf]  ;;  %v1218_v41 = vld [vmem:[%s1554_s22 + $0x78] sm:$0xf0] }
  0x22   : > { %749 = vmatpush.bf16.msra.mxu1 %v1395_v11  ;;  %1414 = vmatpush.bf16.msra.mxu3 %v1395_v11  ;;  %v1261_v11 = vor.u32 %v1377_v6, %v1258_v7  ;;  %v1277_v35 = vor.u32 %v1381_v30, %v1274_v31  ;;  %v1383_v42 = vld [vmem:[%s1554_s22 + $0xf4] sm:$0xf]  ;;  %v1282_v43 = vld [vmem:[%s1554_s22 + $0xf8] sm:$0xf0]  ;;  %v1221_v46 = vor.u32 %v1367_v40, %v1218_v41 }
  0x23   : > { %v1285_v47 = vor.u32 %v1383_v42, %v1282_v43 }
  0x25   : > { %661 = vmatpush.bf16.msra.mxu0 %v1386_v12  ;;  %1407 = vmatpush.bf16.msra.mxu2 %v1386_v12  ;;  %v1200_v12 = vld [vmem:[%s1554_s22 + $0x50] sm:$0xf] }
  0x26   : > { %750 = vmatpush.bf16.msra.mxu1 %v1394_v13  ;;  %1415 = vmatpush.bf16.msra.mxu3 %v1394_v13  ;;  %v1364_v13 = vld [vmem:[%s1554_s22 + $0x54] sm:$0xf0] }
  0x27   : > { %v1201_v20 = vor.u32 %v1364_v13, %v1200_v12 }
  0x29   : > { %662 = vmatpush.bf16.msra.mxu0 %v1385_v14  ;;  %1408 = vmatpush.bf16.msra.mxu2 %v1385_v14  ;;  %v1264_v14 = vld [vmem:[%s1554_s22 + $0xd0] sm:$0xf] }
  0x2a   : > { %751 = vmatpush.bf16.msra.mxu1 %v1393_v15  ;;  %1416 = vmatpush.bf16.msra.mxu3 %v1393_v15  ;;  %v1380_v15 = vld [vmem:[%s1554_s22 + $0xd4] sm:$0xf0] }
  0x2b   : > { %v1265_v21 = vor.u32 %v1380_v15, %v1264_v14 }
  0x2c   : > { %663 = vmatmul.bf16.vlgmr.msra.gmra.mxu0 %v1161_v24  ;;  %703 = vmatmul.bf16.vlgmr.msra.gmra.mxu2 %v1225_v25  ;;  %v1208_v24 = vld [vmem:[%s1554_s22 + $0x60] sm:$0xf]  ;;  %v1366_v25 = vld [vmem:[%s1554_s22 + $0x64] sm:$0xf0] }
  0x2d   : > { %752 = vmatmul.bf16.vlgmr.msra.gmra.mxu1 %v1165_v26  ;;  %792 = vmatmul.bf16.vlgmr.msra.gmra.mxu3 %v1229_v27  ;;  %v1272_v26 = vld [vmem:[%s1554_s22 + $0xe0] sm:$0xf]  ;;  %v1382_v27 = vld [vmem:[%s1554_s22 + $0xe4] sm:$0xf0]  ;;  %v1209_v32 = vor.u32 %v1366_v25, %v1208_v24 }
  0x2e   : > { %v1273_v33 = vor.u32 %v1382_v27, %v1272_v26 }
  0x3c   : > { %668 = vmatmul.bf16.gmra.mxu0 %v1169_v36  ;;  %708 = vmatmul.bf16.gmra.mxu2 %v1233_v37  ;;  %v1216_v36 = vld [vmem:[%s1554_s22 + $0x70] sm:$0xf]  ;;  %v1368_v37 = vld [vmem:[%s1554_s22 + $0x74] sm:$0xf0] }
  0x3d   : > { %757 = vmatmul.bf16.gmra.mxu1 %v1173_v38  ;;  %797 = vmatmul.bf16.gmra.mxu3 %v1237_v39  ;;  %v1280_v38 = vld [vmem:[%s1554_s22 + $0xf0] sm:$0xf]  ;;  %v1384_v39 = vld [vmem:[%s1554_s22 + $0xf4] sm:$0xf0]  ;;  %v1217_v44 = vor.u32 %v1368_v37, %v1216_v36 }
  0x3e   : > { %v1281_v45 = vor.u32 %v1384_v39, %v1280_v38 }
  0x4c   : > { %673 = vmatmul.bf16.gmra.mxu0 %v1177_v48  ;;  %713 = vmatmul.bf16.gmra.mxu2 %v1241_v49  ;;  %v1632_v49 = vld [vmem:[%s1716_s2] ss:$0 sm:$0xff] }
  0x4d   : > { %762 = vmatmul.bf16.gmra.mxu1 %v1181_v50  ;;  %802 = vmatmul.bf16.gmra.mxu3 %v1245_v51 }
  0x5c   : > { %678 = vmatmul.bf16.gmra.mxu0 %v1185_v60  ;;  %718 = vmatmul.bf16.gmra.mxu2 %v1249_v61 }
  0x5d   : > { %767 = vmatmul.bf16.gmra.mxu1 %v1189_v62  ;;  %807 = vmatmul.bf16.gmra.mxu3 %v1253_v63 }
  0x6c   : > { %683 = vmatmul.bf16.gmra.mxu0 %v1193_v8  ;;  %723 = vmatmul.bf16.gmra.mxu2 %v1257_v9 }
  0x6d   : > { %772 = vmatmul.bf16.gmra.mxu1 %v1197_v10  ;;  %812 = vmatmul.bf16.gmra.mxu3 %v1261_v11 }
  0x7c   : > { %688 = vmatmul.bf16.gmra.mxu0 %v1201_v20  ;;  %728 = vmatmul.bf16.gmra.mxu2 %v1265_v21 }
  0x7d   : > { %777 = vmatmul.bf16.gmra.mxu1 %v1205_v22  ;;  %817 = vmatmul.bf16.gmra.mxu3 %v1269_v23 }
  0x8c   : > { %693 = vmatmul.bf16.gmra.mxu0 %v1209_v32  ;;  %733 = vmatmul.bf16.gmra.mxu2 %v1273_v33 }
  0x8d   : > { %782 = vmatmul.bf16.gmra.mxu1 %v1213_v34  ;;  %822 = vmatmul.bf16.gmra.mxu3 %v1277_v35 }
  0x9c   : > { %698 = vmatmul.bf16.gmra.mxu0 %v1217_v44  ;;  %738 = vmatmul.bf16.gmra.mxu2 %v1281_v45 }
  0x9d   : > { %787 = vmatmul.bf16.gmra.mxu1 %v1221_v46  ;;  %827 = vmatmul.bf16.gmra.mxu3 %v1285_v47 }
  0xa9   : > { %v664_v48 = vpop.f32.mrf.mxu0 }
  0xaa   : > { %v753_v50 = vpop.f32.mrf.mxu1 }
  0xab   : > { %v754_v51 = vadd.f32 %v753_v50, %v664_v48 }
  0xad   : > { %v936_v52 = vadd.f32 %v1632_v49, %v754_v51 }
  0xaf   : > { %v968_v53 = vmax.f32 %v936_v52, 0.0  ;;  %v704_v54 = vpop.f32.mrf.mxu2 }
  0xb0   : > { %v793_v55 = vpop.f32.mrf.mxu3 }
  0xb1   : > { %1000 = vst [vmem:[%s1640_s7] sm:$0xff] %v968_v53  ;;  %v794_v56 = vadd.f32 %v793_v55, %v704_v54  ;;  %v666_v57 = vpop.f32.mrf.mxu0 }
  0xb2   : > { %v755_v58 = vpop.f32.mrf.mxu1 }
  0xb3   : > { %v952_v59 = vadd.f32 %v1632_v49, %v794_v56  ;;  %v756_v60 = vadd.f32 %v755_v58, %v666_v57 }
  0xb5   : > { %v984_v61 = vmax.f32 %v952_v59, 0.0  ;;  %v937_v62 = vadd.f32 %v1632_v49, %v756_v60 }
  0xb7   : > { %1016 = vst [vmem:[%s1640_s7 + $0x80] sm:$0xff] %v984_v61  ;;  %v969_v63 = vmax.f32 %v937_v62, 0.0  ;;  %v706_v0 = vpop.f32.mrf.mxu2 }
  0xb8   : > { %v795_v1 = vpop.f32.mrf.mxu3 }
  0xb9   : > { %1001 = vst [vmem:[%s1640_s7 + $0x8] sm:$0xff] %v969_v63  ;;  %v796_v2 = vadd.f32 %v795_v1, %v706_v0  ;;  %v669_v3 = vpop.f32.mrf.mxu0 }
  0xba   : > { %v758_v4 = vpop.f32.mrf.mxu1 }
  0xbb   : > { %v953_v5 = vadd.f32 %v1632_v49, %v796_v2  ;;  %v759_v6 = vadd.f32 %v758_v4, %v669_v3 }
  0xbd   : > { %v985_v7 = vmax.f32 %v953_v5, 0.0  ;;  %v938_v8 = vadd.f32 %v1632_v49, %v759_v6 }
  0xbf   : > { %1017 = vst [vmem:[%s1640_s7 + $0x88] sm:$0xff] %v985_v7  ;;  %v970_v9 = vmax.f32 %v938_v8, 0.0  ;;  %v709_v10 = vpop.f32.mrf.mxu2 }
  0xc0   : > { %v798_v11 = vpop.f32.mrf.mxu3 }
  0xc1   : > { %1002 = vst [vmem:[%s1640_s7 + $0x10] sm:$0xff] %v970_v9  ;;  %v799_v12 = vadd.f32 %v798_v11, %v709_v10  ;;  %v671_v13 = vpop.f32.mrf.mxu0 }
  0xc2   : > { %v760_v14 = vpop.f32.mrf.mxu1 }
  0xc3   : > { %v954_v15 = vadd.f32 %v1632_v49, %v799_v12  ;;  %v761_v16 = vadd.f32 %v760_v14, %v671_v13 }
  0xc5   : > { %v986_v17 = vmax.f32 %v954_v15, 0.0  ;;  %v939_v18 = vadd.f32 %v1632_v49, %v761_v16 }
  0xc7   : > { %1018 = vst [vmem:[%s1640_s7 + $0x90] sm:$0xff] %v986_v17  ;;  %v971_v19 = vmax.f32 %v939_v18, 0.0  ;;  %v711_v20 = vpop.f32.mrf.mxu2 }
  0xc8   : > { %v800_v21 = vpop.f32.mrf.mxu3 }
  0xc9   : > { %1003 = vst [vmem:[%s1640_s7 + $0x18] sm:$0xff] %v971_v19  ;;  %v801_v22 = vadd.f32 %v800_v21, %v711_v20  ;;  %v674_v23 = vpop.f32.mrf.mxu0 }
  0xca   : > { %v763_v24 = vpop.f32.mrf.mxu1 }
  0xcb   : > { %v955_v25 = vadd.f32 %v1632_v49, %v801_v22  ;;  %v764_v26 = vadd.f32 %v763_v24, %v674_v23 }
  0xcd   : > { %v987_v27 = vmax.f32 %v955_v25, 0.0  ;;  %v940_v28 = vadd.f32 %v1632_v49, %v764_v26 }
  0xcf   : > { %1019 = vst [vmem:[%s1640_s7 + $0x98] sm:$0xff] %v987_v27  ;;  %v972_v29 = vmax.f32 %v940_v28, 0.0  ;;  %v714_v30 = vpop.f32.mrf.mxu2 }
  0xd0   : > { %v803_v31 = vpop.f32.mrf.mxu3 }
  0xd1   : > { %1004 = vst [vmem:[%s1640_s7 + $0x20] sm:$0xff] %v972_v29  ;;  %v804_v32 = vadd.f32 %v803_v31, %v714_v30  ;;  %v676_v33 = vpop.f32.mrf.mxu0 }
  0xd2   : > { %v765_v34 = vpop.f32.mrf.mxu1 }
  0xd3   : > { %v956_v35 = vadd.f32 %v1632_v49, %v804_v32  ;;  %v766_v36 = vadd.f32 %v765_v34, %v676_v33 }
  0xd5   : > { %v988_v37 = vmax.f32 %v956_v35, 0.0  ;;  %v941_v38 = vadd.f32 %v1632_v49, %v766_v36 }
  0xd7   : > { %1020 = vst [vmem:[%s1640_s7 + $0xa0] sm:$0xff] %v988_v37  ;;  %v973_v39 = vmax.f32 %v941_v38, 0.0  ;;  %v716_v40 = vpop.f32.mrf.mxu2 }
  0xd8   : > { %v805_v41 = vpop.f32.mrf.mxu3 }
  0xd9   : > { %1005 = vst [vmem:[%s1640_s7 + $0x28] sm:$0xff] %v973_v39  ;;  %v806_v42 = vadd.f32 %v805_v41, %v716_v40  ;;  %v679_v43 = vpop.f32.mrf.mxu0 }
  0xda   : > { %v768_v44 = vpop.f32.mrf.mxu1 }
  0xdb   : > { %v957_v45 = vadd.f32 %v1632_v49, %v806_v42  ;;  %v769_v46 = vadd.f32 %v768_v44, %v679_v43 }
  0xdd   : > { %v989_v47 = vmax.f32 %v957_v45, 0.0  ;;  %v942_v48 = vadd.f32 %v1632_v49, %v769_v46 }
  0xdf   : > { %1021 = vst [vmem:[%s1640_s7 + $0xa8] sm:$0xff] %v989_v47  ;;  %v974_v50 = vmax.f32 %v942_v48, 0.0  ;;  %v719_v51 = vpop.f32.mrf.mxu2 }
  0xe0   : > { %v808_v52 = vpop.f32.mrf.mxu3 }
  0xe1   : > { %1006 = vst [vmem:[%s1640_s7 + $0x30] sm:$0xff] %v974_v50  ;;  %v809_v53 = vadd.f32 %v808_v52, %v719_v51  ;;  %v681_v54 = vpop.f32.mrf.mxu0 }
  0xe2   : > { %v770_v55 = vpop.f32.mrf.mxu1 }
  0xe3   : > { %v958_v56 = vadd.f32 %v1632_v49, %v809_v53  ;;  %v771_v57 = vadd.f32 %v770_v55, %v681_v54 }
  0xe5   : > { %v990_v58 = vmax.f32 %v958_v56, 0.0  ;;  %v943_v59 = vadd.f32 %v1632_v49, %v771_v57 }
  0xe7   : > { %1022 = vst [vmem:[%s1640_s7 + $0xb0] sm:$0xff] %v990_v58  ;;  %v975_v60 = vmax.f32 %v943_v59, 0.0  ;;  %v721_v61 = vpop.f32.mrf.mxu2 }
  0xe8   : > { %v810_v62 = vpop.f32.mrf.mxu3 }
  0xe9   : > { %1007 = vst [vmem:[%s1640_s7 + $0x38] sm:$0xff] %v975_v60  ;;  %v811_v63 = vadd.f32 %v810_v62, %v721_v61  ;;  %v684_v0 = vpop.f32.mrf.mxu0 }
  0xea   : > { %v773_v1 = vpop.f32.mrf.mxu1 }
  0xeb   : > { %v959_v2 = vadd.f32 %v1632_v49, %v811_v63  ;;  %v774_v3 = vadd.f32 %v773_v1, %v684_v0 }
  0xed   : > { %v991_v4 = vmax.f32 %v959_v2, 0.0  ;;  %v944_v5 = vadd.f32 %v1632_v49, %v774_v3 }
  0xef   : > { %1023 = vst [vmem:[%s1640_s7 + $0xb8] sm:$0xff] %v991_v4  ;;  %v976_v6 = vmax.f32 %v944_v5, 0.0  ;;  %v724_v7 = vpop.f32.mrf.mxu2 }
  0xf0   : > { %v813_v8 = vpop.f32.mrf.mxu3 }
  0xf1   : > { %1008 = vst [vmem:[%s1640_s7 + $0x40] sm:$0xff] %v976_v6  ;;  %v814_v9 = vadd.f32 %v813_v8, %v724_v7  ;;  %v686_v10 = vpop.f32.mrf.mxu0 }
  0xf2   : > { %v775_v11 = vpop.f32.mrf.mxu1 }
  0xf3   : > { %v960_v12 = vadd.f32 %v1632_v49, %v814_v9  ;;  %v776_v13 = vadd.f32 %v775_v11, %v686_v10 }
  0xf5   : > { %v992_v14 = vmax.f32 %v960_v12, 0.0  ;;  %v945_v15 = vadd.f32 %v1632_v49, %v776_v13 }
  0xf7   : > { %1024 = vst [vmem:[%s1640_s7 + $0xc0] sm:$0xff] %v992_v14  ;;  %v977_v16 = vmax.f32 %v945_v15, 0.0  ;;  %v726_v17 = vpop.f32.mrf.mxu2 }
  0xf8   : > { %v815_v18 = vpop.f32.mrf.mxu3 }
  0xf9   : > { %1009 = vst [vmem:[%s1640_s7 + $0x48] sm:$0xff] %v977_v16  ;;  %v816_v19 = vadd.f32 %v815_v18, %v726_v17  ;;  %v689_v20 = vpop.f32.mrf.mxu0 }
  0xfa   : > { %v778_v21 = vpop.f32.mrf.mxu1 }
  0xfb   : > { %v961_v22 = vadd.f32 %v1632_v49, %v816_v19  ;;  %v779_v23 = vadd.f32 %v778_v21, %v689_v20 }
  0xfd   : > { %v993_v24 = vmax.f32 %v961_v22, 0.0  ;;  %v946_v25 = vadd.f32 %v1632_v49, %v779_v23 }
  0xff   : > { %1025 = vst [vmem:[%s1640_s7 + $0xc8] sm:$0xff] %v993_v24  ;;  %v978_v26 = vmax.f32 %v946_v25, 0.0  ;;  %v729_v27 = vpop.f32.mrf.mxu2 }
 0x100   : > { %v818_v28 = vpop.f32.mrf.mxu3 }
 0x101   : > { %1010 = vst [vmem:[%s1640_s7 + $0x50] sm:$0xff] %v978_v26  ;;  %v819_v29 = vadd.f32 %v818_v28, %v729_v27  ;;  %v691_v30 = vpop.f32.mrf.mxu0 }
 0x102   : > { %v780_v31 = vpop.f32.mrf.mxu1 }
 0x103   : > { %v962_v32 = vadd.f32 %v1632_v49, %v819_v29  ;;  %v781_v33 = vadd.f32 %v780_v31, %v691_v30 }
 0x105   : > { %v994_v34 = vmax.f32 %v962_v32, 0.0  ;;  %v947_v35 = vadd.f32 %v1632_v49, %v781_v33 }
 0x107   : > { %1026 = vst [vmem:[%s1640_s7 + $0xd0] sm:$0xff] %v994_v34  ;;  %v979_v36 = vmax.f32 %v947_v35, 0.0  ;;  %v731_v37 = vpop.f32.mrf.mxu2 }
 0x108   : > { %v820_v38 = vpop.f32.mrf.mxu3 }
 0x109   : > { %1011 = vst [vmem:[%s1640_s7 + $0x58] sm:$0xff] %v979_v36  ;;  %v821_v39 = vadd.f32 %v820_v38, %v731_v37  ;;  %v694_v40 = vpop.f32.mrf.mxu0 }
 0x10a   : > { %v783_v41 = vpop.f32.mrf.mxu1 }
 0x10b   : > { %v963_v42 = vadd.f32 %v1632_v49, %v821_v39  ;;  %v784_v43 = vadd.f32 %v783_v41, %v694_v40 }
 0x10d   : > { %v995_v44 = vmax.f32 %v963_v42, 0.0  ;;  %v948_v45 = vadd.f32 %v1632_v49, %v784_v43 }
 0x10f   : > { %1027 = vst [vmem:[%s1640_s7 + $0xd8] sm:$0xff] %v995_v44  ;;  %v980_v46 = vmax.f32 %v948_v45, 0.0  ;;  %v734_v47 = vpop.f32.mrf.mxu2 }
 0x110   : > { %v823_v48 = vpop.f32.mrf.mxu3 }
 0x111   : > { %1012 = vst [vmem:[%s1640_s7 + $0x60] sm:$0xff] %v980_v46  ;;  %v824_v50 = vadd.f32 %v823_v48, %v734_v47  ;;  %v696_v51 = vpop.f32.mrf.mxu0 }
 0x112   : > { %v785_v52 = vpop.f32.mrf.mxu1 }
 0x113   : > { %v964_v53 = vadd.f32 %v1632_v49, %v824_v50  ;;  %v786_v54 = vadd.f32 %v785_v52, %v696_v51 }
 0x115   : > { %v996_v55 = vmax.f32 %v964_v53, 0.0  ;;  %v949_v56 = vadd.f32 %v1632_v49, %v786_v54 }
 0x117   : > { %1028 = vst [vmem:[%s1640_s7 + $0xe0] sm:$0xff] %v996_v55  ;;  %v981_v57 = vmax.f32 %v949_v56, 0.0  ;;  %v736_v58 = vpop.f32.mrf.mxu2 }
 0x118   : > { %v825_v59 = vpop.f32.mrf.mxu3 }
 0x119   : > { %1013 = vst [vmem:[%s1640_s7 + $0x68] sm:$0xff] %v981_v57  ;;  %v826_v60 = vadd.f32 %v825_v59, %v736_v58  ;;  %v699_v61 = vpop.f32.mrf.mxu0 }
 0x11a   : > { %v788_v62 = vpop.f32.mrf.mxu1 }
 0x11b   : > { %v965_v63 = vadd.f32 %v1632_v49, %v826_v60  ;;  %v789_v0 = vadd.f32 %v788_v62, %v699_v61 }
 0x11d   : > { %v997_v1 = vmax.f32 %v965_v63, 0.0  ;;  %v950_v2 = vadd.f32 %v1632_v49, %v789_v0 }
 0x11f   : > { %1029 = vst [vmem:[%s1640_s7 + $0xe8] sm:$0xff] %v997_v1  ;;  %v982_v3 = vmax.f32 %v950_v2, 0.0  ;;  %v739_v4 = vpop.f32.mrf.mxu2 }
 0x120   : > { %v828_v5 = vpop.f32.mrf.mxu3 }
 0x121   : > { %1014 = vst [vmem:[%s1640_s7 + $0x70] sm:$0xff] %v982_v3  ;;  %v829_v6 = vadd.f32 %v828_v5, %v739_v4  ;;  %v701_v7 = vpop.f32.mrf.mxu0 }
 0x122   : > { %v790_v8 = vpop.f32.mrf.mxu1 }
 0x123   : > { %v966_v9 = vadd.f32 %v1632_v49, %v829_v6  ;;  %v791_v10 = vadd.f32 %v790_v8, %v701_v7 }
 0x125   : > { %v998_v11 = vmax.f32 %v966_v9, 0.0  ;;  %v951_v12 = vadd.f32 %v1632_v49, %v791_v10 }
 0x127   : > { %1030 = vst [vmem:[%s1640_s7 + $0xf0] sm:$0xff] %v998_v11  ;;  %v983_v13 = vmax.f32 %v951_v12, 0.0  ;;  %v741_v14 = vpop.f32.mrf.mxu2 }
 0x128   : > { %v830_v15 = vpop.f32.mrf.mxu3 }
 0x129   : > { %1015 = vst [vmem:[%s1640_s7 + $0x78] sm:$0xff] %v983_v13  ;;  %v831_v16 = vadd.f32 %v830_v15, %v741_v14 }
 0x12b   : > { %v967_v17 = vadd.f32 %v1632_v49, %v831_v16 }
 0x12d   : > { %v999_v18 = vmax.f32 %v967_v17, 0.0 }
 0x12f   : > { %1031 = vst [vmem:[%s1640_s7 + $0xf8] sm:$0xff] %v999_v18 }
 0x130 PF: > { %s13_s14 = sadd.s32 1, %s1464_s14   ;;  %s1718_s12 = smov %s1460_s13 }
 0x131   : > { %p10_p5 = scmp.ge.s32.totalorder %s13_s14, 4   ;;  %s1719_s13 = smov %s1721_s15 }
 0x133   :  { %12 = sbr.rel (!%p10_p5) target bundleno = 2 (0x2), region = 76 }

// kernel: _lambda_.13
= control target key start
LH: loop header
LB: loop body
LE: loop exit
PB: predicated region body
PF: predicated region fallthrough
CT: control target
= control target key end

     0   :  { %s1849_s12 = smov 0   ;;  %s1851_s13 = smov 0   ;;  %s2397_s0 = inlined_call_operand.vmem [shape: bf16[512,128], index: 0, kind: input, shape index: {}]   ;;  %s2398_s1 = inlined_call_operand.vmem [shape: bf16[128,128], index: 1, kind: input, shape index: {}]   ;;  %s2399_s2 = inlined_call_operand.vmem [shape: f32[1,128], index: 2, kind: input, shape index: {}]   ;;  %s2400_s3 = inlined_call_operand.vmem [shape: f32[512,128], index: 3, kind: output, shape index: {}]  }
   0x1   :  { %s1853_s14 = smov 0  }
   0x2 LB: > { %s32_s15 = sadd.s32 1, %s1823_s13  ;;  %p1500_p0 = scmp.ge.s32.totalorder %s1827_s14, 1  ;;  %s1827_s14 = sphi %s1853_s14, %s13_s14   ;;  %s1823_s13 = sphi %s1851_s13, %s2438_s13   ;;  %s1819_s12 = sphi %s1849_s12, %s2437_s12  }
   0x3   : > { %p34_p1 = scmp.ge.s32.totalorder %s32_s15, 2  ;;  %p188_p2 = scmp.lt.s32.totalorder %s1827_s14, 3 }
   0x5   : > { %s2440_s15 = smov (%p34_p1, %s32_s15), 0  ;;  %p189_p3 = pnand %p1500_p0, %p188_p2 }
   0x6   : > { %s1501_s24 = sshll.u32 (!%p189_p3), %s1819_s12, 5 }
   0x7   : > { %192 = sbr.rel (%p189_p3) target bundleno = 330 (0x14a), region = 32  ;;  %p230_p4 = scmp.lt.s32.totalorder (!%p189_p3), %s1501_s24, 63 }
   0xc   : > { %v1626_v0 = vld [vmem:[%s2398_s1 + $0x38] sm:$0xff]  ;;  %v1625_v1 = vld [vmem:[%s2398_s1 + $0x30] sm:$0xff]  ;;  %v1624_v2 = vld [vmem:[%s2398_s1 + $0x28] sm:$0xff]  ;;  %s2442_s24 = smov (!%p230_p4, %s1501_s24), 63 }
   0xd   : > { %519 = vmatpush.bf16.msra.mxu0 %v1626_v0  ;;  %1627 = vmatpush.bf16.msra.mxu1 %v1626_v0  ;;  %v1623_v3 = vld [vmem:[%s2398_s1 + $0x20] sm:$0xff]  ;;  %v1622_v4 = vld [vmem:[%s2398_s1 + $0x18] sm:$0xff]  ;;  %v1621_v5 = vld [vmem:[%s2398_s1 + $0x10] sm:$0xff]  ;;  %s1502_s4 = sshll.u32 %s2442_s24, 2  ;;  %s1504_s12 = sshll.u32 %s2442_s24, 3 }
   0xe   : > { %1628 = vmatpush.bf16.msra.mxu2 %v1626_v0  ;;  %1629 = vmatpush.bf16.msra.mxu3 %v1626_v0  ;;  %v1620_v6 = vld [vmem:[%s2398_s1 + $0x8] sm:$0xff]  ;;  %v1619_v7 = vld [vmem:[%s2398_s1] sm:$0xff]  ;;  %s1900_s9 = scalar_lea.vmem %s2397_s0, %s1502_s4  ;;  %s1980_s18 = scalar_lea.vmem %s2400_s3, %s1504_s12 }
   0xf   : > { %v1603_v8 = vld [vmem:[%s1900_s9] sm:$0xff]  ;;  %v1604_v12 = vld [vmem:[%s1900_s9 + $0x8] sm:$0xff]  ;;  %v1605_v16 = vld [vmem:[%s1900_s9 + $0x10] sm:$0xff] }
  0x10   : > { %v1607_v9 = vld [vmem:[%s1900_s9 + $0x20] sm:$0xff]  ;;  %v1608_v13 = vld [vmem:[%s1900_s9 + $0x28] sm:$0xff]  ;;  %v1609_v17 = vld [vmem:[%s1900_s9 + $0x30] sm:$0xff] }
  0x11   : > { %520 = vmatpush.bf16.msra.mxu0 %v1625_v1  ;;  %1630 = vmatpush.bf16.msra.mxu1 %v1625_v1  ;;  %v1611_v10 = vld [vmem:[%s1900_s9 + $0x40] sm:$0xff]  ;;  %v1612_v14 = vld [vmem:[%s1900_s9 + $0x48] sm:$0xff]  ;;  %v1613_v18 = vld [vmem:[%s1900_s9 + $0x50] sm:$0xff] }
  0x12   : > { %1631 = vmatpush.bf16.msra.mxu2 %v1625_v1  ;;  %1632 = vmatpush.bf16.msra.mxu3 %v1625_v1  ;;  %v1615_v11 = vld [vmem:[%s1900_s9 + $0x60] sm:$0xff]  ;;  %v1616_v15 = vld [vmem:[%s1900_s9 + $0x68] sm:$0xff]  ;;  %v1617_v19 = vld [vmem:[%s1900_s9 + $0x70] sm:$0xff] }
  0x13   : > { %v1606_v20 = vld [vmem:[%s1900_s9 + $0x18] sm:$0xff]  ;;  %v1921_v24 = vld [vmem:[%s2399_s2] ss:$0 sm:$0xff] }
  0x14   : > { %v1610_v21 = vld [vmem:[%s1900_s9 + $0x38] sm:$0xff] }
  0x15   : > { %521 = vmatpush.bf16.msra.mxu0 %v1624_v2  ;;  %1633 = vmatpush.bf16.msra.mxu1 %v1624_v2  ;;  %v1614_v22 = vld [vmem:[%s1900_s9 + $0x58] sm:$0xff] }
  0x16   : > { %1634 = vmatpush.bf16.msra.mxu2 %v1624_v2  ;;  %1635 = vmatpush.bf16.msra.mxu3 %v1624_v2  ;;  %v1618_v23 = vld [vmem:[%s1900_s9 + $0x78] sm:$0xff] }
  0x19   : > { %522 = vmatpush.bf16.msra.mxu0 %v1623_v3  ;;  %1636 = vmatpush.bf16.msra.mxu1 %v1623_v3 }
  0x1a   : > { %1637 = vmatpush.bf16.msra.mxu2 %v1623_v3  ;;  %1638 = vmatpush.bf16.msra.mxu3 %v1623_v3 }
  0x1d   : > { %523 = vmatpush.bf16.msra.mxu0 %v1622_v4  ;;  %1639 = vmatpush.bf16.msra.mxu1 %v1622_v4 }
  0x1e   : > { %1640 = vmatpush.bf16.msra.mxu2 %v1622_v4  ;;  %1641 = vmatpush.bf16.msra.mxu3 %v1622_v4 }
  0x21   : > { %524 = vmatpush.bf16.msra.mxu0 %v1621_v5  ;;  %1642 = vmatpush.bf16.msra.mxu1 %v1621_v5 }
  0x22   : > { %1643 = vmatpush.bf16.msra.mxu2 %v1621_v5  ;;  %1644 = vmatpush.bf16.msra.mxu3 %v1621_v5 }
  0x25   : > { %525 = vmatpush.bf16.msra.mxu0 %v1620_v6  ;;  %1645 = vmatpush.bf16.msra.mxu1 %v1620_v6 }
  0x26   : > { %1646 = vmatpush.bf16.msra.mxu2 %v1620_v6  ;;  %1647 = vmatpush.bf16.msra.mxu3 %v1620_v6 }
  0x29   : > { %526 = vmatpush.bf16.msra.mxu0 %v1619_v7  ;;  %1648 = vmatpush.bf16.msra.mxu1 %v1619_v7 }
  0x2a   : > { %1649 = vmatpush.bf16.msra.mxu2 %v1619_v7  ;;  %1650 = vmatpush.bf16.msra.mxu3 %v1619_v7 }
  0x2c   : > { %527 = vmatmul.bf16.vlgmr.msra.gmra.mxu0 %v1603_v8  ;;  %547 = vmatmul.bf16.vlgmr.msra.gmra.mxu1 %v1607_v9 }
  0x2d   : > { %567 = vmatmul.bf16.vlgmr.msra.gmra.mxu2 %v1611_v10  ;;  %587 = vmatmul.bf16.vlgmr.msra.gmra.mxu3 %v1615_v11 }
  0x3c   : > { %532 = vmatmul.bf16.gmra.mxu0 %v1604_v12  ;;  %552 = vmatmul.bf16.gmra.mxu1 %v1608_v13 }
  0x3d   : > { %572 = vmatmul.bf16.gmra.mxu2 %v1612_v14  ;;  %592 = vmatmul.bf16.gmra.mxu3 %v1616_v15 }
  0x4c   : > { %537 = vmatmul.bf16.gmra.mxu0 %v1605_v16  ;;  %557 = vmatmul.bf16.gmra.mxu1 %v1609_v17 }
  0x4d   : > { %577 = vmatmul.bf16.gmra.mxu2 %v1613_v18  ;;  %597 = vmatmul.bf16.gmra.mxu3 %v1617_v19 }
  0x5c   : > { %542 = vmatmul.bf16.gmra.mxu0 %v1606_v20  ;;  %562 = vmatmul.bf16.gmra.mxu1 %v1610_v21 }
  0x5d   : > { %582 = vmatmul.bf16.gmra.mxu2 %v1614_v22  ;;  %602 = vmatmul.bf16.gmra.mxu3 %v1618_v23 }
  0xa9   : > { %v528_v25 = vpop.f32.mrf.mxu0  ;;  %v548_v26 = vpop.f32.mrf.mxu1 }
  0xaa   : > { %v711_v27 = vadd.f32 %v1921_v24, %v528_v25  ;;  %v719_v28 = vadd.f32 %v1921_v24, %v548_v26 }
  0xac   : > { %v743_v29 = vsub.f32 0.0, %v711_v27  ;;  %v751_v30 = vsub.f32 0.0, %v719_v28 }
  0xae   : > { %v775_v31 = vmul.f32 1.442695, %v743_v29  ;;  %v791_v32 = vmul.f32 1.442695, %v751_v30 }
  0xb0   : > { %1676 = vpow2.f32 %v775_v31  ;;  %v568_v33 = vpop.f32.mrf.mxu2  ;;  %v588_v34 = vpop.f32.mrf.mxu3 }
  0xb1   : > { %1678 = vpow2.f32 %v791_v32  ;;  %v727_v35 = vadd.f32 %v1921_v24, %v568_v33  ;;  %v735_v36 = vadd.f32 %v1921_v24, %v588_v34  ;;  %v530_v37 = vpop.f32.mrf.mxu0  ;;  %v550_v38 = vpop.f32.mrf.mxu1 }
  0xb2   : > { %v712_v39 = vadd.f32 %v1921_v24, %v530_v37  ;;  %v720_v40 = vadd.f32 %v1921_v24, %v550_v38 }
  0xb3   : > { %v759_v41 = vsub.f32 0.0, %v727_v35  ;;  %v767_v42 = vsub.f32 0.0, %v735_v36 }
  0xb4   : > { %v744_v43 = vsub.f32 0.0, %v712_v39  ;;  %v752_v44 = vsub.f32 0.0, %v720_v40 }
  0xb5   : > { %v807_v45 = vmul.f32 1.442695, %v759_v41  ;;  %v823_v46 = vmul.f32 1.442695, %v767_v42 }
  0xb6   : > { %v1677_v47 = vpop.eup %1676  ;;  %v777_v50 = vmul.f32 1.442695, %v744_v43  ;;  %v793_v52 = vmul.f32 1.442695, %v752_v44 }
  0xb7   : > { %v1679_v48 = vpop.eup %1678  ;;  %v1929_v49 = vadd.f32 1.0, %v1677_v47  ;;  %1680 = vpow2.f32 %v807_v45 }
  0xb8   : > { %v1931_v51 = vadd.f32 1.0, %v1679_v48  ;;  %1682 = vpow2.f32 %v823_v46  ;;  %v570_v53 = vpop.f32.mrf.mxu2  ;;  %v590_v55 = vpop.f32.mrf.mxu3 }
  0xb9   : > { %1684 = vrcp.f32 %v1929_v49  ;;  %v728_v54 = vadd.f32 %v1921_v24, %v570_v53  ;;  %v880_v56 = vand.u32 2147483647, %v1929_v49  ;;  %v533_v57 = vpop.f32.mrf.mxu0  ;;  %v553_v58 = vpop.f32.mrf.mxu1  ;;  %v882_v60 = vand.u32 2147483648, %v1929_v49 }
  0xba   : > { %1686 = vrcp.f32 %v1931_v51  ;;  %v1000_v61 = vand.u32 2147483647, %v1931_v51  ;;  %v1002_v0 = vand.u32 2147483648, %v1931_v51  ;;  %v736_v2 = vadd.f32 %v1921_v24, %v590_v55 }
  0xbb   : > { %1688 = vpow2.f32 %v777_v50  ;;  %v760_v62 = vsub.f32 0.0, %v728_v54  ;;  %vm876_vm0 = vweird.f32 %v1929_v49  ;;  %v1947_v5 = vadd.f32 %v1921_v24, %v533_v57 }
  0xbc   : > { %1690 = vpow2.f32 %v793_v52  ;;  %v1950_v6 = vadd.f32 %v1921_v24, %v553_v58  ;;  %vm1953_vm1 = vcmp.eq.f32.partialorder %v880_v56, 8.507059e+37  ;;  %vm996_vm2 = vweird.f32 %v1931_v51 }
  0xbd   : > { %v1681_v59 = vpop.eup %1680  ;;  %v883_v11 = vor.u32 1.1754944e-38, %v882_v60  ;;  %vm1960_vm3 = vcmp.eq.f32.partialorder %v1000_v61, 8.507059e+37  ;;  %v809_v14 = vmul.f32 1.442695, %v760_v62  ;;  %v1003_v17 = vor.u32 1.1754944e-38, %v1002_v0 }
  0xbe   : > { %v1683_v63 = vpop.eup %1682  ;;  %v1940_v1 = vadd.f32 1.0, %v1681_v59  ;;  %v768_v18 = vsub.f32 0.0, %v736_v2  ;;  %v745_v20 = vsub.f32 0.0, %v1947_v5  ;;  %v753_v21 = vsub.f32 0.0, %v1950_v6 }
  0xbf   : > { %v1685_v3 = vpop.eup %1684  ;;  %v1944_v4 = vadd.f32 1.0, %v1683_v63 }
  0xc0   : > { %v1687_v7 = vpop.eup %1686  ;;  %v872_v8 = vmul.f32 %v1685_v3, %v1929_v49  ;;  %1692 = vrcp.f32 %v1940_v1  ;;  %vm877_vm4 = vweird.f32 %v1685_v3  ;;  %v1120_v23 = vand.u32 2147483647, %v1940_v1  ;;  %v573_v5 = vpop.f32.mrf.mxu2 }
  0xc1   : > { %v1689_v10 = vpop.eup %1688  ;;  %v992_v12 = vmul.f32 %v1687_v7, %v1931_v51  ;;  %1694 = vrcp.f32 %v1944_v4  ;;  %vm997_vm5 = vweird.f32 %v1687_v7  ;;  %vm1116_vm6 = vweird.f32 %v1940_v1  ;;  %vm878_vm7 = vmor %vm876_vm0, %vm877_vm4  ;;  %v593_v6 = vpop.f32.mrf.mxu3 }
  0xc2   : > { %v1691_v15 = vpop.eup %1690  ;;  %v873_v16 = vsub.f32 1.0, %v872_v8  ;;  %v1969_v25 = vadd.f32 1.0, %v1689_v10  ;;  %1696 = vpow2.f32 %v809_v14  ;;  %v1122_v30 = vand.u32 2147483648, %v1940_v1  ;;  %vm998_vm9 = vmor %vm996_vm2, %vm997_vm5 }
  0xc3   : > { %v993_v19 = vsub.f32 1.0, %v992_v12  ;;  %v1971_v26 = vadd.f32 1.0, %v1691_v15  ;;  %v1240_v31 = vand.u32 2147483647, %v1944_v4  ;;  %vm1236_vm8 = vweird.f32 %v1944_v4 }
  0xc4   : > { %v874_v22 = vmul.f32 %v1685_v3, %v873_v16  ;;  %1698 = vrcp.f32 %v1969_v25  ;;  %v825_v34 = vmul.f32 1.442695, %v768_v18  ;;  %vm1990_vm10 = vcmp.eq.f32.partialorder %v1120_v23, 8.507059e+37  ;;  %v535_v16 = vpop.f32.mrf.mxu0 }
  0xc5   : > { %v994_v27 = vmul.f32 %v1687_v7, %v993_v19  ;;  %v1242_v38 = vand.u32 2147483648, %v1944_v4  ;;  %1700 = vrcp.f32 %v1971_v26  ;;  %v1123_v44 = vor.u32 1.1754944e-38, %v1122_v30 }
  0xc6   : > { %v1693_v28 = vpop.eup %1692  ;;  %v875_v29 = vadd.f32 %v1685_v3, %v874_v22  ;;  %vm2002_vm11 = vcmp.eq.f32.partialorder %v1240_v31, 8.507059e+37  ;;  %v895_v46 = vand.u32 2147483647, %v1969_v25  ;;  %1702 = vpow2.f32 %v825_v34 }
  0xc7   : > { %v995_v32 = vadd.f32 %v1687_v7, %v994_v27  ;;  %v1112_v33 = vmul.f32 %v1693_v28, %v1940_v1  ;;  %v1695_v35 = vpop.eup %1694  ;;  %vm1117_vm12 = vweird.f32 %v1693_v28  ;;  %v1243_v51 = vor.u32 1.1754944e-38, %v1242_v38 }
  0xc8   : > { %v879_v36 = vsel %vm878_vm7, %v1685_v3, %v875_v29  ;;  %v1232_v42 = vmul.f32 %v1695_v35, %v1944_v4  ;;  %v1697_v47 = vpop.eup %1696  ;;  %vm1237_vm13 = vweird.f32 %v1695_v35  ;;  %vm891_vm14 = vweird.f32 %v1969_v25  ;;  %vm1118_vm15 = vmor %vm1116_vm6, %vm1117_vm12 }
  0xc9   : > { %v884_v39 = vsel %vm1953_vm1, %v883_v11, %v879_v36  ;;  %v999_v40 = vsel %vm998_vm9, %v1687_v7, %v995_v32  ;;  %v1113_v41 = vsub.f32 1.0, %v1112_v33  ;;  %v2009_v52 = vadd.f32 1.0, %v1697_v47  ;;  %vm1238_vm1 = vmor %vm1236_vm8, %vm1237_vm13 }
  0xca   : > { %1351 = vst [vmem:[%s1980_s18] sm:$0xff] %v884_v39  ;;  %v1004_v43 = vsel %vm1960_vm3, %v1003_v17, %v999_v40  ;;  %v1233_v49 = vsub.f32 1.0, %v1232_v42  ;;  %v1699_v50 = vpop.eup %1698  ;;  %v779_v56 = vmul.f32 1.442695, %v745_v20  ;;  %vm2014_vm0 = vcmp.eq.f32.partialorder %v895_v46, 8.507059e+37  ;;  %v555_v39 = vpop.f32.mrf.mxu1 }
  0xcb   : > { %1359 = vst [vmem:[%s1980_s18 + $0x40] sm:$0xff] %v1004_v43  ;;  %v1114_v48 = vmul.f32 %v1693_v28, %v1113_v41  ;;  %v887_v55 = vmul.f32 %v1699_v50, %v1969_v25  ;;  %v1701_v57 = vpop.eup %1700  ;;  %v897_v59 = vand.u32 2147483648, %v1969_v25  ;;  %1704 = vrcp.f32 %v2009_v52 }
  0xcc   : > { %v1234_v54 = vmul.f32 %v1695_v35, %v1233_v49  ;;  %v795_v60 = vmul.f32 1.442695, %v753_v21  ;;  %v1007_v0 = vmul.f32 %v1701_v57, %v1971_v26  ;;  %vm892_vm2 = vweird.f32 %v1699_v50  ;;  %v1703_v7 = vpop.eup %1702 }
  0xcd   : > { %v1115_v53 = vadd.f32 %v1693_v28, %v1114_v48  ;;  %v888_v63 = vsub.f32 1.0, %v887_v55  ;;  %v1015_v1 = vand.u32 2147483647, %v1971_v26  ;;  %v1017_v3 = vand.u32 2147483648, %v1971_v26  ;;  %vm893_vm4 = vmor %vm891_vm14, %vm892_vm2  ;;  %v595_v55 = vpop.f32.mrf.mxu3 }
  0xce   : > { %v1235_v62 = vadd.f32 %v1695_v35, %v1234_v54  ;;  %v1008_v10 = vsub.f32 1.0, %v1007_v0  ;;  %1706 = vpow2.f32 %v779_v56  ;;  %vm1012_vm3 = vweird.f32 %v1701_v57  ;;  %v538_v56 = vpop.f32.mrf.mxu0 }
  0xcf   : > { %v1119_v61 = vsel %vm1118_vm15, %v1693_v28, %v1115_v53  ;;  %v889_v9 = vmul.f32 %v1699_v50, %v888_v63  ;;  %v2031_v4 = vadd.f32 1.0, %v1703_v7  ;;  %1708 = vpow2.f32 %v795_v60 }
  0xd0   : > { %v1124_v2 = vsel %vm1990_vm10, %v1123_v44, %v1119_v61  ;;  %v1239_v8 = vsel %vm1238_vm1, %v1695_v35, %v1235_v62  ;;  %v1009_v13 = vmul.f32 %v1701_v57, %v1008_v10  ;;  %v729_v14 = vadd.f32 %v1921_v24, %v573_v5 }
  0xd1   : > { %1367 = vst [vmem:[%s1980_s18 + $0x80] sm:$0xff] %v1124_v2  ;;  %v1244_v11 = vsel %vm2002_vm11, %v1243_v51, %v1239_v8  ;;  %v890_v12 = vadd.f32 %v1699_v50, %v889_v9  ;;  %v737_v15 = vadd.f32 %v1921_v24, %v593_v6  ;;  %v1705_v17 = vpop.eup %1704  ;;  %v898_v18 = vor.u32 1.1754944e-38, %v897_v59  ;;  %v575_v51 = vpop.f32.mrf.mxu2 }
  0xd2   : > { %1375 = vst [vmem:[%s1980_s18 + $0xc0] sm:$0xff] %v1244_v11  ;;  %vm1011_vm5 = vweird.f32 %v1971_v26  ;;  %vm2040_vm6 = vcmp.eq.f32.partialorder %v1015_v1, 8.507059e+37  ;;  %1710 = vrcp.f32 %v2031_v4  ;;  %v1010_v21 = vadd.f32 %v1701_v57, %v1009_v13 }
  0xd3   : > { %v894_v20 = vsel %vm893_vm4, %v1699_v50, %v890_v12  ;;  %v1018_v22 = vor.u32 1.1754944e-38, %v1017_v3  ;;  %v1127_v23 = vmul.f32 %v1705_v17, %v2009_v52  ;;  %vm1013_vm7 = vmor %vm1011_vm5, %vm1012_vm3  ;;  %v1135_v25 = vand.u32 2147483647, %v2009_v52 }
  0xd4   : > { %v899_v27 = vsel %vm2014_vm0, %v898_v18, %v894_v20  ;;  %v1137_v26 = vand.u32 2147483648, %v2009_v52  ;;  %v761_v28 = vsub.f32 0.0, %v729_v14  ;;  %v1707_v29 = vpop.eup %1706  ;;  %v1014_v30 = vsel %vm1013_vm7, %v1701_v57, %v1010_v21 }
  0xd5   : > { %1352 = vst [vmem:[%s1980_s18 + $0x8] sm:$0xff] %v899_v27  ;;  %v1128_v31 = vsub.f32 1.0, %v1127_v23  ;;  %v769_v32 = vsub.f32 0.0, %v737_v15  ;;  %v714_v33 = vadd.f32 %v1921_v24, %v535_v16  ;;  %v1709_v34 = vpop.eup %1708  ;;  %v1019_v35 = vsel %vm2040_vm6, %v1018_v22, %v1014_v30 }
  0xd6   : > { %v1255_v36 = vand.u32 2147483647, %v2031_v4  ;;  %v1257_v37 = vand.u32 2147483648, %v2031_v4  ;;  %v2057_v38 = vadd.f32 1.0, %v1707_v29  ;;  %1360 = vst [vmem:[%s1980_s18 + $0x48] sm:$0xff] %v1019_v35  ;;  %vm1132_vm8 = vweird.f32 %v1705_v17 }
  0xd7   : > { %v1129_v40 = vmul.f32 %v1705_v17, %v1128_v31  ;;  %v2060_v41 = vadd.f32 1.0, %v1709_v34  ;;  %v811_v42 = vmul.f32 1.442695, %v761_v28  ;;  %vm1131_vm9 = vweird.f32 %v2009_v52  ;;  %v558_v28 = vpop.f32.mrf.mxu1 }
  0xd8   : > { %v1711_v43 = vpop.eup %1710  ;;  %1712 = vrcp.f32 %v2057_v38  ;;  %v827_v44 = vmul.f32 1.442695, %v769_v32  ;;  %v746_v45 = vsub.f32 0.0, %v714_v33  ;;  %v722_v48 = vadd.f32 %v1921_v24, %v555_v39  ;;  %vm1133_vm10 = vmor %vm1131_vm9, %vm1132_vm8 }
  0xd9   : > { %v1130_v46 = vadd.f32 %v1705_v17, %v1129_v40  ;;  %v1247_v47 = vmul.f32 %v1711_v43, %v2031_v4  ;;  %1714 = vrcp.f32 %v2060_v41  ;;  %vm1136_vm11 = vcmp.eq.f32.partialorder %v1135_v25, 8.507059e+37 }
  0xda   : > { %v1138_v49 = vor.u32 1.1754944e-38, %v1137_v26  ;;  %vm1251_vm12 = vweird.f32 %v2031_v4  ;;  %vm2068_vm13 = vcmp.eq.f32.partialorder %v1255_v36, 8.507059e+37  ;;  %v1258_v54 = vor.u32 1.1754944e-38, %v1257_v37 }
  0xdb   : > { %v1134_v52 = vsel %vm1133_vm10, %v1705_v17, %v1130_v46  ;;  %v1248_v53 = vsub.f32 1.0, %v1247_v47  ;;  %1716 = vpow2.f32 %v811_v42  ;;  %vm906_vm14 = vweird.f32 %v2057_v38 }
  0xdc   : > { %v1139_v57 = vsel %vm1136_vm11, %v1138_v49, %v1134_v52  ;;  %1718 = vpow2.f32 %v827_v44  ;;  %v781_v58 = vmul.f32 1.442695, %v746_v45  ;;  %vm1252_vm15 = vweird.f32 %v1711_v43 }
  0xdd   : > { %1368 = vst [vmem:[%s1980_s18 + $0x88] sm:$0xff] %v1139_v57  ;;  %v1249_v59 = vmul.f32 %v1711_v43, %v1248_v53  ;;  %v754_v60 = vsub.f32 0.0, %v722_v48  ;;  %v730_v61 = vadd.f32 %v1921_v24, %v575_v51  ;;  %v910_v63 = vand.u32 2147483647, %v2057_v38  ;;  %vm1253_vm0 = vmor %vm1251_vm12, %vm1252_vm15 }
  0xde   : > { %v1713_v62 = vpop.eup %1712  ;;  %1720 = vpow2.f32 %v781_v58  ;;  %v738_v0 = vadd.f32 %v1921_v24, %v595_v55  ;;  %v715_v2 = vadd.f32 %v1921_v24, %v538_v56  ;;  %v912_v6 = vand.u32 2147483648, %v2057_v38 }
  0xdf   : > { %v1715_v1 = vpop.eup %1714  ;;  %v1250_v3 = vadd.f32 %v1711_v43, %v1249_v59  ;;  %v902_v5 = vmul.f32 %v1713_v62, %v2057_v38  ;;  %v797_v7 = vmul.f32 1.442695, %v754_v60  ;;  %vm1026_vm1 = vweird.f32 %v2060_v41  ;;  %v578_v60 = vpop.f32.mrf.mxu2 }
  0xe0   : > { %v1022_v8 = vmul.f32 %v1715_v1, %v2060_v41  ;;  %v1032_v9 = vand.u32 2147483648, %v2060_v41  ;;  %v762_v10 = vsub.f32 0.0, %v730_v61  ;;  %v770_v14 = vsub.f32 0.0, %v738_v0 }
  0xe1   : > { %v1717_v11 = vpop.eup %1716  ;;  %v1254_v12 = vsel %vm1253_vm0, %v1711_v43, %v1250_v3  ;;  %v903_v13 = vsub.f32 1.0, %v902_v5  ;;  %1722 = vpow2.f32 %v797_v7  ;;  %v747_v18 = vsub.f32 0.0, %v715_v2 }
  0xe2   : > { %v1719_v15 = vpop.eup %1718  ;;  %v1259_v16 = vsel %vm2068_vm13, %v1258_v54, %v1254_v12  ;;  %v1023_v17 = vsub.f32 1.0, %v1022_v8  ;;  %v2087_v4 = vadd.f32 1.0, %v1717_v11  ;;  %vm907_vm2 = vweird.f32 %v1713_v62 }
  0xe3   : > { %1376 = vst [vmem:[%s1980_s18 + $0xc8] sm:$0xff] %v1259_v16  ;;  %v904_v19 = vmul.f32 %v1713_v62, %v903_v13  ;;  %v2090_v20 = vadd.f32 1.0, %v1719_v15  ;;  %v813_v21 = vmul.f32 1.442695, %v762_v10  ;;  %vm1027_vm3 = vweird.f32 %v1715_v1  ;;  %vm908_vm5 = vmor %vm906_vm14, %vm907_vm2 }
  0xe4   : > { %v1721_v22 = vpop.eup %1720  ;;  %v1024_v23 = vmul.f32 %v1715_v1, %v1023_v17  ;;  %v1030_v27 = vand.u32 2147483647, %v2060_v41  ;;  %1724 = vrcp.f32 %v2087_v4  ;;  %vm911_vm4 = vcmp.eq.f32.partialorder %v910_v63, 8.507059e+37  ;;  %vm1028_vm6 = vmor %vm1026_vm1, %vm1027_vm3 }
  0xe5   : > { %v905_v25 = vadd.f32 %v1713_v62, %v904_v19  ;;  %v913_v26 = vor.u32 1.1754944e-38, %v912_v6  ;;  %1726 = vrcp.f32 %v2090_v20  ;;  %v1033_v30 = vor.u32 1.1754944e-38, %v1032_v9  ;;  %v598_v19 = vpop.f32.mrf.mxu3 }
  0xe6   : > { %v1025_v29 = vadd.f32 %v1715_v1, %v1024_v23  ;;  %v829_v31 = vmul.f32 1.442695, %v770_v14  ;;  %v783_v32 = vmul.f32 1.442695, %v747_v18  ;;  %v1150_v35 = vand.u32 2147483647, %v2087_v4 }
  0xe7   : > { %v1723_v33 = vpop.eup %1722  ;;  %v909_v34 = vsel %vm908_vm5, %v1713_v62, %v905_v25  ;;  %v2101_v36 = vadd.f32 1.0, %v1721_v22  ;;  %1728 = vpow2.f32 %v813_v21  ;;  %vm1031_vm7 = vcmp.eq.f32.partialorder %v1030_v27, 8.507059e+37  ;;  %v580_v55 = vpop.f32.mrf.mxu2 }
  0xe8   : > { %v914_v37 = vsel %vm911_vm4, %v913_v26, %v909_v34  ;;  %v1029_v38 = vsel %vm1028_vm6, %v1715_v1, %v1025_v29  ;;  %v723_v39 = vadd.f32 %v1921_v24, %v558_v28  ;;  %v1152_v42 = vand.u32 2147483648, %v2087_v4 }
  0xe9   : > { %1353 = vst [vmem:[%s1980_s18 + $0x10] sm:$0xff] %v914_v37  ;;  %v1034_v40 = vsel %vm1031_vm7, %v1033_v30, %v1029_v38  ;;  %v1270_v43 = vand.u32 2147483647, %v2090_v20  ;;  %1730 = vrcp.f32 %v2101_v36  ;;  %vm1146_vm8 = vweird.f32 %v2087_v4 }
  0xea   : > { %v1725_v41 = vpop.eup %1724  ;;  %1361 = vst [vmem:[%s1980_s18 + $0x50] sm:$0xff] %v1034_v40  ;;  %v1272_v44 = vand.u32 2147483648, %v2090_v20  ;;  %v2111_v45 = vadd.f32 1.0, %v1723_v33  ;;  %1732 = vpow2.f32 %v829_v31  ;;  %vm2114_vm9 = vcmp.eq.f32.partialorder %v1150_v35, 8.507059e+37 }
  0xeb   : > { %v1727_v46 = vpop.eup %1726  ;;  %v1142_v47 = vmul.f32 %v1725_v41, %v2087_v4  ;;  %vm1266_vm10 = vweird.f32 %v2090_v20  ;;  %1734 = vpow2.f32 %v783_v32  ;;  %v925_v50 = vand.u32 2147483647, %v2101_v36 }
  0xec   : > { %v1262_v49 = vmul.f32 %v1727_v46, %v2090_v20  ;;  %v927_v51 = vand.u32 2147483648, %v2101_v36  ;;  %1736 = vrcp.f32 %v2111_v45  ;;  %v1153_v54 = vor.u32 1.1754944e-38, %v1152_v42 }
  0xed   : > { %v1729_v52 = vpop.eup %1728  ;;  %v1143_v53 = vsub.f32 1.0, %v1142_v47  ;;  %vm2123_vm11 = vcmp.eq.f32.partialorder %v1270_v43, 8.507059e+37  ;;  %v755_v56 = vsub.f32 0.0, %v723_v39  ;;  %v1273_v58 = vor.u32 1.1754944e-38, %v1272_v44  ;;  %v540_v39 = vpop.f32.mrf.mxu0 }
  0xee   : > { %v1263_v57 = vsub.f32 1.0, %v1262_v49  ;;  %vm921_vm12 = vweird.f32 %v2101_v36  ;;  %v2128_v59 = vadd.f32 1.0, %v1729_v52  ;;  %vm1147_vm13 = vweird.f32 %v1725_v41 }
  0xef   : > { %v1731_v61 = vpop.eup %1730  ;;  %v1144_v62 = vmul.f32 %v1725_v41, %v1143_v53  ;;  %vm1267_vm14 = vweird.f32 %v1727_v46  ;;  %v1045_v63 = vand.u32 2147483647, %v2111_v45  ;;  %vm2132_vm15 = vcmp.eq.f32.partialorder %v925_v50, 8.507059e+37  ;;  %vm1148_vm1 = vmor %vm1146_vm8, %vm1147_vm13  ;;  %v560_v50 = vpop.f32.mrf.mxu1 }
  0xf0   : > { %v1733_v0 = vpop.eup %1732  ;;  %v1264_v2 = vmul.f32 %v1727_v46, %v1263_v57  ;;  %v917_v1 = vmul.f32 %v1731_v61, %v2101_v36  ;;  %v928_v5 = vor.u32 1.1754944e-38, %v927_v51  ;;  %1738 = vrcp.f32 %v2128_v59  ;;  %vm1268_vm2 = vmor %vm1266_vm10, %vm1267_vm14 }
  0xf1   : > { %v1735_v6 = vpop.eup %1734  ;;  %v1145_v7 = vadd.f32 %v1725_v41, %v1144_v62  ;;  %vm1041_vm0 = vweird.f32 %v2111_v45  ;;  %v1047_v8 = vand.u32 2147483648, %v2111_v45  ;;  %v799_v9 = vmul.f32 1.442695, %v755_v56 }
  0xf2   : > { %v731_v10 = vadd.f32 %v1921_v24, %v578_v60  ;;  %v1737_v11 = vpop.eup %1736  ;;  %v1265_v12 = vadd.f32 %v1727_v46, %v1264_v2  ;;  %v918_v13 = vsub.f32 1.0, %v917_v1  ;;  %v2143_v14 = vadd.f32 1.0, %v1733_v0 }
  0xf3   : > { %v2145_v15 = vadd.f32 1.0, %v1735_v6  ;;  %v1149_v16 = vsel %vm1148_vm1, %v1725_v41, %v1145_v7  ;;  %vm922_vm3 = vweird.f32 %v1731_v61  ;;  %v1037_v17 = vmul.f32 %v1737_v11, %v2111_v45 }
  0xf4   : > { %vm2151_vm4 = vcmp.eq.f32.partialorder %v1045_v63, 8.507059e+37  ;;  %v1165_v4 = vand.u32 2147483647, %v2128_v59  ;;  %v1154_v21 = vsel %vm2114_vm9, %v1153_v54, %v1149_v16  ;;  %v1269_v22 = vsel %vm1268_vm2, %v1727_v46, %v1265_v12  ;;  %vm923_vm6 = vmor %vm921_vm12, %vm922_vm3 }
  0xf5   : > { %v919_v23 = vmul.f32 %v1731_v61, %v918_v13  ;;  %v1167_v27 = vand.u32 2147483648, %v2128_v59  ;;  %1369 = vst [vmem:[%s1980_s18 + $0x90] sm:$0xff] %v1154_v21  ;;  %v1274_v20 = vsel %vm2123_vm11, %v1273_v58, %v1269_v22  ;;  %v1038_v25 = vsub.f32 1.0, %v1037_v17 }
  0xf6   : > { %v1048_v26 = vor.u32 1.1754944e-38, %v1047_v8  ;;  %1740 = vrcp.f32 %v2143_v14  ;;  %v1739_v28 = vpop.eup %1738  ;;  %1377 = vst [vmem:[%s1980_s18 + $0xd0] sm:$0xff] %v1274_v20  ;;  %vm1161_vm5 = vweird.f32 %v2128_v59  ;;  %v739_v30 = vadd.f32 %v1921_v24, %v598_v19 }
  0xf7   : > { %v920_v29 = vadd.f32 %v1731_v61, %v919_v23  ;;  %1742 = vrcp.f32 %v2145_v15  ;;  %v1039_v31 = vmul.f32 %v1737_v11, %v1038_v25  ;;  %vm1042_vm7 = vweird.f32 %v1737_v11 }
  0xf8   : > { %v1157_v32 = vmul.f32 %v1739_v28, %v2128_v59  ;;  %vm2171_vm8 = vcmp.eq.f32.partialorder %v1165_v4, 8.507059e+37  ;;  %v1168_v35 = vor.u32 1.1754944e-38, %v1167_v27  ;;  %v1285_v37 = vand.u32 2147483647, %v2143_v14  ;;  %vm1043_vm10 = vmor %vm1041_vm0, %vm1042_vm7 }
  0xf9   : > { %v924_v34 = vsel %vm923_vm6, %v1731_v61, %v920_v29  ;;  %v1287_v38 = vand.u32 2147483648, %v2143_v14  ;;  %v1040_v36 = vadd.f32 %v1737_v11, %v1039_v31  ;;  %vm1162_vm9 = vweird.f32 %v1739_v28 }
  0xfa   : > { %v929_v40 = vsel %vm2132_vm15, %v928_v5, %v924_v34  ;;  %v1158_v42 = vsub.f32 1.0, %v1157_v32  ;;  %vm936_vm11 = vweird.f32 %v2145_v15  ;;  %1744 = vpow2.f32 %v799_v9  ;;  %vm1163_vm13 = vmor %vm1161_vm5, %vm1162_vm9 }
  0xfb   : > { %1354 = vst [vmem:[%s1980_s18 + $0x18] sm:$0xff] %v929_v40  ;;  %v763_v43 = vsub.f32 0.0, %v731_v10  ;;  %v771_v41 = vsub.f32 0.0, %v739_v30  ;;  %v1044_v46 = vsel %vm1043_vm10, %v1737_v11, %v1040_v36  ;;  %v940_v48 = vand.u32 2147483647, %v2145_v15 }
  0xfc   : > { %v1741_v44 = vpop.eup %1740  ;;  %v1159_v47 = vmul.f32 %v1739_v28, %v1158_v42  ;;  %v716_v49 = vadd.f32 %v1921_v24, %v540_v39  ;;  %v1049_v52 = vsel %vm2151_vm4, %v1048_v26, %v1044_v46  ;;  %v942_v53 = vand.u32 2147483648, %v2145_v15 }
  0xfd   : > { %v1743_v51 = vpop.eup %1742  ;;  %v1277_v45 = vmul.f32 %v1741_v44, %v2143_v14  ;;  %v815_v54 = vmul.f32 1.442695, %v763_v43  ;;  %1362 = vst [vmem:[%s1980_s18 + $0x58] sm:$0xff] %v1049_v52  ;;  %vm1282_vm12 = vweird.f32 %v1741_v44  ;;  %v831_v58 = vmul.f32 1.442695, %v771_v41 }
  0xfe   : > { %v1160_v56 = vadd.f32 %v1739_v28, %v1159_v47  ;;  %v932_v57 = vmul.f32 %v1743_v51, %v2145_v15  ;;  %v748_v61 = vsub.f32 0.0, %v716_v49  ;;  %v724_v62 = vadd.f32 %v1921_v24, %v560_v50  ;;  %v543_v15 = vpop.f32.mrf.mxu0 }
  0xff   : > { %v1278_v60 = vsub.f32 1.0, %v1277_v45  ;;  %1746 = vpow2.f32 %v815_v54  ;;  %v732_v2 = vadd.f32 %v1921_v24, %v580_v55  ;;  %vm937_vm14 = vweird.f32 %v1743_v51 }
 0x100   : > { %v1164_v63 = vsel %vm1163_vm13, %v1739_v28, %v1160_v56  ;;  %v933_v0 = vsub.f32 1.0, %v932_v57  ;;  %1748 = vpow2.f32 %v831_v58  ;;  %v1745_v1 = vpop.eup %1744  ;;  %v785_v6 = vmul.f32 1.442695, %v748_v61  ;;  %vm938_vm2 = vmor %vm936_vm11, %vm937_vm14 }
 0x101   : > { %v1169_v3 = vsel %vm2171_vm8, %v1168_v35, %v1164_v63  ;;  %v1279_v5 = vmul.f32 %v1741_v44, %v1278_v60  ;;  %v756_v7 = vsub.f32 0.0, %v724_v62  ;;  %v2199_v8 = vadd.f32 1.0, %v1745_v1 }
 0x102   : > { %1370 = vst [vmem:[%s1980_s18 + $0x98] sm:$0xff] %v1169_v3  ;;  %v934_v59 = vmul.f32 %v1743_v51, %v933_v0  ;;  %v764_v9 = vsub.f32 0.0, %v732_v2  ;;  %vm1281_vm15 = vweird.f32 %v2143_v14  ;;  %1750 = vpow2.f32 %v785_v6  ;;  %v600_v14 = vpop.f32.mrf.mxu3 }
 0x103   : > { %v1280_v10 = vadd.f32 %v1741_v44, %v1279_v5  ;;  %v801_v11 = vmul.f32 1.442695, %v756_v7  ;;  %vm1283_vm0 = vmor %vm1281_vm15, %vm1282_vm12  ;;  %vm1286_vm1 = vcmp.eq.f32.partialorder %v1285_v37, 8.507059e+37  ;;  %v1288_v12 = vor.u32 1.1754944e-38, %v1287_v38  ;;  %v1804_v38 = vld [vmem:[%s2399_s2] ss:$0 sm:$0xff] }
 0x104   : > { %v935_v13 = vadd.f32 %v1743_v51, %v934_v59  ;;  %1752 = vrcp.f32 %v2199_v8  ;;  %v943_v18 = vor.u32 1.1754944e-38, %v942_v53  ;;  %v817_v4 = vmul.f32 1.442695, %v764_v9 }
 0x105   : > { %v1747_v16 = vpop.eup %1746  ;;  %v1284_v17 = vsel %vm1283_vm0, %v1741_v44, %v1280_v10  ;;  %1754 = vpow2.f32 %v801_v11  ;;  %vm941_vm3 = vcmp.eq.f32.partialorder %v940_v48, 8.507059e+37  ;;  %v1060_v20 = vand.u32 2147483647, %v2199_v8 }
 0x106   : > { %v1749_v19 = vpop.eup %1748  ;;  %v1289_v21 = vsel %vm1286_vm1, %v1288_v12, %v1284_v17  ;;  %v939_v22 = vsel %vm938_vm2, %v1743_v51, %v935_v13  ;;  %v2206_v23 = vadd.f32 1.0, %v1747_v16  ;;  %1756 = vpow2.f32 %v817_v4  ;;  %v563_v51 = vpop.f32.mrf.mxu1 }
 0x107   : > { %1378 = vst [vmem:[%s1980_s18 + $0xd8] sm:$0xff] %v1289_v21  ;;  %v944_v27 = vsel %vm941_vm3, %v943_v18, %v939_v22  ;;  %v2210_v25 = vadd.f32 1.0, %v1749_v19  ;;  %v740_v26 = vadd.f32 %v1921_v24, %v600_v14  ;;  %v1062_v29 = vand.u32 2147483648, %v2199_v8  ;;  %v583_v19 = vpop.f32.mrf.mxu2 }
 0x108   : > { %1355 = vst [vmem:[%s1980_s18 + $0x20] sm:$0xff] %v944_v27  ;;  %1758 = vrcp.f32 %v2206_v23  ;;  %v1751_v28 = vpop.eup %1750  ;;  %v1182_v31 = vand.u32 2147483648, %v2206_v23  ;;  %v2222_v34 = vadd.f32 %v1921_v24, %v543_v15  ;;  %vm1056_vm4 = vweird.f32 %v2199_v8 }
 0x109   : > { %1760 = vrcp.f32 %v2210_v25  ;;  %v1302_v32 = vand.u32 2147483648, %v2210_v25  ;;  %v2219_v33 = vadd.f32 1.0, %v1751_v28  ;;  %vm2226_vm5 = vcmp.eq.f32.partialorder %v1060_v20, 8.507059e+37 }
 0x10a   : > { %v1753_v30 = vpop.eup %1752  ;;  %v1180_v39 = vand.u32 2147483647, %v2206_v23  ;;  %v1300_v40 = vand.u32 2147483647, %v2210_v25  ;;  %v772_v42 = vsub.f32 0.0, %v740_v26  ;;  %v1063_v44 = vor.u32 1.1754944e-38, %v1062_v29 }
 0x10b   : > { %v1755_v35 = vpop.eup %1754  ;;  %v1052_v37 = vmul.f32 %v1753_v30, %v2199_v8  ;;  %1762 = vrcp.f32 %v2219_v33  ;;  %v957_v36 = vand.u32 2147483648, %v2219_v33  ;;  %vm1176_vm6 = vweird.f32 %v2206_v23 }
 0x10c   : > { %v1757_v43 = vpop.eup %1756  ;;  %v2235_v46 = vadd.f32 1.0, %v1755_v35  ;;  %vm1057_vm7 = vweird.f32 %v1753_v30  ;;  %v1183_v48 = vor.u32 1.1754944e-38, %v1182_v31  ;;  %vm1296_vm8 = vweird.f32 %v2210_v25  ;;  %v545_v31 = vpop.f32.mrf.mxu0 }
 0x10d   : > { %v1053_v41 = vsub.f32 1.0, %v1052_v37  ;;  %v1303_v49 = vor.u32 1.1754944e-38, %v1302_v32  ;;  %v2238_v50 = vadd.f32 1.0, %v1757_v43  ;;  %vm2241_vm9 = vcmp.eq.f32.partialorder %v1180_v39, 8.507059e+37  ;;  %vm1058_vm12 = vmor %vm1056_vm4, %vm1057_vm7 }
 0x10e   : > { %v1759_v47 = vpop.eup %1758  ;;  %v955_v55 = vand.u32 2147483647, %v2219_v33  ;;  %1764 = vrcp.f32 %v2235_v46  ;;  %vm2248_vm10 = vcmp.eq.f32.partialorder %v1300_v40, 8.507059e+37  ;;  %v2252_v58 = vor.u32 1.1754944e-38, %v957_v36 }
 0x10f   : > { %v1761_v52 = vpop.eup %1760  ;;  %v1054_v45 = vmul.f32 %v1753_v30, %v1053_v41  ;;  %v1172_v53 = vmul.f32 %v1759_v47, %v2206_v23  ;;  %v833_v60 = vmul.f32 1.442695, %v772_v42  ;;  %v749_v61 = vsub.f32 0.0, %v2222_v34 }
 0x110   : > { %v1292_v56 = vmul.f32 %v1761_v52, %v2210_v25  ;;  %vm951_vm11 = vweird.f32 %v2219_v33  ;;  %1766 = vrcp.f32 %v2238_v50  ;;  %v725_v0 = vadd.f32 %v1921_v24, %v563_v51 }
 0x111   : > { %v1055_v62 = vadd.f32 %v1753_v30, %v1054_v45  ;;  %v1173_v63 = vsub.f32 1.0, %v1172_v53  ;;  %v1763_v2 = vpop.eup %1762  ;;  %vm1177_vm13 = vweird.f32 %v1759_v47  ;;  %v1075_v3 = vand.u32 2147483647, %v2235_v46 }
 0x112   : > { %v1293_v1 = vsub.f32 1.0, %v1292_v56  ;;  %v1077_v5 = vand.u32 2147483648, %v2235_v46  ;;  %vm1297_vm14 = vweird.f32 %v1761_v52  ;;  %v947_v59 = vmul.f32 %v1763_v2, %v2219_v33  ;;  %vm1178_vm2 = vmor %vm1176_vm6, %vm1177_vm13 }
 0x113   : > { %v1059_v6 = vsel %vm1058_vm12, %v1753_v30, %v1055_v62  ;;  %v1174_v7 = vmul.f32 %v1759_v47, %v1173_v63  ;;  %vm2264_vm15 = vcmp.eq.f32.partialorder %v955_v55, 8.507059e+37  ;;  %vm1071_vm0 = vweird.f32 %v2235_v46  ;;  %v603_v30 = vpop.f32.mrf.mxu3  ;;  %v585_v63 = vpop.f32.mrf.mxu2 }
 0x114   : > { %v1064_v24 = vsel %vm2226_vm5, %v1063_v44, %v1059_v6  ;;  %v1294_v8 = vmul.f32 %v1761_v52, %v1293_v1  ;;  %v1195_v10 = vand.u32 2147483647, %v2238_v50  ;;  %v1765_v11 = vpop.eup %1764  ;;  %v948_v13 = vsub.f32 1.0, %v947_v59  ;;  %vm1298_vm5 = vmor %vm1296_vm8, %vm1297_vm14 }
 0x115   : > { %1363 = vst [vmem:[%s1980_s18 + $0x60] sm:$0xff] %v1064_v24  ;;  %v1175_v12 = vadd.f32 %v1759_v47, %v1174_v7  ;;  %vm952_vm1 = vweird.f32 %v1763_v2  ;;  %1768 = vpow2.f32 %v833_v60  ;;  %v1067_v17 = vmul.f32 %v1765_v11, %v2235_v46 }
 0x116   : > { %v1295_v16 = vadd.f32 %v1761_v52, %v1294_v8  ;;  %vm2277_vm3 = vcmp.eq.f32.partialorder %v1075_v3, 8.507059e+37  ;;  %v1078_v4 = vor.u32 1.1754944e-38, %v1077_v5  ;;  %vm1191_vm4 = vweird.f32 %v2238_v50  ;;  %v1767_v21 = vpop.eup %1766  ;;  %vm953_vm7 = vmor %vm951_vm11, %vm952_vm1 }
 0x117   : > { %v787_v14 = vmul.f32 1.442695, %v749_v61  ;;  %v1179_v22 = vsel %vm1178_vm2, %v1759_v47, %v1175_v12  ;;  %v949_v23 = vmul.f32 %v1763_v2, %v948_v13  ;;  %v1197_v27 = vand.u32 2147483648, %v2238_v50 }
 0x118   : > { %v757_v20 = vsub.f32 0.0, %v725_v0  ;;  %v1184_v15 = vsel %vm2241_vm9, %v1183_v48, %v1179_v22  ;;  %v1299_v26 = vsel %vm1298_vm5, %v1761_v52, %v1295_v16  ;;  %v1068_v28 = vsub.f32 1.0, %v1067_v17  ;;  %v565_v48 = vpop.f32.mrf.mxu1 }
 0x119   : > { %v1187_v29 = vmul.f32 %v1767_v21, %v2238_v50  ;;  %1371 = vst [vmem:[%s1980_s18 + $0xa0] sm:$0xff] %v1184_v15  ;;  %v1304_v32 = vsel %vm2248_vm10, %v1303_v49, %v1299_v26  ;;  %v950_v25 = vadd.f32 %v1763_v2, %v949_v23  ;;  %vm1072_vm6 = vweird.f32 %v1765_v11 }
 0x11a   : > { %1770 = vpow2.f32 %v787_v14  ;;  %1379 = vst [vmem:[%s1980_s18 + $0xe0] sm:$0xff] %v1304_v32  ;;  %v1069_v34 = vmul.f32 %v1765_v11, %v1068_v28  ;;  %v803_v37 = vmul.f32 1.442695, %v757_v20  ;;  %v733_v39 = vadd.f32 %v1804_v38, %v583_v19  ;;  %vm1073_vm9 = vmor %vm1071_vm0, %vm1072_vm6 }
 0x11b   : > { %v1188_v35 = vsub.f32 1.0, %v1187_v29  ;;  %v1769_v40 = vpop.eup %1768  ;;  %v954_v36 = vsel %vm953_vm7, %v1763_v2, %v950_v25  ;;  %vm1192_vm8 = vweird.f32 %v1767_v21  ;;  %v741_v42 = vadd.f32 %v1804_v38, %v603_v30  ;;  %v605_v9 = vpop.f32.mrf.mxu3 }
 0x11c   : > { %v718_v43 = vadd.f32 %v1804_v38, %v545_v31  ;;  %v959_v41 = vsel %vm2264_vm15, %v2252_v58, %v954_v36  ;;  %v1070_v33 = vadd.f32 %v1765_v11, %v1069_v34  ;;  %v2302_v47 = vadd.f32 1.0, %v1769_v40  ;;  %vm1193_vm11 = vmor %vm1191_vm4, %vm1192_vm8 }
 0x11d   : > { %v1189_v44 = vmul.f32 %v1767_v21, %v1188_v35  ;;  %1356 = vst [vmem:[%s1980_s18 + $0x28] sm:$0xff] %v959_v41  ;;  %1772 = vpow2.f32 %v803_v37  ;;  %v765_v49 = vsub.f32 0.0, %v733_v39  ;;  %v773_v51 = vsub.f32 0.0, %v741_v42 }
 0x11e   : > { %v750_v52 = vsub.f32 0.0, %v718_v43  ;;  %v1074_v45 = vsel %vm1073_vm9, %v1765_v11, %v1070_v33  ;;  %vm1196_vm10 = vcmp.eq.f32.partialorder %v1195_v10, 8.507059e+37  ;;  %1774 = vrcp.f32 %v2302_v47 }
 0x11f   : > { %v1190_v53 = vadd.f32 %v1767_v21, %v1189_v44  ;;  %v1079_v55 = vsel %vm2277_vm3, %v1078_v4, %v1074_v45  ;;  %v1198_v46 = vor.u32 1.1754944e-38, %v1197_v27  ;;  %v819_v56 = vmul.f32 1.442695, %v765_v49 }
 0x120   : > { %v1771_v54 = vpop.eup %1770  ;;  %v726_v57 = vadd.f32 %v1804_v38, %v565_v48  ;;  %1364 = vst [vmem:[%s1980_s18 + $0x68] sm:$0xff] %v1079_v55  ;;  %v835_v61 = vmul.f32 1.442695, %v773_v51  ;;  %v789_v62 = vmul.f32 1.442695, %v750_v52  ;;  %v734_v50 = vadd.f32 %v1804_v38, %v585_v63 }
 0x121   : > { %v1194_v58 = vsel %vm1193_vm11, %v1767_v21, %v1190_v53  ;;  %v2315_v60 = vadd.f32 1.0, %v1771_v54  ;;  %1776 = vpow2.f32 %v819_v56  ;;  %v1315_v10 = vand.u32 2147483647, %v2302_v47 }
 0x122   : > { %v1199_v0 = vsel %vm1196_vm10, %v1198_v46, %v1194_v58  ;;  %v758_v1 = vsub.f32 0.0, %v726_v57  ;;  %v766_v59 = vsub.f32 0.0, %v734_v50  ;;  %v1317_v13 = vand.u32 2147483648, %v2302_v47 }
 0x123   : > { %1372 = vst [vmem:[%s1980_s18 + $0xa8] sm:$0xff] %v1199_v0  ;;  %1778 = vrcp.f32 %v2315_v60  ;;  %v1773_v2 = vpop.eup %1772  ;;  %v742_v17 = vadd.f32 %v1804_v38, %v605_v9  ;;  %vm1311_vm13 = vweird.f32 %v2302_v47  ;;  %v970_v21 = vand.u32 2147483647, %v2315_v60 }
 0x124   : > { %1780 = vpow2.f32 %v835_v61  ;;  %v1775_v3 = vpop.eup %1774  ;;  %v2319_v5 = vadd.f32 1.0, %v1773_v2  ;;  %v805_v7 = vmul.f32 1.442695, %v758_v1  ;;  %v821_v11 = vmul.f32 1.442695, %v766_v59 }
 0x125   : > { %1782 = vpow2.f32 %v789_v62  ;;  %v1307_v6 = vmul.f32 %v1775_v3, %v2302_v47  ;;  %vm1312_vm12 = vweird.f32 %v1775_v3  ;;  %v972_v22 = vand.u32 2147483648, %v2315_v60 }
 0x126   : > { %1784 = vrcp.f32 %v2319_v5  ;;  %vm1313_vm14 = vmor %vm1311_vm13, %vm1312_vm12  ;;  %vm1316_vm15 = vcmp.eq.f32.partialorder %v1315_v10, 8.507059e+37  ;;  %v1318_v28 = vor.u32 1.1754944e-38, %v1317_v13  ;;  %vm966_vm0 = vweird.f32 %v2315_v60 }
 0x127   : > { %v1777_v24 = vpop.eup %1776  ;;  %v1308_v8 = vsub.f32 1.0, %v1307_v6  ;;  %1786 = vpow2.f32 %v805_v7  ;;  %v774_v29 = vsub.f32 0.0, %v742_v17  ;;  %vm2338_vm2 = vcmp.eq.f32.partialorder %v970_v21, 8.507059e+37 }
 0x128   : > { %v2325_v16 = vadd.f32 1.0, %v1777_v24  ;;  %1788 = vpow2.f32 %v821_v11  ;;  %v973_v39 = vor.u32 1.1754944e-38, %v972_v22  ;;  %vm1086_vm4 = vweird.f32 %v2319_v5 }
 0x129   : > { %v1779_v12 = vpop.eup %1778  ;;  %v1309_v4 = vmul.f32 %v1775_v3, %v1308_v8  ;;  %v1090_v42 = vand.u32 2147483647, %v2319_v5  ;;  %v1092_v43 = vand.u32 2147483648, %v2319_v5  ;;  %v837_v41 = vmul.f32 1.442695, %v774_v29 }
 0x12a   : > { %v1781_v18 = vpop.eup %1780  ;;  %v962_v14 = vmul.f32 %v1779_v12, %v2315_v60  ;;  %1790 = vrcp.f32 %v2325_v16  ;;  %vm967_vm1 = vweird.f32 %v1779_v12  ;;  %v1210_v49 = vand.u32 2147483647, %v2325_v16 }
 0x12b   : > { %v1783_v19 = vpop.eup %1782  ;;  %v1310_v23 = vadd.f32 %v1775_v3, %v1309_v4  ;;  %v2332_v20 = vadd.f32 1.0, %v1781_v18  ;;  %vm968_vm3 = vmor %vm966_vm0, %vm967_vm1  ;;  %v1212_v45 = vand.u32 2147483648, %v2325_v16  ;;  %vm1091_vm7 = vcmp.eq.f32.partialorder %v1090_v42, 8.507059e+37 }
 0x12c   : > { %v963_v27 = vsub.f32 1.0, %v962_v14  ;;  %v2334_v15 = vadd.f32 1.0, %v1783_v19  ;;  %v1785_v26 = vpop.eup %1784  ;;  %v1093_v55 = vor.u32 1.1754944e-38, %v1092_v43  ;;  %vm1206_vm9 = vweird.f32 %v2325_v16 }
 0x12d   : > { %v1314_v30 = vsel %vm1313_vm14, %v1775_v3, %v1310_v23  ;;  %v1082_v32 = vmul.f32 %v1785_v26, %v2319_v5  ;;  %v1787_v25 = vpop.eup %1786  ;;  %1792 = vrcp.f32 %v2332_v20  ;;  %vm1087_vm5 = vweird.f32 %v1785_v26 }
 0x12e   : > { %v964_v31 = vmul.f32 %v1779_v12, %v963_v27  ;;  %v1319_v34 = vsel %vm1316_vm15, %v1318_v28, %v1314_v30  ;;  %v1789_v37 = vpop.eup %1788  ;;  %1794 = vrcp.f32 %v2334_v15  ;;  %v2356_v53 = vadd.f32 1.0, %v1787_v25  ;;  %vm1088_vm6 = vmor %vm1086_vm4, %vm1087_vm5 }
 0x12f   : > { %1380 = vst [vmem:[%s1980_s18 + $0xe8] sm:$0xff] %v1319_v34  ;;  %v1083_v40 = vsub.f32 1.0, %v1082_v32  ;;  %v2360_v46 = vadd.f32 1.0, %v1789_v37  ;;  %1796 = vpow2.f32 %v837_v41  ;;  %vm1211_vm10 = vcmp.eq.f32.partialorder %v1210_v49, 8.507059e+37 }
 0x130   : > { %v965_v38 = vadd.f32 %v1779_v12, %v964_v31  ;;  %v1791_v36 = vpop.eup %1790  ;;  %1798 = vrcp.f32 %v2356_v53  ;;  %v1213_v0 = vor.u32 1.1754944e-38, %v1212_v45  ;;  %v1330_v1 = vand.u32 2147483647, %v2332_v20 }
 0x131   : > { %v1084_v44 = vmul.f32 %v1785_v26, %v1083_v40  ;;  %v1202_v47 = vmul.f32 %v1791_v36, %v2325_v16  ;;  %vm1207_vm8 = vweird.f32 %v1791_v36  ;;  %v1332_v50 = vand.u32 2147483648, %v2332_v20 }
 0x132   : > { %v969_v33 = vsel %vm968_vm3, %v1779_v12, %v965_v38  ;;  %vm1208_vm11 = vmor %vm1206_vm9, %vm1207_vm8  ;;  %1800 = vrcp.f32 %v2360_v46  ;;  %v987_v7 = vand.u32 2147483648, %v2334_v15  ;;  %v985_v8 = vand.u32 2147483647, %v2334_v15 }
 0x133   : > { %v974_v48 = vsel %vm2338_vm2, %v973_v39, %v969_v33  ;;  %v1085_v51 = vadd.f32 %v1785_v26, %v1084_v44  ;;  %v1203_v52 = vsub.f32 1.0, %v1202_v47  ;;  %v1793_v54 = vpop.eup %1792  ;;  %vm1326_vm14 = vweird.f32 %v2332_v20 }
 0x134   : > { %1357 = vst [vmem:[%s1980_s18 + $0x30] sm:$0xff] %v974_v48  ;;  %v1795_v56 = vpop.eup %1794  ;;  %v1322_v60 = vmul.f32 %v1793_v54, %v2332_v20  ;;  %vm1327_vm12 = vweird.f32 %v1793_v54  ;;  %vm1331_vm0 = vcmp.eq.f32.partialorder %v1330_v1, 8.507059e+37  ;;  %v1333_v13 = vor.u32 1.1754944e-38, %v1332_v50 }
 0x135   : > { %v1089_v57 = vsel %vm1088_vm6, %v1785_v26, %v1085_v51  ;;  %v1204_v58 = vmul.f32 %v1791_v36, %v1203_v52  ;;  %v977_v62 = vmul.f32 %v1795_v56, %v2334_v15  ;;  %v1797_v59 = vpop.eup %1796  ;;  %vm982_vm13 = vweird.f32 %v1795_v56  ;;  %vm1328_vm15 = vmor %vm1326_vm14, %vm1327_vm12 }
 0x136   : > { %v1094_v61 = vsel %vm1091_vm7, %v1093_v55, %v1089_v57  ;;  %v1323_v2 = vsub.f32 1.0, %v1322_v60  ;;  %v870_v11 = vadd.f32 1.0, %v1797_v59  ;;  %v1799_v12 = vpop.eup %1798  ;;  %vm981_vm1 = vweird.f32 %v2334_v15 }
 0x137   : > { %1365 = vst [vmem:[%s1980_s18 + $0x70] sm:$0xff] %v1094_v61  ;;  %v1205_v63 = vadd.f32 %v1791_v36, %v1204_v58  ;;  %v978_v3 = vsub.f32 1.0, %v977_v62  ;;  %vm983_vm2 = vmor %vm981_vm1, %vm982_vm13  ;;  %v988_v18 = vor.u32 1.1754944e-38, %v987_v7  ;;  %v1097_v4 = vmul.f32 %v1799_v12, %v2356_v53 }
 0x138   : > { %v1324_v6 = vmul.f32 %v1793_v54, %v1323_v2  ;;  %1802 = vrcp.f32 %v870_v11  ;;  %v1801_v14 = vpop.eup %1800  ;;  %vm986_vm3 = vcmp.eq.f32.partialorder %v985_v8, 8.507059e+37  ;;  %v1107_v20 = vand.u32 2147483648, %v2356_v53 }
 0x139   : > { %v1209_v5 = vsel %vm1208_vm11, %v1791_v36, %v1205_v63  ;;  %v979_v24 = vmul.f32 %v1795_v56, %v978_v3  ;;  %v1098_v23 = vsub.f32 1.0, %v1097_v4  ;;  %v1217_v27 = vmul.f32 %v1801_v14, %v2360_v46 }
 0x13a   : > { %v1214_v9 = vsel %vm1211_vm10, %v1213_v0, %v1209_v5  ;;  %v1325_v10 = vadd.f32 %v1793_v54, %v1324_v6  ;;  %vm1102_vm4 = vweird.f32 %v1799_v12  ;;  %v1105_v15 = vand.u32 2147483647, %v2356_v53 }
 0x13b   : > { %1373 = vst [vmem:[%s1980_s18 + $0xb0] sm:$0xff] %v1214_v9  ;;  %v980_v16 = vadd.f32 %v1795_v56, %v979_v24  ;;  %v1099_v26 = vmul.f32 %v1799_v12, %v1098_v23  ;;  %v1218_v28 = vsub.f32 1.0, %v1217_v27  ;;  %vm1101_vm5 = vweird.f32 %v2356_v53 }
 0x13c   : > { %v1329_v17 = vsel %vm1328_vm15, %v1793_v54, %v1325_v10  ;;  %v1227_v29 = vand.u32 2147483648, %v2360_v46  ;;  %vm1222_vm6 = vweird.f32 %v1801_v14  ;;  %v1225_v25 = vand.u32 2147483647, %v2360_v46  ;;  %vm1103_vm7 = vmor %vm1101_vm5, %vm1102_vm4 }
 0x13d   : > { %v1334_v19 = vsel %vm1331_vm0, %v1333_v13, %v1329_v17  ;;  %v984_v21 = vsel %vm983_vm2, %v1795_v56, %v980_v16  ;;  %v1100_v31 = vadd.f32 %v1799_v12, %v1099_v26  ;;  %v1219_v32 = vmul.f32 %v1801_v14, %v1218_v28 }
 0x13e   : > { %1381 = vst [vmem:[%s1980_s18 + $0xf0] sm:$0xff] %v1334_v19  ;;  %v989_v22 = vsel %vm986_vm3, %v988_v18, %v984_v21  ;;  %v1803_v30 = vpop.eup %1802  ;;  %v1108_v34 = vor.u32 1.1754944e-38, %v1107_v20  ;;  %vm1106_vm8 = vcmp.eq.f32.partialorder %v1105_v15, 8.507059e+37  ;;  %vm1221_vm9 = vweird.f32 %v2360_v46 }
 0x13f   : > { %1358 = vst [vmem:[%s1980_s18 + $0x38] sm:$0xff] %v989_v22  ;;  %v1337_v35 = vmul.f32 %v1803_v30, %v870_v11  ;;  %v1104_v37 = vsel %vm1103_vm7, %v1799_v12, %v1100_v31  ;;  %v1220_v38 = vadd.f32 %v1801_v14, %v1219_v32  ;;  %vm1223_vm10 = vmor %vm1221_vm9, %vm1222_vm6  ;;  %v1228_v40 = vor.u32 1.1754944e-38, %v1227_v29 }
 0x140   : > { %v1109_v39 = vsel %vm1106_vm8, %v1108_v34, %v1104_v37  ;;  %vm1226_vm11 = vcmp.eq.f32.partialorder %v1225_v25, 8.507059e+37  ;;  %v1347_v43 = vand.u32 2147483648, %v870_v11  ;;  %vm1342_vm12 = vweird.f32 %v1803_v30 }
 0x141   : > { %v1338_v36 = vsub.f32 1.0, %v1337_v35  ;;  %1366 = vst [vmem:[%s1980_s18 + $0x78] sm:$0xff] %v1109_v39  ;;  %v1224_v42 = vsel %vm1223_vm10, %v1801_v14, %v1220_v38  ;;  %v1345_v44 = vand.u32 2147483647, %v870_v11  ;;  %vm1341_vm13 = vweird.f32 %v870_v11 }
 0x142   : > { %v1229_v41 = vsel %vm1226_vm11, %v1228_v40, %v1224_v42  ;;  %vm1343_vm14 = vmor %vm1341_vm13, %vm1342_vm12  ;;  %v1348_v48 = vor.u32 1.1754944e-38, %v1347_v43 }
 0x143   : > { %v1339_v33 = vmul.f32 %v1803_v30, %v1338_v36  ;;  %1374 = vst [vmem:[%s1980_s18 + $0xb8] sm:$0xff] %v1229_v41  ;;  %vm1346_vm15 = vcmp.eq.f32.partialorder %v1345_v44, 8.507059e+37 }
 0x145   : > { %v1340_v47 = vadd.f32 %v1803_v30, %v1339_v33 }
 0x147   : > { %v1344_v49 = vsel %vm1343_vm14, %v1803_v30, %v1340_v47 }
 0x148   : > { %v1349_v51 = vsel %vm1346_vm15, %v1348_v48, %v1344_v49 }
 0x149   : > { %1382 = vst [vmem:[%s1980_s18 + $0xf8] sm:$0xff] %v1349_v51 }
 0x14a PF: > { %s13_s14 = sadd.s32 1, %s1827_s14   ;;  %s2437_s12 = smov %s1823_s13 }
 0x14b   : > { %p10_p5 = scmp.ge.s32.totalorder %s13_s14, 4   ;;  %s2438_s13 = smov %s2440_s15 }
 0x14d   :  { %12 = sbr.rel (!%p10_p5) target bundleno = 2 (0x2), region = 76 }

</bundles_post_ra>
